<compile_context>
chip_gen: v7x
topology: tpu7x:2x2x1
jax: 0.10.0
libtpu: 0.0.40
codegen_flags: <defaults>
</compile_context>

<pallas_src>
import functools

import jax
import jax.numpy as jnp
from jax.experimental import pallas as pl
from jax.experimental.pallas import tpu as pltpu


# ----------------------------------------------------------------------------
# One-shot feature probes (tiny kernels, run once, cached; graceful fallback).
# ----------------------------------------------------------------------------
@functools.lru_cache(maxsize=None)
def _supports_xlu_roll() -> bool:
    """pltpu.roll along the sublane (second-minor) axis of a 4-D f32 tile."""
    def kern(x_ref, o_ref):
        o_ref[...] = pltpu.roll(x_ref[...], shift=1, axis=2)

    try:
        x = jnp.arange(2 * 16 * 16 * 32, dtype=jnp.float32).reshape(2, 16, 16, 32)
        out = pl.pallas_call(
            kern, out_shape=jax.ShapeDtypeStruct(x.shape, x.dtype))(x)
        jax.block_until_ready(out)
        # Require jnp.roll semantics so the roll / fallback paths agree.
        return bool(jnp.allclose(out, jnp.roll(x, 1, axis=2)))
    except Exception:
        return False


@functools.lru_cache(maxsize=None)
def _supports_single_buffering() -> bool:
    """BlockSpec(pipeline_mode=pl.Buffered(1)) for constant-index operands."""
    def kern(x_ref, w_ref, o_ref):
        o_ref[...] = x_ref[...] + w_ref[...]

    try:
        wspec = pl.BlockSpec((8, 128), lambda i: (0, 0),
                             pipeline_mode=pl.Buffered(1))
        x = jnp.ones((2, 8, 128), jnp.float32)
        wgt = jnp.ones((8, 128), jnp.float32)
        out = pl.pallas_call(
            kern,
            out_shape=jax.ShapeDtypeStruct((2, 8, 128), jnp.float32),
            grid=(2,),
            in_specs=[pl.BlockSpec((1, 8, 128), lambda i: (i, 0, 0)), wspec],
            out_specs=pl.BlockSpec((1, 8, 128), lambda i: (i, 0, 0)),
        )(x, wgt)
        jax.block_until_ready(out)
        return bool(jnp.allclose(out, 2.0))
    except Exception:
        return False


# ----------------------------------------------------------------------------
# Generation-aware VMEM budgeting.
# ----------------------------------------------------------------------------
@functools.lru_cache(maxsize=None)
def _vmem_capacity_bytes() -> int:
    try:
        cap = int(pltpu.get_tpu_info().vmem_capacity_bytes)
        if cap > 0:
            return cap
    except Exception:
        pass
    try:
        kind = jax.devices()[0].device_kind.lower()
    except Exception:
        kind = ""
    if "v7" in kind:
        return 64 * 1024 * 1024
    if "v5" in kind or "v6" in kind:
        return 128 * 1024 * 1024
    return 64 * 1024 * 1024  # conservative default


def _vmem_limit_bytes(capacity: int) -> int:
    # Leave headroom for compiler scratch/spill: ~40 MiB on 64 MiB parts (v7x),
    # ~100 MiB on 128 MiB parts (v5e/v6e).
    if capacity <= 96 * 1024 * 1024:
        return 40 * 1024 * 1024
    return 100 * 1024 * 1024


def _per_step_vmem_bytes(tb, h, w, c, hid, x_itemsize, weight_bytes,
                         single_buffer_weights):
    """Conservative per-grid-step VMEM footprint estimate."""
    tok = tb * h * w
    tile_in = tok * c * x_itemsize
    tile_f32 = tok * c * 4
    # Double-buffered input block + double-buffered output block (pipeline DMA).
    pipeline = 2 * tile_in + 2 * tile_in
    wbytes = weight_bytes if single_buffer_weights else 2 * weight_bytes
    # In-kernel live values: x + mixed accumulator (f32), <=2 shifted tiles
    # (f32), bf16 MXU copy of mixed, h1 (f32 + bf16), y (f32).
    interm = 4 * tile_f32 + tile_f32 // 2 + tok * hid * (4 + 2) + tile_f32
    return pipeline + wbytes + interm


# ----------------------------------------------------------------------------
# Pallas kernel: one RayBlock applied to a tile of `tb` whole NHWC images.
#   x_ref  : (tb, H, W, C)      unpadded activations
#   rw_ref : (2*point_no, C)    learned per-channel ray mixing weights
#   w1_ref : (C, HID) bf16      b1_ref : (1, HID) f32
#   w2_ref : (HID, C) bf16      b2_ref : (1, C)   f32
#   o_ref  : (tb, H, W, C)
# ----------------------------------------------------------------------------
def ray_block_kernel(x_ref, rw_ref, w1_ref, b1_ref, w2_ref, b2_ref, o_ref,
                     *, point_no, point_scale, use_xlu_roll):
    tb, h, w, c = x_ref.shape

    x = x_ref[...].astype(jnp.float32)
    rw = rw_ref[...].astype(jnp.float32)                       # (2*point_no, C)

    # Hoisted per-sample channel weights (avoid re-emitting broadcasts/reshapes
    # inside the unrolled loop).
    wv = [rw[k].reshape(1, 1, 1, c) for k in range(point_no)]
    wh = [rw[point_no + k].reshape(1, 1, 1, c) for k in range(point_no)]

    # --- ray token mixing -----------------------------------------------------
    # Sample k reads x[(i-(k+1)*scale) mod H, j] (vertical) and
    # x[i, (j-(k+1)*scale) mod W] (horizontal): both are circular shifts of the
    # block, done entirely in VMEM (no padded activation in HBM).  Incremental
    # shifts keep <= 2 shifted tiles live.
    mixed = x
    v = x
    hz = x
    for k in range(point_no):
        # Vertical: H is not a lane/sublane dim -> cheap slice+concat.
        v = jnp.roll(v, point_scale, axis=1)
        # Horizontal: W is the sublane dim -> XLU rotate instead of a
        # misaligned-sublane window copy on the vld/VALU path.
        if use_xlu_roll:
            hz = pltpu.roll(hz, shift=point_scale, axis=2)
        else:
            hz = jnp.roll(hz, point_scale, axis=2)
        # TODO(synk): on v6e/v7x these multiplies could run in bf16 (bf16 VALU)
        # with f32 accumulation; kept f32 so v5e (no bf16 VALU) and the packed
        # sublane rotate stay on the well-supported path.
        mixed = mixed + v * wv[k] + hz * wh[k]

    # --- channel MLP: dim -> hidden -> dim, GELU, residual (bf16 MXU, f32 acc)
    tok = tb * h * w
    # Layout no-op when W % 8 == 0 (sublane tiling preserved); production W
    # should respect that.
    m2 = mixed.reshape(tok, c)
    h1 = jnp.dot(m2.astype(jnp.bfloat16), w1_ref[...],
                 preferred_element_type=jnp.float32)
    h1 = h1 + b1_ref[...].astype(jnp.float32)
    h1 = jax.nn.gelu(h1, approximate=True)
    y = jnp.dot(h1.astype(jnp.bfloat16), w2_ref[...],
                preferred_element_type=jnp.float32)
    y = y + b2_ref[...].astype(jnp.float32)

    o_ref[...] = (mixed + y.reshape(tb, h, w, c)).astype(o_ref.dtype)


def _ray_block_pallas(x, params, *, point_no, point_scale):
    b, h, w, c = x.shape
    p = 2 * point_no
    rw = params["ray_w"]
    w1, b1 = params["w1"], params["b1"]
    w2, b2 = params["w2"], params["b2"]
    hid = w1.shape[1]

    use_xlu_roll = _supports_xlu_roll()
    single_buf = _supports_single_buffering()

    weight_bytes = (rw.size * rw.dtype.itemsize
                    + w1.size * w1.dtype.itemsize + b1.size * b1.dtype.itemsize
                    + w2.size * w2.dtype.itemsize + b2.size * b2.dtype.itemsize)

    vmem_limit = _vmem_limit_bytes(_vmem_capacity_bytes())
    budget = int(0.8 * vmem_limit)

    # Batch tile: largest divisor of B whose real per-step footprint fits the
    # budget, preferring a grid of >= 2 steps (2-TC sharding / pipeline overlap).
    def fits(cand):
        return _per_step_vmem_bytes(cand, h, w, c, hid, x.dtype.itemsize,
                                    weight_bytes, single_buf) <= budget

    divisors = [d for d in range(1, b + 1) if b % d == 0]
    candidates = [d for d in divisors if fits(d) and (b // d) >= min(2, b)]
    if not candidates:
        candidates = [d for d in divisors if fits(d)]
    tb = max(candidates) if candidates else 1
    # TODO(synk): if even tb == 1 overflows the budget (very large images), add
    # an H grid axis with a halo block instead of a whole image per step.
    grid = (b // tb,)

    n_tok = b * h * w
    cost = pl.CostEstimate(
        flops=int(4 * n_tok * c * hid + 4 * n_tok * c * point_no),
        transcendentals=int(n_tok * hid),
        bytes_accessed=int(2 * n_tok * c * x.dtype.itemsize + weight_bytes),
    )

    def wspec(shape):
        # Constant-index weight operands: single-buffer when supported (their
        # block index never changes; double-buffering only wastes VMEM).
        if single_buf:
            return pl.BlockSpec(shape, lambda i: (0,) * len(shape),
                                pipeline_mode=pl.Buffered(1))
        return pl.BlockSpec(shape, lambda i: (0,) * len(shape))

    kernel = functools.partial(ray_block_kernel, point_no=point_no,
                               point_scale=point_scale,
                               use_xlu_roll=use_xlu_roll)

    return pl.pallas_call(
        kernel,
        out_shape=jax.ShapeDtypeStruct((b, h, w, c), x.dtype),
        grid=grid,
        in_specs=[
            pl.BlockSpec((tb, h, w, c), lambda i: (i, 0, 0, 0)),
            wspec((p, c)),
            wspec((c, hid)),
            wspec((1, hid)),
            wspec((hid, c)),
            wspec((1, c)),
        ],
        out_specs=pl.BlockSpec((tb, h, w, c), lambda i: (i, 0, 0, 0)),
        compiler_params=pltpu.CompilerParams(
            dimension_semantics=("parallel",),
            vmem_limit_bytes=vmem_limit),
        cost_estimate=cost,
    )(x, rw, w1, b1, w2, b2)


# ----------------------------------------------------------------------------
# Parameters and module glue (NHWC inside; single transpose at the boundary).
# ----------------------------------------------------------------------------
def init_ray_block_params(key, dim, point_no, hidden_mult=2):
    p = 2 * point_no
    hid = hidden_mult * dim
    k0, k1 = jax.random.split(key, 2)
    return {
        "ray_w": jnp.full((p, dim), 1.0 / p, dtype=jnp.float32),
        "w1": (0.02 * jax.random.normal(k0, (dim, hid))).astype(jnp.bfloat16),
        "b1": jnp.zeros((1, hid), dtype=jnp.float32),
        "w2": (0.02 * jax.random.normal(k1, (hid, dim))).astype(jnp.bfloat16),
        "b2": jnp.zeros((1, dim), dtype=jnp.float32),
    }


class RayEncoder:
    """JAX/Pallas port of RayEncoder: `depth` sequential RayBlocks."""

    def __init__(self, key, dim=512, point_no=8, point_scale=1, patch_size=4,
                 depth=1):
        del patch_size  # TODO(synk): unused in this approximation of RayBlock.
        self.point_no = point_no
        self.point_scale = point_scale
        keys = jax.random.split(key, depth)
        self.blocks = [init_ray_block_params(k, dim, point_no) for k in keys]
        # Warm the one-shot feature probes / hardware queries outside any jit.
        _supports_xlu_roll()
        _supports_single_buffering()
        _vmem_capacity_bytes()

    def __call__(self, x_nchw):
        # Single NCHW -> NHWC transpose at the boundary (channels on lanes),
        # shared by all blocks; transpose back once at the end.
        x = jnp.transpose(x_nchw, (0, 2, 3, 1))
        for params in self.blocks:
            x = _ray_block_pallas(x, params, point_no=self.point_no,
                                  point_scale=self.point_scale)
        return jnp.transpose(x, (0, 3, 1, 2))


if __name__ == "__main__":
    key = jax.random.PRNGKey(0)
    k_param, k_input = jax.random.split(key)

    # Small shapes: batch=2, dim(channels)=32, spatial=16x16.
    dim, point_no, point_scale, patch_size, depth = 32, 8, 1, 4, 1
    B, H, W = 2, 16, 16

    encoder = RayEncoder(k_param, dim=dim, point_no=point_no,
                         point_scale=point_scale, patch_size=patch_size,
                         depth=depth)

    x = jax.random.normal(k_input, (B, dim, H, W), dtype=jnp.float32)  # NCHW

    fwd = jax.jit(encoder.__call__)
    out = fwd(x)
    jax.block_until_ready(out)
    assert out.shape == (B, dim, H, W), out.shape
    assert jnp.all(jnp.isfinite(out))
    print("KERNEL_OK")
</pallas_src>

<mosaic_0001>
module attributes {stable_mosaic.version = 11 : i64} {
  func.func @kern(%arg0: memref<2x16x16x32xf32, #tpu.memory_space<vmem>>, %arg1: memref<2x16x16x32xf32, #tpu.memory_space<vmem>>) attributes {dimension_semantics = [], scalar_prefetch = 0 : i64, scratch_operands = 0 : i64, tpu.core_type = #tpu.core_type<tc>} {
    %c0 = arith.constant 0 : index
    %c0_0 = arith.constant 0 : index
    %c0_1 = arith.constant 0 : index
    %c0_2 = arith.constant 0 : index
    %0 = vector.load %arg0[%c0, %c0_0, %c0_1, %c0_2] : memref<2x16x16x32xf32, #tpu.memory_space<vmem>>, vector<2x16x16x32xf32>
    %c1_i32 = arith.constant 1 : i32
    %1 = tpu.dynamic_rotate %0 by %c1_i32 dim 2 : vector<2x16x16x32xf32>, i32 -> vector<2x16x16x32xf32>
    %c0_3 = arith.constant 0 : index
    %c0_4 = arith.constant 0 : index
    %c0_5 = arith.constant 0 : index
    %c0_6 = arith.constant 0 : index
    %2 = vector.load %arg1[%c0_3, %c0_4, %c0_5, %c0_6] : memref<2x16x16x32xf32, #tpu.memory_space<vmem>>, vector<2x16x16x32xf32>
    tpu.vector_store %arg1[%c0_3, %c0_4, %c0_5, %c0_6], %1 {strides = array<i32>} : memref<2x16x16x32xf32, #tpu.memory_space<vmem>>, vector<2x16x16x32xf32>,
    return
  }
}

module attributes {stable_mosaic.version = 11 : i64} {
  func.func @kern(%arg0: i32, %arg1: memref<1x8x128xf32, #tpu.memory_space<vmem>>, %arg2: memref<8x128xf32, #tpu.memory_space<vmem>>, %arg3: memref<1x8x128xf32, #tpu.memory_space<vmem>>) attributes {dimension_semantics = [#tpu.dimension_semantics<arbitrary>], iteration_bounds = array<i64: 2>, scalar_prefetch = 0 : i64, scratch_operands = 0 : i64, tpu.core_type = #tpu.core_type<tc>, window_params = [{transform_indices = @transform_0, window_bounds = array<i64: 1, 8, 128>}, {pipeline_mode = #tpu.pipeline_mode<synchronous>, transform_indices = @transform_1, window_bounds = array<i64: 8, 128>}, {transform_indices = @transform_2, window_bounds = array<i64: 1, 8, 128>}]} {
    %c0 = arith.constant 0 : index
    %c0_0 = arith.constant 0 : index
    %c0_1 = arith.constant 0 : index
    %0 = vector.load %arg1[%c0, %c0_0, %c0_1] : memref<1x8x128xf32, #tpu.memory_space<vmem>>, vector<1x8x128xf32>
    %c0_2 = arith.constant 0 : index
    %c0_3 = arith.constant 0 : index
    %1 = vector.load %arg2[%c0_2, %c0_3] : memref<8x128xf32, #tpu.memory_space<vmem>>, vector<8x128xf32>
    %2 = vector.shape_cast %1 : vector<8x128xf32> to vector<1x8x128xf32>
    %3 = arith.addf %0, %2 : vector<1x8x128xf32>
    %c0_4 = arith.constant 0 : index
    %c0_5 = arith.constant 0 : index
    %c0_6 = arith.constant 0 : index
    %4 = vector.load %arg3[%c0_4, %c0_5, %c0_6] : memref<1x8x128xf32, #tpu.memory_space<vmem>>, vector<1x8x128xf32>
    tpu.vector_store %arg3[%c0_4, %c0_5, %c0_6], %3 {strides = array<i32>} : memref<1x8x128xf32, #tpu.memory_space<vmem>>, vector<1x8x128xf32>,
    return
  }
  func.func @transform_0(%arg0: i32) -> (i32, i32, i32) {
    %c0_i32 = arith.constant 0 : i32
    %c0_i32_0 = arith.constant 0 : i32
    %c0_i32_1 = arith.constant 0 : i32
    return %arg0, %c0_i32, %c0_i32_0 : i32, i32, i32
  }
  func.func @transform_1(%arg0: i32) -> (i32, i32) {
    %c0_i32 = arith.constant 0 : i32
    %c0_i32_0 = arith.constant 0 : i32
    %c0_i32_1 = arith.constant 0 : i32
    return %c0_i32, %c0_i32_0 : i32, i32
  }
  func.func @transform_2(%arg0: i32) -> (i32, i32, i32) {
    %c0_i32 = arith.constant 0 : i32
    %c0_i32_0 = arith.constant 0 : i32
    %c0_i32_1 = arith.constant 0 : i32
    return %arg0, %c0_i32, %c0_i32_0 : i32, i32, i32
  }
}

module attributes {stable_mosaic.version = 11 : i64} {
  func.func @ray_block_kernel(%arg0: i32, %arg1: memref<1x16x16x32xf32, #tpu.memory_space<vmem>>, %arg2: memref<16x32xf32, #tpu.memory_space<vmem>>, %arg3: memref<32x64xbf16, #tpu.memory_space<vmem>>, %arg4: memref<1x64xf32, #tpu.memory_space<vmem>>, %arg5: memref<64x32xbf16, #tpu.memory_space<vmem>>, %arg6: memref<1x32xf32, #tpu.memory_space<vmem>>, %arg7: memref<1x16x16x32xf32, #tpu.memory_space<vmem>>) attributes {dimension_semantics = [#tpu.dimension_semantics<parallel>], iteration_bounds = array<i64: 2>, scalar_prefetch = 0 : i64, scratch_operands = 0 : i64, tpu.core_type = #tpu.core_type<tc>, window_params = [{transform_indices = @transform_0, window_bounds = array<i64: 1, 16, 16, 32>}, {pipeline_mode = #tpu.pipeline_mode<synchronous>, transform_indices = @transform_1, window_bounds = array<i64: 16, 32>}, {pipeline_mode = #tpu.pipeline_mode<synchronous>, transform_indices = @transform_2, window_bounds = array<i64: 32, 64>}, {pipeline_mode = #tpu.pipeline_mode<synchronous>, transform_indices = @transform_3, window_bounds = array<i64: 1, 64>}, {pipeline_mode = #tpu.pipeline_mode<synchronous>, transform_indices = @transform_4, window_bounds = array<i64: 64, 32>}, {pipeline_mode = #tpu.pipeline_mode<synchronous>, transform_indices = @transform_5, window_bounds = array<i64: 1, 32>}, {transform_indices = @transform_6, window_bounds = array<i64: 1, 16, 16, 32>}]} {
    %c0 = arith.constant 0 : index
    %c0_0 = arith.constant 0 : index
    %c0_1 = arith.constant 0 : index
    %c0_2 = arith.constant 0 : index
    %0 = vector.load %arg1[%c0, %c0_0, %c0_1, %c0_2] : memref<1x16x16x32xf32, #tpu.memory_space<vmem>>, vector<1x16x16x32xf32>
    %c0_3 = arith.constant 0 : index
    %c0_4 = arith.constant 0 : index
    %1 = vector.load %arg2[%c0_3, %c0_4] : memref<16x32xf32, #tpu.memory_space<vmem>>, vector<16x32xf32>
    %2 = vector.extract_strided_slice %1 {offsets = [0, 0], sizes = [1, 32], strides = [1, 1]} : vector<16x32xf32> to vector<1x32xf32>
    %3 = vector.shape_cast %2 : vector<1x32xf32> to vector<32xf32>
    %4 = vector.shape_cast %3 : vector<32xf32> to vector<1x1x1x32xf32>
    %5 = vector.extract_strided_slice %1 {offsets = [1, 0], sizes = [1, 32], strides = [1, 1]} : vector<16x32xf32> to vector<1x32xf32>
    %6 = vector.shape_cast %5 : vector<1x32xf32> to vector<32xf32>
    %7 = vector.shape_cast %6 : vector<32xf32> to vector<1x1x1x32xf32>
    %8 = vector.extract_strided_slice %1 {offsets = [2, 0], sizes = [1, 32], strides = [1, 1]} : vector<16x32xf32> to vector<1x32xf32>
    %9 = vector.shape_cast %8 : vector<1x32xf32> to vector<32xf32>
    %10 = vector.shape_cast %9 : vector<32xf32> to vector<1x1x1x32xf32>
    %11 = vector.extract_strided_slice %1 {offsets = [3, 0], sizes = [1, 32], strides = [1, 1]} : vector<16x32xf32> to vector<1x32xf32>
    %12 = vector.shape_cast %11 : vector<1x32xf32> to vector<32xf32>
    %13 = vector.shape_cast %12 : vector<32xf32> to vector<1x1x1x32xf32>
    %14 = vector.extract_strided_slice %1 {offsets = [4, 0], sizes = [1, 32], strides = [1, 1]} : vector<16x32xf32> to vector<1x32xf32>
    %15 = vector.shape_cast %14 : vector<1x32xf32> to vector<32xf32>
    %16 = vector.shape_cast %15 : vector<32xf32> to vector<1x1x1x32xf32>
    %17 = vector.extract_strided_slice %1 {offsets = [5, 0], sizes = [1, 32], strides = [1, 1]} : vector<16x32xf32> to vector<1x32xf32>
    %18 = vector.shape_cast %17 : vector<1x32xf32> to vector<32xf32>
    %19 = vector.shape_cast %18 : vector<32xf32> to vector<1x1x1x32xf32>
    %20 = vector.extract_strided_slice %1 {offsets = [6, 0], sizes = [1, 32], strides = [1, 1]} : vector<16x32xf32> to vector<1x32xf32>
    %21 = vector.shape_cast %20 : vector<1x32xf32> to vector<32xf32>
    %22 = vector.shape_cast %21 : vector<32xf32> to vector<1x1x1x32xf32>
    %23 = vector.extract_strided_slice %1 {offsets = [7, 0], sizes = [1, 32], strides = [1, 1]} : vector<16x32xf32> to vector<1x32xf32>
    %24 = vector.shape_cast %23 : vector<1x32xf32> to vector<32xf32>
    %25 = vector.shape_cast %24 : vector<32xf32> to vector<1x1x1x32xf32>
    %26 = vector.extract_strided_slice %1 {offsets = [8, 0], sizes = [1, 32], strides = [1, 1]} : vector<16x32xf32> to vector<1x32xf32>
    %27 = vector.shape_cast %26 : vector<1x32xf32> to vector<32xf32>
    %28 = vector.shape_cast %27 : vector<32xf32> to vector<1x1x1x32xf32>
    %29 = vector.extract_strided_slice %1 {offsets = [9, 0], sizes = [1, 32], strides = [1, 1]} : vector<16x32xf32> to vector<1x32xf32>
    %30 = vector.shape_cast %29 : vector<1x32xf32> to vector<32xf32>
    %31 = vector.shape_cast %30 : vector<32xf32> to vector<1x1x1x32xf32>
    %32 = vector.extract_strided_slice %1 {offsets = [10, 0], sizes = [1, 32], strides = [1, 1]} : vector<16x32xf32> to vector<1x32xf32>
    %33 = vector.shape_cast %32 : vector<1x32xf32> to vector<32xf32>
    %34 = vector.shape_cast %33 : vector<32xf32> to vector<1x1x1x32xf32>
    %35 = vector.extract_strided_slice %1 {offsets = [11, 0], sizes = [1, 32], strides = [1, 1]} : vector<16x32xf32> to vector<1x32xf32>
    %36 = vector.shape_cast %35 : vector<1x32xf32> to vector<32xf32>
    %37 = vector.shape_cast %36 : vector<32xf32> to vector<1x1x1x32xf32>
    %38 = vector.extract_strided_slice %1 {offsets = [12, 0], sizes = [1, 32], strides = [1, 1]} : vector<16x32xf32> to vector<1x32xf32>
    %39 = vector.shape_cast %38 : vector<1x32xf32> to vector<32xf32>
    %40 = vector.shape_cast %39 : vector<32xf32> to vector<1x1x1x32xf32>
    %41 = vector.extract_strided_slice %1 {offsets = [13, 0], sizes = [1, 32], strides = [1, 1]} : vector<16x32xf32> to vector<1x32xf32>
    %42 = vector.shape_cast %41 : vector<1x32xf32> to vector<32xf32>
    %43 = vector.shape_cast %42 : vector<32xf32> to vector<1x1x1x32xf32>
    %44 = vector.extract_strided_slice %1 {offsets = [14, 0], sizes = [1, 32], strides = [1, 1]} : vector<16x32xf32> to vector<1x32xf32>
    %45 = vector.shape_cast %44 : vector<1x32xf32> to vector<32xf32>
    %46 = vector.shape_cast %45 : vector<32xf32> to vector<1x1x1x32xf32>
    %47 = vector.extract_strided_slice %1 {offsets = [15, 0], sizes = [1, 32], strides = [1, 1]} : vector<16x32xf32> to vector<1x32xf32>
    %48 = vector.shape_cast %47 : vector<1x32xf32> to vector<32xf32>
    %49 = vector.shape_cast %48 : vector<32xf32> to vector<1x1x1x32xf32>
    %50 = vector.extract_strided_slice %0 {offsets = [0, 15, 0, 0], sizes = [1, 1, 16, 32], strides = [1, 1, 1, 1]} : vector<1x16x16x32xf32> to vector<1x1x16x32xf32>
    %51 = vector.extract_strided_slice %0 {offsets = [0, 0, 0, 0], sizes = [1, 15, 16, 32], strides = [1, 1, 1, 1]} : vector<1x16x16x32xf32> to vector<1x15x16x32xf32>
    %52 = tpu.concatenate %50, %51 in 1 : vector<1x1x16x32xf32>, vector<1x15x16x32xf32> -> vector<1x16x16x32xf32>
    %53 = vector.extract_strided_slice %0 {offsets = [0, 0, 15, 0], sizes = [1, 16, 1, 32], strides = [1, 1, 1, 1]} : vector<1x16x16x32xf32> to vector<1x16x1x32xf32>
    %54 = vector.extract_strided_slice %0 {offsets = [0, 0, 0, 0], sizes = [1, 16, 15, 32], strides = [1, 1, 1, 1]} : vector<1x16x16x32xf32> to vector<1x16x15x32xf32>
    %55 = tpu.concatenate %53, %54 in 2 : vector<1x16x1x32xf32>, vector<1x16x15x32xf32> -> vector<1x16x16x32xf32>
    %56 = vector.broadcast %4 : vector<1x1x1x32xf32> to vector<1x16x16x32xf32>
    %57 = arith.mulf %52, %56 : vector<1x16x16x32xf32>
    %58 = arith.addf %0, %57 : vector<1x16x16x32xf32>
    %59 = vector.broadcast %28 : vector<1x1x1x32xf32> to vector<1x16x16x32xf32>
    %60 = arith.mulf %55, %59 : vector<1x16x16x32xf32>
    %61 = arith.addf %58, %60 : vector<1x16x16x32xf32>
    %62 = vector.extract_strided_slice %52 {offsets = [0, 15, 0, 0], sizes = [1, 1, 16, 32], strides = [1, 1, 1, 1]} : vector<1x16x16x32xf32> to vector<1x1x16x32xf32>
    %63 = vector.extract_strided_slice %52 {offsets = [0, 0, 0, 0], sizes = [1, 15, 16, 32], strides = [1, 1, 1, 1]} : vector<1x16x16x32xf32> to vector<1x15x16x32xf32>
    %64 = tpu.concatenate %62, %63 in 1 : vector<1x1x16x32xf32>, vector<1x15x16x32xf32> -> vector<1x16x16x32xf32>
    %65 = vector.extract_strided_slice %55 {offsets = [0, 0, 15, 0], sizes = [1, 16, 1, 32], strides = [1, 1, 1, 1]} : vector<1x16x16x32xf32> to vector<1x16x1x32xf32>
    %66 = vector.extract_strided_slice %55 {offsets = [0, 0, 0, 0], sizes = [1, 16, 15, 32], strides = [1, 1, 1, 1]} : vector<1x16x16x32xf32> to vector<1x16x15x32xf32>
    %67 = tpu.concatenate %65, %66 in 2 : vector<1x16x1x32xf32>, vector<1x16x15x32xf32> -> vector<1x16x16x32xf32>
    %68 = vector.broadcast %7 : vector<1x1x1x32xf32> to vector<1x16x16x32xf32>
    %69 = arith.mulf %64, %68 : vector<1x16x16x32xf32>
    %70 = arith.addf %61, %69 : vector<1x16x16x32xf32>
    %71 = vector.broadcast %31 : vector<1x1x1x32xf32> to vector<1x16x16x32xf32>
    %72 = arith.mulf %67, %71 : vector<1x16x16x32xf32>
    %73 = arith.addf %70, %72 : vector<1x16x16x32xf32>
    %74 = vector.extract_strided_slice %64 {offsets = [0, 15, 0, 0], sizes = [1, 1, 16, 32], strides = [1, 1, 1, 1]} : vector<1x16x16x32xf32> to vector<1x1x16x32xf32>
    %75 = vector.extract_strided_slice %64 {offsets = [0, 0, 0, 0], sizes = [1, 15, 16, 32], strides = [1, 1, 1, 1]} : vector<1x16x16x32xf32> to vector<1x15x16x32xf32>
    %76 = tpu.concatenate %74, %75 in 1 : vector<1x1x16x32xf32>, vector<1x15x16x32xf32> -> vector<1x16x16x32xf32>
    %77 = vector.extract_strided_slice %67 {offsets = [0, 0, 15, 0], sizes = [1, 16, 1, 32], strides = [1, 1, 1, 1]} : vector<1x16x16x32xf32> to vector<1x16x1x32xf32>
    %78 = vector.extract_strided_slice %67 {offsets = [0, 0, 0, 0], sizes = [1, 16, 15, 32], strides = [1, 1, 1, 1]} : vector<1x16x16x32xf32> to vector<1x16x15x32xf32>
    %79 = tpu.concatenate %77, %78 in 2 : vector<1x16x1x32xf32>, vector<1x16x15x32xf32> -> vector<1x16x16x32xf32>
    %80 = vector.broadcast %10 : vector<1x1x1x32xf32> to vector<1x16x16x32xf32>
    %81 = arith.mulf %76, %80 : vector<1x16x16x32xf32>
    %82 = arith.addf %73, %81 : vector<1x16x16x32xf32>
    %83 = vector.broadcast %34 : vector<1x1x1x32xf32> to vector<1x16x16x32xf32>
    %84 = arith.mulf %79, %83 : vector<1x16x16x32xf32>
    %85 = arith.addf %82, %84 : vector<1x16x16x32xf32>
    %86 = vector.extract_strided_slice %76 {offsets = [0, 15, 0, 0], sizes = [1, 1, 16, 32], strides = [1, 1, 1, 1]} : vector<1x16x16x32xf32> to vector<1x1x16x32xf32>
    %87 = vector.extract_strided_slice %76 {offsets = [0, 0, 0, 0], sizes = [1, 15, 16, 32], strides = [1, 1, 1, 1]} : vector<1x16x16x32xf32> to vector<1x15x16x32xf32>
    %88 = tpu.concatenate %86, %87 in 1 : vector<1x1x16x32xf32>, vector<1x15x16x32xf32> -> vector<1x16x16x32xf32>
    %89 = vector.extract_strided_slice %79 {offsets = [0, 0, 15, 0], sizes = [1, 16, 1, 32], strides = [1, 1, 1, 1]} : vector<1x16x16x32xf32> to vector<1x16x1x32xf32>
    %90 = vector.extract_strided_slice %79 {offsets = [0, 0, 0, 0], sizes = [1, 16, 15, 32], strides = [1, 1, 1, 1]} : vector<1x16x16x32xf32> to vector<1x16x15x32xf32>
    %91 = tpu.concatenate %89, %90 in 2 : vector<1x16x1x32xf32>, vector<1x16x15x32xf32> -> vector<1x16x16x32xf32>
    %92 = vector.broadcast %13 : vector<1x1x1x32xf32> to vector<1x16x16x32xf32>
    %93 = arith.mulf %88, %92 : vector<1x16x16x32xf32>
    %94 = arith.addf %85, %93 : vector<1x16x16x32xf32>
    %95 = vector.broadcast %37 : vector<1x1x1x32xf32> to vector<1x16x16x32xf32>
    %96 = arith.mulf %91, %95 : vector<1x16x16x32xf32>
    %97 = arith.addf %94, %96 : vector<1x16x16x32xf32>
    %98 = vector.extract_strided_slice %88 {offsets = [0, 15, 0, 0], sizes = [1, 1, 16, 32], strides = [1, 1, 1, 1]} : vector<1x16x16x32xf32> to vector<1x1x16x32xf32>
    %99 = vector.extract_strided_slice %88 {offsets = [0, 0, 0, 0], sizes = [1, 15, 16, 32], strides = [1, 1, 1, 1]} : vector<1x16x16x32xf32> to vector<1x15x16x32xf32>
    %100 = tpu.concatenate %98, %99 in 1 : vector<1x1x16x32xf32>, vector<1x15x16x32xf32> -> vector<1x16x16x32xf32>
    %101 = vector.extract_strided_slice %91 {offsets = [0, 0, 15, 0], sizes = [1, 16, 1, 32], strides = [1, 1, 1, 1]} : vector<1x16x16x32xf32> to vector<1x16x1x32xf32>
    %102 = vector.extract_strided_slice %91 {offsets = [0, 0, 0, 0], sizes = [1, 16, 15, 32], strides = [1, 1, 1, 1]} : vector<1x16x16x32xf32> to vector<1x16x15x32xf32>
    %103 = tpu.concatenate %101, %102 in 2 : vector<1x16x1x32xf32>, vector<1x16x15x32xf32> -> vector<1x16x16x32xf32>
    %104 = vector.broadcast %16 : vector<1x1x1x32xf32> to vector<1x16x16x32xf32>
    %105 = arith.mulf %100, %104 : vector<1x16x16x32xf32>
    %106 = arith.addf %97, %105 : vector<1x16x16x32xf32>
    %107 = vector.broadcast %40 : vector<1x1x1x32xf32> to vector<1x16x16x32xf32>
    %108 = arith.mulf %103, %107 : vector<1x16x16x32xf32>
    %109 = arith.addf %106, %108 : vector<1x16x16x32xf32>
    %110 = vector.extract_strided_slice %100 {offsets = [0, 15, 0, 0], sizes = [1, 1, 16, 32], strides = [1, 1, 1, 1]} : vector<1x16x16x32xf32> to vector<1x1x16x32xf32>
    %111 = vector.extract_strided_slice %100 {offsets = [0, 0, 0, 0], sizes = [1, 15, 16, 32], strides = [1, 1, 1, 1]} : vector<1x16x16x32xf32> to vector<1x15x16x32xf32>
    %112 = tpu.concatenate %110, %111 in 1 : vector<1x1x16x32xf32>, vector<1x15x16x32xf32> -> vector<1x16x16x32xf32>
    %113 = vector.extract_strided_slice %103 {offsets = [0, 0, 15, 0], sizes = [1, 16, 1, 32], strides = [1, 1, 1, 1]} : vector<1x16x16x32xf32> to vector<1x16x1x32xf32>
    %114 = vector.extract_strided_slice %103 {offsets = [0, 0, 0, 0], sizes = [1, 16, 15, 32], strides = [1, 1, 1, 1]} : vector<1x16x16x32xf32> to vector<1x16x15x32xf32>
    %115 = tpu.concatenate %113, %114 in 2 : vector<1x16x1x32xf32>, vector<1x16x15x32xf32> -> vector<1x16x16x32xf32>
    %116 = vector.broadcast %19 : vector<1x1x1x32xf32> to vector<1x16x16x32xf32>
    %117 = arith.mulf %112, %116 : vector<1x16x16x32xf32>
    %118 = arith.addf %109, %117 : vector<1x16x16x32xf32>
    %119 = vector.broadcast %43 : vector<1x1x1x32xf32> to vector<1x16x16x32xf32>
    %120 = arith.mulf %115, %119 : vector<1x16x16x32xf32>
    %121 = arith.addf %118, %120 : vector<1x16x16x32xf32>
    %122 = vector.extract_strided_slice %112 {offsets = [0, 15, 0, 0], sizes = [1, 1, 16, 32], strides = [1, 1, 1, 1]} : vector<1x16x16x32xf32> to vector<1x1x16x32xf32>
    %123 = vector.extract_strided_slice %112 {offsets = [0, 0, 0, 0], sizes = [1, 15, 16, 32], strides = [1, 1, 1, 1]} : vector<1x16x16x32xf32> to vector<1x15x16x32xf32>
    %124 = tpu.concatenate %122, %123 in 1 : vector<1x1x16x32xf32>, vector<1x15x16x32xf32> -> vector<1x16x16x32xf32>
    %125 = vector.extract_strided_slice %115 {offsets = [0, 0, 15, 0], sizes = [1, 16, 1, 32], strides = [1, 1, 1, 1]} : vector<1x16x16x32xf32> to vector<1x16x1x32xf32>
    %126 = vector.extract_strided_slice %115 {offsets = [0, 0, 0, 0], sizes = [1, 16, 15, 32], strides = [1, 1, 1, 1]} : vector<1x16x16x32xf32> to vector<1x16x15x32xf32>
    %127 = tpu.concatenate %125, %126 in 2 : vector<1x16x1x32xf32>, vector<1x16x15x32xf32> -> vector<1x16x16x32xf32>
    %128 = vector.broadcast %22 : vector<1x1x1x32xf32> to vector<1x16x16x32xf32>
    %129 = arith.mulf %124, %128 : vector<1x16x16x32xf32>
    %130 = arith.addf %121, %129 : vector<1x16x16x32xf32>
    %131 = vector.broadcast %46 : vector<1x1x1x32xf32> to vector<1x16x16x32xf32>
    %132 = arith.mulf %127, %131 : vector<1x16x16x32xf32>
    %133 = arith.addf %130, %132 : vector<1x16x16x32xf32>
    %134 = vector.extract_strided_slice %124 {offsets = [0, 15, 0, 0], sizes = [1, 1, 16, 32], strides = [1, 1, 1, 1]} : vector<1x16x16x32xf32> to vector<1x1x16x32xf32>
    %135 = vector.extract_strided_slice %124 {offsets = [0, 0, 0, 0], sizes = [1, 15, 16, 32], strides = [1, 1, 1, 1]} : vector<1x16x16x32xf32> to vector<1x15x16x32xf32>
    %136 = tpu.concatenate %134, %135 in 1 : vector<1x1x16x32xf32>, vector<1x15x16x32xf32> -> vector<1x16x16x32xf32>
    %137 = vector.extract_strided_slice %127 {offsets = [0, 0, 15, 0], sizes = [1, 16, 1, 32], strides = [1, 1, 1, 1]} : vector<1x16x16x32xf32> to vector<1x16x1x32xf32>
    %138 = vector.extract_strided_slice %127 {offsets = [0, 0, 0, 0], sizes = [1, 16, 15, 32], strides = [1, 1, 1, 1]} : vector<1x16x16x32xf32> to vector<1x16x15x32xf32>
    %139 = tpu.concatenate %137, %138 in 2 : vector<1x16x1x32xf32>, vector<1x16x15x32xf32> -> vector<1x16x16x32xf32>
    %140 = vector.broadcast %25 : vector<1x1x1x32xf32> to vector<1x16x16x32xf32>
    %141 = arith.mulf %136, %140 : vector<1x16x16x32xf32>
    %142 = arith.addf %133, %141 : vector<1x16x16x32xf32>
    %143 = vector.broadcast %49 : vector<1x1x1x32xf32> to vector<1x16x16x32xf32>
    %144 = arith.mulf %139, %143 : vector<1x16x16x32xf32>
    %145 = arith.addf %142, %144 : vector<1x16x16x32xf32>
    %146 = vector.shape_cast %145 : vector<1x16x16x32xf32> to vector<256x32xf32>
    %147 = arith.truncf %146 : vector<256x32xf32> to vector<256x32xbf16>
    %c0_5 = arith.constant 0 : index
    %c0_6 = arith.constant 0 : index
    %148 = vector.load %arg3[%c0_5, %c0_6] : memref<32x64xbf16, #tpu.memory_space<vmem>>, vector<32x64xbf16>
    %cst = arith.constant dense<0.000000e+00> : vector<256x64xf32>
    %149 = tpu.matmul %147, %148, %cst {dimension_numbers = #tpu.dot_dimension_numbers<[1], [0], [0], [1], [0, 0, 1, 1], [], []>} : vector<256x32xbf16>, vector<32x64xbf16>, vector<256x64xf32> -> vector<256x64xf32>
    %c0_7 = arith.constant 0 : index
    %c0_8 = arith.constant 0 : index
    %150 = vector.load %arg4[%c0_7, %c0_8] : memref<1x64xf32, #tpu.memory_space<vmem>>, vector<1x64xf32>
    %151 = vector.broadcast %150 : vector<1x64xf32> to vector<256x64xf32>
    %152 = arith.addf %149, %151 : vector<256x64xf32>
    %153 = arith.mulf %152, %152 : vector<256x64xf32>
    %154 = arith.mulf %152, %153 : vector<256x64xf32>
    %cst_9 = arith.constant 4.471500e-02 : f32
    %155 = vector.broadcast %cst_9 : f32 to vector<256x64xf32>
    %156 = arith.mulf %155, %154 : vector<256x64xf32>
    %157 = arith.addf %152, %156 : vector<256x64xf32>
    %cst_10 = arith.constant 0.797884583 : f32
    %158 = vector.broadcast %cst_10 : f32 to vector<256x64xf32>
    %159 = arith.mulf %158, %157 : vector<256x64xf32>
    %160 = math.tanh %159 : vector<256x64xf32>
    %cst_11 = arith.constant 1.000000e+00 : f32
    %161 = vector.broadcast %cst_11 : f32 to vector<256x64xf32>
    %162 = arith.addf %161, %160 : vector<256x64xf32>
    %cst_12 = arith.constant 5.000000e-01 : f32
    %163 = vector.broadcast %cst_12 : f32 to vector<256x64xf32>
    %164 = arith.mulf %163, %162 : vector<256x64xf32>
    %165 = arith.mulf %152, %164 : vector<256x64xf32>
    %166 = arith.truncf %165 : vector<256x64xf32> to vector<256x64xbf16>
    %c0_13 = arith.constant 0 : index
    %c0_14 = arith.constant 0 : index
    %167 = vector.load %arg5[%c0_13, %c0_14] : memref<64x32xbf16, #tpu.memory_space<vmem>>, vector<64x32xbf16>
    %cst_15 = arith.constant dense<0.000000e+00> : vector<256x32xf32>
    %168 = tpu.matmul %166, %167, %cst_15 {dimension_numbers = #tpu.dot_dimension_numbers<[1], [0], [0], [1], [0, 0, 1, 1], [], []>} : vector<256x64xbf16>, vector<64x32xbf16>, vector<256x32xf32> -> vector<256x32xf32>
    %c0_16 = arith.constant 0 : index
    %c0_17 = arith.constant 0 : index
    %169 = vector.load %arg6[%c0_16, %c0_17] : memref<1x32xf32, #tpu.memory_space<vmem>>, vector<1x32xf32>
    %170 = vector.broadcast %169 : vector<1x32xf32> to vector<256x32xf32>
    %171 = arith.addf %168, %170 : vector<256x32xf32>
    %172 = vector.shape_cast %171 : vector<256x32xf32> to vector<1x16x16x32xf32>
    %173 = arith.addf %145, %172 : vector<1x16x16x32xf32>
    %c0_18 = arith.constant 0 : index
    %c0_19 = arith.constant 0 : index
    %c0_20 = arith.constant 0 : index
    %c0_21 = arith.constant 0 : index
    %174 = vector.load %arg7[%c0_18, %c0_19, %c0_20, %c0_21] : memref<1x16x16x32xf32, #tpu.memory_space<vmem>>, vector<1x16x16x32xf32>
    tpu.vector_store %arg7[%c0_18, %c0_19, %c0_20, %c0_21], %173 {strides = array<i32>} : memref<1x16x16x32xf32, #tpu.memory_space<vmem>>, vector<1x16x16x32xf32>,
    return
  }
  func.func @transform_0(%arg0: i32) -> (i32, i32, i32, i32) {
    %c0_i32 = arith.constant 0 : i32
    %c0_i32_0 = arith.constant 0 : i32
    %c0_i32_1 = arith.constant 0 : i32
    %c0_i32_2 = arith.constant 0 : i32
    return %arg0, %c0_i32, %c0_i32_0, %c0_i32_1 : i32, i32, i32, i32
  }
  func.func @transform_1(%arg0: i32) -> (i32, i32) {
    %c0_i32 = arith.constant 0 : i32
    %c0_i32_0 = arith.constant 0 : i32
    %c0_i32_1 = arith.constant 0 : i32
    return %c0_i32, %c0_i32_0 : i32, i32
  }
  func.func @transform_2(%arg0: i32) -> (i32, i32) {
    %c0_i32 = arith.constant 0 : i32
    %c0_i32_0 = arith.constant 0 : i32
    %c0_i32_1 = arith.constant 0 : i32
    return %c0_i32, %c0_i32_0 : i32, i32
  }
  func.func @transform_3(%arg0: i32) -> (i32, i32) {
    %c0_i32 = arith.constant 0 : i32
    %c0_i32_0 = arith.constant 0 : i32
    %c0_i32_1 = arith.constant 0 : i32
    return %c0_i32, %c0_i32_0 : i32, i32
  }
  func.func @transform_4(%arg0: i32) -> (i32, i32) {
    %c0_i32 = arith.constant 0 : i32
    %c0_i32_0 = arith.constant 0 : i32
    %c0_i32_1 = arith.constant 0 : i32
    return %c0_i32, %c0_i32_0 : i32, i32
  }
  func.func @transform_5(%arg0: i32) -> (i32, i32) {
    %c0_i32 = arith.constant 0 : i32
    %c0_i32_0 = arith.constant 0 : i32
    %c0_i32_1 = arith.constant 0 : i32
    return %c0_i32, %c0_i32_0 : i32, i32
  }
  func.func @transform_6(%arg0: i32) -> (i32, i32, i32, i32) {
    %c0_i32 = arith.constant 0 : i32
    %c0_i32_0 = arith.constant 0 : i32
    %c0_i32_1 = arith.constant 0 : i32
    %c0_i32_2 = arith.constant 0 : i32
    return %arg0, %c0_i32, %c0_i32_0, %c0_i32_1 : i32, i32, i32, i32
  }
}

</mosaic_0001>

<bundles_post_ra>
// kernel: tpu_custom_call.1
= control target key start
LH: loop header
LB: loop body
LE: loop exit
PB: predicated region body
PF: predicated region fallthrough
CT: control target
= control target key end

     0   :  { %6 = vsyncpa [#allocation3], 0  ;;  %s591_s0 = inlined_call_operand.hbm [shape: f32[2,16,16,32], index: 0, kind: input, shape index: {}]   ;;  %s592_s1 = inlined_call_operand.hbm [shape: f32[2,16,16,32], index: 1, kind: output, shape index: {}]  }
   0x1   :  { %7 = vsyncpa [#allocation4], 0  ;;  %s352_s6 = smov [#allocation2]   ;;  %s304_s10 = scalar_lea.hbm %s591_s0, 8192 }
   0x2   :  { %s13_s7 = sshll.u32 %s352_s6, 4  ;;  %p305_p0 = scmp.ne.s32.totalorder %s591_s0, %s304_s10  ;;  %s14_s7 = int_to_ptr.vmem [resolvable:$true] %s13_s7 }
   0x3   :  { %p308_p1 = scmp.lt.u32.totalorder %s304_s10, %s591_s0 }
   0x5   :  { %p310_p2 = pnand %p308_p1, %p305_p0 }
   0x7   :  { %313 = shalt.err (!%p310_p2)
}
   0x8   :  { %s314_s15 = scalar_lea.vmem %s14_s7, 8192  ;;  %p319_p4 = scmp.lt.s32.totalorder %s14_s7, %s14_s7 }
   0x9   :  { %p315_p3 = scmp.ne.s32.totalorder %s14_s7, %s314_s15  ;;  %p320_p5 = scmp.lt.s32.totalorder %s314_s15, %s314_s15 }
   0xb   :  { %p321_p6 = por %p320_p5, %p319_p4 }
   0xd   :  { %p322_p7 = pnand %p321_p6, %p315_p3 }
   0xf   :  { %325 = shalt.err (!%p322_p7)
}
  0x10   :  { %s353_s16 = smov 128   ;;  %s354_s17 = smov 8  }
  0x11   :  { %19 = dma.hbm_to_vmem [thread:$0]  %s591_s0, 8192, %s14_s7, [#allocation3], %s353_s16, %s353_s16, %s354_s17  }
  0x12   :  { %348 = dma.done.wait [#allocation3], 8192  }
  0x13   :  { %349 = vsyncadd [#allocation3], 4294959104  ;;  %v151_v0 = vlaneseq  ;;  %v23_v2 = vld [vmem:[#allocation2] sm:$0xff]  ;;  %v24_v3 = vld [vmem:[#allocation2 + $0x8] sm:$0xff]  ;;  %vm218_vm1 = vcmask 261120   ;;  %s355_s0 = smov [#allocation5]  }
  0x14   :  { %v25_v4 = vld [vmem:[#allocation2 + $0x10] sm:$0xff]  ;;  %v87_v5 = vrot.slane %v23_v2, 7  ;;  %v119_v6 = vrot.slane %v24_v3, 7  ;;  %v26_v7 = vld [vmem:[#allocation2 + $0x18] sm:$0xff]  ;;  %v27_v9 = vld [vmem:[#allocation2 + $0x20] sm:$0xff]  ;;  %s288_s20 = sshll.u32 %s355_s0, 4  ;;  %s289_s20 = int_to_ptr.vmem [resolvable:$true] %s288_s20 }
  0x15   :  { %v381_v1 = vshrl.u32 %v151_v0, 7  ;;  %v88_v8 = vrot.slane %v25_v4, 7  ;;  %v28_v10 = vld [vmem:[#allocation2 + $0x28] sm:$0xff]  ;;  %v120_v11 = vrot.slane %v26_v7, 7  ;;  %v89_v12 = vrot.slane %v27_v9, 7  ;;  %v29_v14 = vld [vmem:[#allocation2 + $0x30] sm:$0xff]  ;;  %p331_p9 = scmp.lt.s32.totalorder %s289_s20, %s289_s20 }
  0x16   :  { %v121_v13 = vrot.slane %v28_v10, 7  ;;  %v30_v15 = vld [vmem:[#allocation2 + $0x38] sm:$0xff]  ;;  %v31_v16 = vld [vmem:[#allocation2 + $0x40] sm:$0xff]  ;;  %v90_v19 = vrot.slane %v29_v14, 7  ;;  %v32_v21 = vld [vmem:[#allocation2 + $0x48] sm:$0xff]  ;;  %s326_s21 = scalar_lea.vmem %s289_s20, 8192 }
  0x17   :  { %vm153_vm0 = vcmp.lt.s32.totalorder %v381_v1, 1  ;;  %v122_v20 = vrot.slane %v30_v15, 7  ;;  %v33_v22 = vld [vmem:[#allocation2 + $0x50] sm:$0xff]  ;;  %v34_v23 = vld [vmem:[#allocation2 + $0x58] sm:$0xff]  ;;  %v35_v28 = vld [vmem:[#allocation2 + $0x60] sm:$0xff]  ;;  %v91_v33 = vrot.slane %v31_v16, 7  ;;  %p327_p8 = scmp.ne.s32.totalorder %s289_s20, %s326_s21  ;;  %p332_p10 = scmp.lt.s32.totalorder %s326_s21, %s326_s21 }
  0x18   :  { %v186_v17 = vsel %vm153_vm0, %v119_v6, %v87_v5  ;;  %v154_v18 = vsel %vm153_vm0, %v87_v5, %v119_v6  ;;  %v187_v24 = vsel %vm153_vm0, %v120_v11, %v88_v8  ;;  %v155_v25 = vsel %vm153_vm0, %v88_v8, %v120_v11  ;;  %v36_v29 = vld [vmem:[#allocation2 + $0x68] sm:$0xff]  ;;  %v37_v30 = vld [vmem:[#allocation2 + $0x70] sm:$0xff]  ;;  %v38_v35 = vld [vmem:[#allocation2 + $0x78] sm:$0xff] }
  0x19   :  { %219 = vst.msk [vmem:[#allocation5] sm:$0xff] %vm218_vm1, %v186_v17  ;;  %220 = vst.msk [vmem:[#allocation5 + $0x8] sm:$0xff] %vm218_vm1, %v154_v18  ;;  %v188_v26 = vsel %vm153_vm0, %v121_v13, %v89_v12  ;;  %v156_v27 = vsel %vm153_vm0, %v89_v12, %v121_v13  ;;  %v189_v31 = vsel %vm153_vm0, %v122_v20, %v90_v19  ;;  %v123_v34 = vrot.slane %v32_v21, 7  ;;  %v39_v36 = vld [vmem:[#allocation2 + $0x80] sm:$0xff]  ;;  %v40_v41 = vld [vmem:[#allocation2 + $0x88] sm:$0xff]  ;;  %p333_p11 = por %p332_p10, %p331_p9 }
  0x1a   :  { %221 = vst.msk [vmem:[#allocation5 + $0x10] sm:$0xff] %vm218_vm1, %v187_v24  ;;  %222 = vst.msk [vmem:[#allocation5 + $0x18] sm:$0xff] %vm218_vm1, %v155_v25  ;;  %v157_v32 = vsel %vm153_vm0, %v90_v19, %v122_v20  ;;  %v92_v37 = vrot.slane %v33_v22, 7  ;;  %v124_v38 = vrot.slane %v34_v23, 7  ;;  %v93_v39 = vrot.slane %v35_v28, 7  ;;  %v41_v42 = vld [vmem:[#allocation2 + $0x90] sm:$0xff] }
  0x1b   :  { %223 = vst.msk [vmem:[#allocation5 + $0x20] sm:$0xff] %vm218_vm1, %v188_v26  ;;  %224 = vst.msk [vmem:[#allocation5 + $0x28] sm:$0xff] %vm218_vm1, %v156_v27  ;;  %v125_v40 = vrot.slane %v36_v29, 7  ;;  %v190_v43 = vsel %vm153_vm0, %v123_v34, %v91_v33  ;;  %v158_v44 = vsel %vm153_vm0, %v91_v33, %v123_v34  ;;  %v94_v45 = vrot.slane %v37_v30, 7  ;;  %v42_v47 = vld [vmem:[#allocation2 + $0x98] sm:$0xff]  ;;  %v43_v48 = vld [vmem:[#allocation2 + $0xa0] sm:$0xff]  ;;  %p334_p12 = pnand %p333_p11, %p327_p8 }
  0x1c   :  { %225 = vst.msk [vmem:[#allocation5 + $0x30] sm:$0xff] %vm218_vm1, %v189_v31  ;;  %226 = vst.msk [vmem:[#allocation5 + $0x38] sm:$0xff] %vm218_vm1, %v157_v32  ;;  %v126_v46 = vrot.slane %v38_v35, 7  ;;  %v44_v49 = vld [vmem:[#allocation2 + $0xa8] sm:$0xff]  ;;  %v191_v50 = vsel %vm153_vm0, %v124_v38, %v92_v37  ;;  %v159_v51 = vsel %vm153_vm0, %v92_v37, %v124_v38  ;;  %v45_v54 = vld [vmem:[#allocation2 + $0xb0] sm:$0xff]  ;;  %v95_v58 = vrot.slane %v39_v36, 7 }
  0x1d   :  { %227 = vst.msk [vmem:[#allocation5 + $0x40] sm:$0xff] %vm218_vm1, %v190_v43  ;;  %228 = vst.msk [vmem:[#allocation5 + $0x48] sm:$0xff] %vm218_vm1, %v158_v44  ;;  %v192_v52 = vsel %vm153_vm0, %v125_v40, %v93_v39  ;;  %v160_v53 = vsel %vm153_vm0, %v93_v39, %v125_v40  ;;  %v46_v55 = vld [vmem:[#allocation2 + $0xb8] sm:$0xff]  ;;  %v127_v59 = vrot.slane %v40_v41, 7  ;;  %v47_v60 = vld [vmem:[#allocation2 + $0xc0] sm:$0xff]  ;;  %v96_v61 = vrot.slane %v41_v42, 7 }
  0x1e   :  { %229 = vst.msk [vmem:[#allocation5 + $0x50] sm:$0xff] %vm218_vm1, %v191_v50  ;;  %230 = vst.msk [vmem:[#allocation5 + $0x58] sm:$0xff] %vm218_vm1, %v159_v51  ;;  %v193_v56 = vsel %vm153_vm0, %v126_v46, %v94_v45  ;;  %v161_v57 = vsel %vm153_vm0, %v94_v45, %v126_v46  ;;  %v128_v62 = vrot.slane %v42_v47, 7  ;;  %v97_v63 = vrot.slane %v43_v48, 7  ;;  %v48_v2 = vld [vmem:[#allocation2 + $0xc8] sm:$0xff]  ;;  %v49_v3 = vld [vmem:[#allocation2 + $0xd0] sm:$0xff] }
  0x1f   :  { %231 = vst.msk [vmem:[#allocation5 + $0x60] sm:$0xff] %vm218_vm1, %v192_v52  ;;  %232 = vst.msk [vmem:[#allocation5 + $0x68] sm:$0xff] %vm218_vm1, %v160_v53  ;;  %v129_v0 = vrot.slane %v44_v49, 7  ;;  %v194_v4 = vsel %vm153_vm0, %v127_v59, %v95_v58  ;;  %v162_v5 = vsel %vm153_vm0, %v95_v58, %v127_v59  ;;  %v98_v6 = vrot.slane %v45_v54, 7  ;;  %v50_v8 = vld [vmem:[#allocation2 + $0xd8] sm:$0xff]  ;;  %v51_v9 = vld [vmem:[#allocation2 + $0xe0] sm:$0xff] }
  0x20   :  { %233 = vst.msk [vmem:[#allocation5 + $0x70] sm:$0xff] %vm218_vm1, %v193_v56  ;;  %234 = vst.msk [vmem:[#allocation5 + $0x78] sm:$0xff] %vm218_vm1, %v161_v57  ;;  %v130_v7 = vrot.slane %v46_v55, 7  ;;  %v52_v10 = vld [vmem:[#allocation2 + $0xe8] sm:$0xff]  ;;  %v195_v11 = vsel %vm153_vm0, %v128_v62, %v96_v61  ;;  %v163_v12 = vsel %vm153_vm0, %v96_v61, %v128_v62  ;;  %v53_v15 = vld [vmem:[#allocation2 + $0xf0] sm:$0xff]  ;;  %v99_v19 = vrot.slane %v47_v60, 7 }
  0x21   :  { %235 = vst.msk [vmem:[#allocation5 + $0x80] sm:$0xff] %vm218_vm1, %v194_v4  ;;  %236 = vst.msk [vmem:[#allocation5 + $0x88] sm:$0xff] %vm218_vm1, %v162_v5  ;;  %v196_v13 = vsel %vm153_vm0, %v129_v0, %v97_v63  ;;  %v164_v14 = vsel %vm153_vm0, %v97_v63, %v129_v0  ;;  %v54_v16 = vld [vmem:[#allocation2 + $0xf8] sm:$0xff]  ;;  %v131_v20 = vrot.slane %v48_v2, 7  ;;  %v55_v21 = vld [vmem:[#allocation2 + $0x100] sm:$0xff]  ;;  %v100_v22 = vrot.slane %v49_v3, 7 }
  0x22   :  { %237 = vst.msk [vmem:[#allocation5 + $0x90] sm:$0xff] %vm218_vm1, %v195_v11  ;;  %238 = vst.msk [vmem:[#allocation5 + $0x98] sm:$0xff] %vm218_vm1, %v163_v12  ;;  %v197_v17 = vsel %vm153_vm0, %v130_v7, %v98_v6  ;;  %v165_v18 = vsel %vm153_vm0, %v98_v6, %v130_v7  ;;  %v132_v23 = vrot.slane %v50_v8, 7  ;;  %v101_v24 = vrot.slane %v51_v9, 7  ;;  %v56_v26 = vld [vmem:[#allocation2 + $0x108] sm:$0xff]  ;;  %v57_v27 = vld [vmem:[#allocation2 + $0x110] sm:$0xff] }
  0x23   :  { %239 = vst.msk [vmem:[#allocation5 + $0xa0] sm:$0xff] %vm218_vm1, %v196_v13  ;;  %240 = vst.msk [vmem:[#allocation5 + $0xa8] sm:$0xff] %vm218_vm1, %v164_v14  ;;  %v133_v25 = vrot.slane %v52_v10, 7  ;;  %v198_v28 = vsel %vm153_vm0, %v131_v20, %v99_v19  ;;  %v166_v29 = vsel %vm153_vm0, %v99_v19, %v131_v20  ;;  %v102_v30 = vrot.slane %v53_v15, 7  ;;  %v58_v32 = vld [vmem:[#allocation2 + $0x118] sm:$0xff]  ;;  %v59_v33 = vld [vmem:[#allocation2 + $0x120] sm:$0xff] }
  0x24   :  { %241 = vst.msk [vmem:[#allocation5 + $0xb0] sm:$0xff] %vm218_vm1, %v197_v17  ;;  %242 = vst.msk [vmem:[#allocation5 + $0xb8] sm:$0xff] %vm218_vm1, %v165_v18  ;;  %v134_v31 = vrot.slane %v54_v16, 7  ;;  %v60_v34 = vld [vmem:[#allocation2 + $0x128] sm:$0xff]  ;;  %v199_v35 = vsel %vm153_vm0, %v132_v23, %v100_v22  ;;  %v167_v36 = vsel %vm153_vm0, %v100_v22, %v132_v23  ;;  %v61_v39 = vld [vmem:[#allocation2 + $0x130] sm:$0xff]  ;;  %v103_v43 = vrot.slane %v55_v21, 7 }
  0x25   :  { %243 = vst.msk [vmem:[#allocation5 + $0xc0] sm:$0xff] %vm218_vm1, %v198_v28  ;;  %244 = vst.msk [vmem:[#allocation5 + $0xc8] sm:$0xff] %vm218_vm1, %v166_v29  ;;  %v200_v37 = vsel %vm153_vm0, %v133_v25, %v101_v24  ;;  %v168_v38 = vsel %vm153_vm0, %v101_v24, %v133_v25  ;;  %v62_v40 = vld [vmem:[#allocation2 + $0x138] sm:$0xff]  ;;  %v135_v44 = vrot.slane %v56_v26, 7  ;;  %v63_v45 = vld [vmem:[#allocation2 + $0x140] sm:$0xff]  ;;  %v104_v46 = vrot.slane %v57_v27, 7 }
  0x26   :  { %245 = vst.msk [vmem:[#allocation5 + $0xd0] sm:$0xff] %vm218_vm1, %v199_v35  ;;  %246 = vst.msk [vmem:[#allocation5 + $0xd8] sm:$0xff] %vm218_vm1, %v167_v36  ;;  %v201_v41 = vsel %vm153_vm0, %v134_v31, %v102_v30  ;;  %v169_v42 = vsel %vm153_vm0, %v102_v30, %v134_v31  ;;  %v136_v47 = vrot.slane %v58_v32, 7  ;;  %v105_v48 = vrot.slane %v59_v33, 7  ;;  %v64_v50 = vld [vmem:[#allocation2 + $0x148] sm:$0xff]  ;;  %v65_v51 = vld [vmem:[#allocation2 + $0x150] sm:$0xff] }
  0x27   :  { %247 = vst.msk [vmem:[#allocation5 + $0xe0] sm:$0xff] %vm218_vm1, %v200_v37  ;;  %248 = vst.msk [vmem:[#allocation5 + $0xe8] sm:$0xff] %vm218_vm1, %v168_v38  ;;  %v137_v49 = vrot.slane %v60_v34, 7  ;;  %v202_v52 = vsel %vm153_vm0, %v135_v44, %v103_v43  ;;  %v170_v53 = vsel %vm153_vm0, %v103_v43, %v135_v44  ;;  %v106_v54 = vrot.slane %v61_v39, 7  ;;  %v66_v56 = vld [vmem:[#allocation2 + $0x158] sm:$0xff]  ;;  %v67_v57 = vld [vmem:[#allocation2 + $0x160] sm:$0xff] }
  0x28   :  { %249 = vst.msk [vmem:[#allocation5 + $0xf0] sm:$0xff] %vm218_vm1, %v201_v41  ;;  %250 = vst.msk [vmem:[#allocation5 + $0xf8] sm:$0xff] %vm218_vm1, %v169_v42  ;;  %v138_v55 = vrot.slane %v62_v40, 7  ;;  %v68_v58 = vld [vmem:[#allocation2 + $0x168] sm:$0xff]  ;;  %v203_v59 = vsel %vm153_vm0, %v136_v47, %v104_v46  ;;  %v171_v60 = vsel %vm153_vm0, %v104_v46, %v136_v47  ;;  %v69_v63 = vld [vmem:[#allocation2 + $0x170] sm:$0xff]  ;;  %v107_v4 = vrot.slane %v63_v45, 7 }
  0x29   :  { %251 = vst.msk [vmem:[#allocation5 + $0x100] sm:$0xff] %vm218_vm1, %v202_v52  ;;  %252 = vst.msk [vmem:[#allocation5 + $0x108] sm:$0xff] %vm218_vm1, %v170_v53  ;;  %v204_v61 = vsel %vm153_vm0, %v137_v49, %v105_v48  ;;  %v172_v62 = vsel %vm153_vm0, %v105_v48, %v137_v49  ;;  %v70_v0 = vld [vmem:[#allocation2 + $0x178] sm:$0xff]  ;;  %v139_v5 = vrot.slane %v64_v50, 7  ;;  %v71_v6 = vld [vmem:[#allocation2 + $0x180] sm:$0xff]  ;;  %v108_v7 = vrot.slane %v65_v51, 7 }
  0x2a   :  { %253 = vst.msk [vmem:[#allocation5 + $0x110] sm:$0xff] %vm218_vm1, %v203_v59  ;;  %254 = vst.msk [vmem:[#allocation5 + $0x118] sm:$0xff] %vm218_vm1, %v171_v60  ;;  %v205_v2 = vsel %vm153_vm0, %v138_v55, %v106_v54  ;;  %v173_v3 = vsel %vm153_vm0, %v106_v54, %v138_v55  ;;  %v140_v8 = vrot.slane %v66_v56, 7  ;;  %v109_v9 = vrot.slane %v67_v57, 7  ;;  %v72_v11 = vld [vmem:[#allocation2 + $0x188] sm:$0xff]  ;;  %v73_v12 = vld [vmem:[#allocation2 + $0x190] sm:$0xff] }
  0x2b   :  { %255 = vst.msk [vmem:[#allocation5 + $0x120] sm:$0xff] %vm218_vm1, %v204_v61  ;;  %256 = vst.msk [vmem:[#allocation5 + $0x128] sm:$0xff] %vm218_vm1, %v172_v62  ;;  %v141_v10 = vrot.slane %v68_v58, 7  ;;  %v206_v13 = vsel %vm153_vm0, %v139_v5, %v107_v4  ;;  %v174_v14 = vsel %vm153_vm0, %v107_v4, %v139_v5  ;;  %v110_v15 = vrot.slane %v69_v63, 7  ;;  %v74_v17 = vld [vmem:[#allocation2 + $0x198] sm:$0xff]  ;;  %v75_v18 = vld [vmem:[#allocation2 + $0x1a0] sm:$0xff] }
  0x2c   :  { %257 = vst.msk [vmem:[#allocation5 + $0x130] sm:$0xff] %vm218_vm1, %v205_v2  ;;  %258 = vst.msk [vmem:[#allocation5 + $0x138] sm:$0xff] %vm218_vm1, %v173_v3  ;;  %v142_v16 = vrot.slane %v70_v0, 7  ;;  %v76_v19 = vld [vmem:[#allocation2 + $0x1a8] sm:$0xff]  ;;  %v207_v20 = vsel %vm153_vm0, %v140_v8, %v108_v7  ;;  %v175_v21 = vsel %vm153_vm0, %v108_v7, %v140_v8  ;;  %v77_v24 = vld [vmem:[#allocation2 + $0x1b0] sm:$0xff]  ;;  %v111_v28 = vrot.slane %v71_v6, 7 }
  0x2d   :  { %259 = vst.msk [vmem:[#allocation5 + $0x140] sm:$0xff] %vm218_vm1, %v206_v13  ;;  %260 = vst.msk [vmem:[#allocation5 + $0x148] sm:$0xff] %vm218_vm1, %v174_v14  ;;  %v208_v22 = vsel %vm153_vm0, %v141_v10, %v109_v9  ;;  %v176_v23 = vsel %vm153_vm0, %v109_v9, %v141_v10  ;;  %v78_v25 = vld [vmem:[#allocation2 + $0x1b8] sm:$0xff]  ;;  %v143_v29 = vrot.slane %v72_v11, 7  ;;  %v79_v30 = vld [vmem:[#allocation2 + $0x1c0] sm:$0xff]  ;;  %v112_v31 = vrot.slane %v73_v12, 7 }
  0x2e   :  { %261 = vst.msk [vmem:[#allocation5 + $0x150] sm:$0xff] %vm218_vm1, %v207_v20  ;;  %262 = vst.msk [vmem:[#allocation5 + $0x158] sm:$0xff] %vm218_vm1, %v175_v21  ;;  %v209_v26 = vsel %vm153_vm0, %v142_v16, %v110_v15  ;;  %v177_v27 = vsel %vm153_vm0, %v110_v15, %v142_v16  ;;  %v144_v32 = vrot.slane %v74_v17, 7  ;;  %v113_v33 = vrot.slane %v75_v18, 7  ;;  %v80_v35 = vld [vmem:[#allocation2 + $0x1c8] sm:$0xff]  ;;  %v81_v36 = vld [vmem:[#allocation2 + $0x1d0] sm:$0xff] }
  0x2f   :  { %263 = vst.msk [vmem:[#allocation5 + $0x160] sm:$0xff] %vm218_vm1, %v208_v22  ;;  %264 = vst.msk [vmem:[#allocation5 + $0x168] sm:$0xff] %vm218_vm1, %v176_v23  ;;  %v145_v34 = vrot.slane %v76_v19, 7  ;;  %v210_v37 = vsel %vm153_vm0, %v143_v29, %v111_v28  ;;  %v178_v38 = vsel %vm153_vm0, %v111_v28, %v143_v29  ;;  %v114_v39 = vrot.slane %v77_v24, 7  ;;  %v82_v41 = vld [vmem:[#allocation2 + $0x1d8] sm:$0xff]  ;;  %v83_v42 = vld [vmem:[#allocation2 + $0x1e0] sm:$0xff] }
  0x30   :  { %265 = vst.msk [vmem:[#allocation5 + $0x170] sm:$0xff] %vm218_vm1, %v209_v26  ;;  %266 = vst.msk [vmem:[#allocation5 + $0x178] sm:$0xff] %vm218_vm1, %v177_v27  ;;  %v146_v40 = vrot.slane %v78_v25, 7  ;;  %v84_v43 = vld [vmem:[#allocation2 + $0x1e8] sm:$0xff]  ;;  %v211_v44 = vsel %vm153_vm0, %v144_v32, %v112_v31  ;;  %v179_v45 = vsel %vm153_vm0, %v112_v31, %v144_v32  ;;  %v85_v48 = vld [vmem:[#allocation2 + $0x1f0] sm:$0xff]  ;;  %v115_v52 = vrot.slane %v79_v30, 7 }
  0x31   :  { %267 = vst.msk [vmem:[#allocation5 + $0x180] sm:$0xff] %vm218_vm1, %v210_v37  ;;  %268 = vst.msk [vmem:[#allocation5 + $0x188] sm:$0xff] %vm218_vm1, %v178_v38  ;;  %v212_v46 = vsel %vm153_vm0, %v145_v34, %v113_v33  ;;  %v180_v47 = vsel %vm153_vm0, %v113_v33, %v145_v34  ;;  %v86_v49 = vld [vmem:[#allocation2 + $0x1f8] sm:$0xff]  ;;  %v147_v53 = vrot.slane %v80_v35, 7  ;;  %v116_v54 = vrot.slane %v81_v36, 7 }
  0x32   :  { %269 = vst.msk [vmem:[#allocation5 + $0x190] sm:$0xff] %vm218_vm1, %v211_v44  ;;  %270 = vst.msk [vmem:[#allocation5 + $0x198] sm:$0xff] %vm218_vm1, %v179_v45  ;;  %v213_v50 = vsel %vm153_vm0, %v146_v40, %v114_v39  ;;  %v181_v51 = vsel %vm153_vm0, %v114_v39, %v146_v40  ;;  %v148_v55 = vrot.slane %v82_v41, 7  ;;  %v117_v56 = vrot.slane %v83_v42, 7 }
  0x33   :  { %271 = vst.msk [vmem:[#allocation5 + $0x1a0] sm:$0xff] %vm218_vm1, %v212_v46  ;;  %272 = vst.msk [vmem:[#allocation5 + $0x1a8] sm:$0xff] %vm218_vm1, %v180_v47  ;;  %v149_v57 = vrot.slane %v84_v43, 7  ;;  %v214_v58 = vsel %vm153_vm0, %v147_v53, %v115_v52  ;;  %v182_v59 = vsel %vm153_vm0, %v115_v52, %v147_v53  ;;  %v118_v60 = vrot.slane %v85_v48, 7 }
  0x34   :  { %273 = vst.msk [vmem:[#allocation5 + $0x1b0] sm:$0xff] %vm218_vm1, %v213_v50  ;;  %274 = vst.msk [vmem:[#allocation5 + $0x1b8] sm:$0xff] %vm218_vm1, %v181_v51  ;;  %v150_v61 = vrot.slane %v86_v49, 7  ;;  %v215_v62 = vsel %vm153_vm0, %v148_v55, %v116_v54  ;;  %v183_v63 = vsel %vm153_vm0, %v116_v54, %v148_v55 }
  0x35   :  { %275 = vst.msk [vmem:[#allocation5 + $0x1c0] sm:$0xff] %vm218_vm1, %v214_v58  ;;  %276 = vst.msk [vmem:[#allocation5 + $0x1c8] sm:$0xff] %vm218_vm1, %v182_v59  ;;  %v216_v0 = vsel %vm153_vm0, %v149_v57, %v117_v56  ;;  %v184_v2 = vsel %vm153_vm0, %v117_v56, %v149_v57 }
  0x36   :  { %277 = vst.msk [vmem:[#allocation5 + $0x1d0] sm:$0xff] %vm218_vm1, %v215_v62  ;;  %278 = vst.msk [vmem:[#allocation5 + $0x1d8] sm:$0xff] %vm218_vm1, %v183_v63  ;;  %v217_v3 = vsel %vm153_vm0, %v150_v61, %v118_v60  ;;  %v185_v4 = vsel %vm153_vm0, %v118_v60, %v150_v61 }
  0x37   :  { %279 = vst.msk [vmem:[#allocation5 + $0x1e0] sm:$0xff] %vm218_vm1, %v216_v0  ;;  %280 = vst.msk [vmem:[#allocation5 + $0x1e8] sm:$0xff] %vm218_vm1, %v184_v2 }
  0x38   :  { %281 = vst.msk [vmem:[#allocation5 + $0x1f0] sm:$0xff] %vm218_vm1, %v217_v3  ;;  %282 = vst.msk [vmem:[#allocation5 + $0x1f8] sm:$0xff] %vm218_vm1, %v185_v4 }
  0x39   :  { %337 = shalt.err (!%p334_p12)
}
  0x3a   :  { %s338_s24 = scalar_lea.hbm %s592_s1, 8192 }
  0x3b   :  { %p339_p13 = scmp.ne.s32.totalorder %s592_s1, %s338_s24  ;;  %p342_p0 = scmp.lt.u32.totalorder %s338_s24, %s592_s1 }
  0x3d   :  { %p344_p1 = pnand %p342_p0, %p339_p13 }
  0x3f   :  { %347 = shalt.err (!%p344_p1)
}
  0x40   :  { %294 = dma.vmem_to_hbm [thread:$0]  %s289_s20, 8192, %s592_s1, [#allocation4], %s353_s16, %s353_s16, %s354_s17  }
  0x41   :  { %350 = dma.done.wait [#allocation4], 8192  }
  0x42   :  { %351 = vsyncadd [#allocation4], 4294959104 }
  0x43   :  { %298 = vsyncpa [#allocation3], 1 }
  0x44   :  { %299 = vsyncpa [#allocation4], 1 }

// kernel: tpu_custom_call.1
= control target key start
LH: loop header
LB: loop body
LE: loop exit
PB: predicated region body
PF: predicated region fallthrough
CT: control target
= control target key end

     0   :  { %7 = vsyncpa [#allocation3], 0  ;;  %s690_s0 = inlined_call_operand.hbm [shape: f32[2,8,128], index: 0, kind: input, shape index: {}]   ;;  %s691_s1 = inlined_call_operand.hbm [shape: f32[8,128], index: 1, kind: input, shape index: {}]   ;;  %s692_s2 = inlined_call_operand.hbm [shape: f32[2,8,128], index: 2, kind: output, shape index: {}]  }
   0x1   :  { %9 = vsyncpa [#allocation3 + $0x1], 0 }
   0x2   :  { %10 = vsyncpa [#allocation6], 0 }
   0x3   :  { %11 = vsyncpa [#allocation4], 0 }
   0x4   :  { %13 = vsyncpa [#allocation4 + $0x1], 0  ;;  %s489_s9 = smov 0   ;;  %s491_s10 = smov 0  }
   0x5   :  { %s493_s11 = smov 0   ;;  %s495_s12 = smov 0  }
   0x6 LB: > { %s510_s13 = sadd.s32 4294967295, %s469_s12   ;;  %s270_s14 = sadd.s32 4294967294, %s469_s12   ;;  %s469_s12 = sphi %s495_s12, %s716_s12   ;;  %s465_s11 = sphi %s493_s11, %s715_s11   ;;  %s461_s10 = sphi %s491_s10, %s714_s10   ;;  %s457_s9 = sphi %s489_s9, %s713_s9  }
   0x7   : > { %p39_p0 = scmp.ne.s32.totalorder %s461_s10, %s457_s9  ;;  %p693_p1 = scmp.eq.s32.totalorder %s510_s13, 0 }
   0x8   : > { %p90_p3 = scmp.eq.s32.totalorder %s270_s14, 1  ;;  %p271_p5 = scmp.ge.s32.totalorder %s469_s12, 1 }
   0x9   : > { %p519_p4 = por %p693_p1, %p39_p0  ;;  %p97_p7 = scmp.lt.s32.totalorder %s469_s12, 3 }
   0xa   : > { %p524_p6 = por %p90_p3, %p39_p0  ;;  %s471_s18 = smov [#allocation5]  }
   0xb   : > { %s696_s15 = scalar_select %p519_p4, 1, 0 }
   0xc   : > { %s697_s16 = scalar_select %p524_p6, 1, 0 }
   0xd   : > { %p529_p8 = pnand %p271_p5, %p97_p7  ;;  %s110_s19 = sshll.u32 %s471_s18, 4  ;;  %s111_s19 = int_to_ptr.vmem [resolvable:$true] %s110_s19 }
   0xe   : > { %s537_s20 = sadd.s32 1, %s469_s12   ;;  %s26_s24 = sadd.s32 1, %s465_s11 }
   0xf   : > { %s698_s17 = scalar_select %p529_p8, 1, 0 }
  0x10   : > { %p292_p10 = pneg %p529_p8  ;;  %s23_s22 = ssub.s32 %s469_s12, %s537_s20 }
  0x11   : > { %p547_p12 = scmp.eq.s32.totalorder %s23_s22, 0  ;;  %s341_s27 = scalar_lea.hbm %s691_s1, 128 }
  0x12   : > { %p541_p11 = pnand %p292_p10, %p693_p1  ;;  %p342_p0 = scmp.ne.s32.totalorder %s691_s1, %s341_s27 }
  0x13   : > { %s700_s23 = scalar_select %p547_p12, 1, 0 }
  0x14   : > { %p343_p3 = pneg %p541_p11  ;;  %p348_p10 = scmp.lt.u32.totalorder %s341_s27, %s691_s1 }
  0x16   : > { %p344_p5 = pnand %p343_p3, %p342_p0 }
  0x18   : > { %p345_p7 = pneg %p344_p5 }
  0x1a   : > { %p350_p9 = pnand %p348_p10, %p345_p7 }
  0x1c   : > { %353 = shalt.err (!%p350_p9)
}
  0x1d   : > { %s354_s4 = scalar_lea.vmem %s111_s19, 128  ;;  %p362_p6 = scmp.lt.s32.totalorder %s111_s19, %s111_s19 }
  0x1e   : > { %p355_p1 = scmp.ne.s32.totalorder %s111_s19, %s354_s4  ;;  %p363_p4 = scmp.lt.s32.totalorder %s354_s4, %s354_s4 }
  0x20   : > { %p357_p2 = pnand %p355_p1, %p343_p3  ;;  %p364_p8 = por %p363_p4, %p362_p6 }
  0x22   : > { %p358_p13 = pneg %p357_p2 }
  0x24   : > { %p365_p12 = pnand %p364_p8, %p358_p13 }
  0x26   : > { %368 = shalt.err (!%p365_p12)
}
  0x27   : > { %295 = dma.hbm_to_vmem [thread:$0]  (!%p541_p11), %s691_s1, 128, %s111_s19, [#allocation6]  }
  0x28   : > { %p701_p1 = scmp.ne.s32.totalorder %s700_s23, 0  ;;  %p34_p2 = scmp.eq.s32.totalorder %s469_s12, 0 }
  0x29   : > { %p702_p4 = scmp.ne.s32.totalorder %s465_s11, %s461_s10  ;;  %p703_p6 = scmp.eq.s32.totalorder %s510_s13, 1 }
  0x2a   : > { %s573_s7 = scalar_select %p701_p1, %s465_s11, %s26_s24  }
  0x2b   : > { %p581_p8 = por %p703_p6, %p702_p4  ;;  %p305_p9 = scmp.lt.s32.totalorder %s469_s12, 2 }
  0x2c   : > { %s121_s14 = sand.u32 1, %s465_s11   ;;  %p705_p12 = pmov %p702_p4 }
  0x2d   : > { %s274_s18 = sshll.u32 %s121_s14, 3  ;;  %s275_s21 = sshll.u32 %s469_s12, 7 }
  0x2e   : > { %p35_p13 = por %p34_p2, %p705_p12  ;;  %s594_s19 = scalar_lea.hbm %s690_s0, %s275_s21 }
  0x2f   : > { %s125_s23 = scalar_lea.vmem [#allocation2], %s274_s18  ;;  %s122_s27 = scalar_lea.sflag [#allocation3], %s121_s14 }
  0x30   : > { %s132_s24 = sshll.u32 %s125_s23, 4  ;;  %p596_p11 = pnand %p305_p9, %p35_p13  ;;  %s600_s24 = int_to_ptr.vmem [resolvable:$true] %s132_s24 }
  0x31   : > { %s369_s28 = scalar_lea.hbm %s594_s19, 128  ;;  %s374_s3 = scalar_lea.hbm %s690_s0, 256 }
  0x32   : > { %p370_p0 = scmp.ne.s32.totalorder %s594_s19, %s369_s28  ;;  %p371_p3 = pneg %p596_p11 }
  0x33   : > { %p375_p10 = scmp.lt.u32.totalorder %s594_s19, %s690_s0  ;;  %p376_p1 = scmp.lt.u32.totalorder %s374_s3, %s369_s28 }
  0x34   : > { %p372_p5 = pnand %p371_p3, %p370_p0  ;;  %p378_p4 = scmp.lt.u32.totalorder %s369_s28, %s594_s19 }
  0x35   : > { %p377_p2 = por %p376_p1, %p375_p10 }
  0x36   : > { %p373_p7 = pneg %p372_p5 }
  0x37   : > { %p379_p6 = por %p378_p4, %p377_p2 }
  0x39   : > { %p380_p9 = pnand %p379_p6, %p373_p7 }
  0x3b   : > { %383 = shalt.err (!%p380_p9)
}
  0x3c   : > { %s384_s6 = scalar_lea.vmem %s600_s24, 128  ;;  %s472_s14 = smov [#allocation2]  }
  0x3d   : > { %p385_p12 = scmp.ne.s32.totalorder %s600_s24, %s384_s6  ;;  %s389_s18 = sshll.u32 %s472_s14, 4  ;;  %s390_s18 = int_to_ptr.vmem [resolvable:$false] %s389_s18 }
  0x3e   : > { %s391_s21 = scalar_lea.vmem %s390_s18, 256  ;;  %p392_p5 = scmp.lt.s32.totalorder %s600_s24, %s390_s18 }
  0x3f   : > { %p387_p13 = pnand %p385_p12, %p371_p3  ;;  %p393_p10 = scmp.lt.s32.totalorder %s391_s21, %s384_s6 }
  0x41   : > { %p388_p0 = pneg %p387_p13  ;;  %p394_p1 = por %p393_p10, %p392_p5 }
  0x43   : > { %p395_p2 = pnand %p394_p1, %p388_p0 }
  0x45   : > { %398 = shalt.err (!%p395_p2)
}
  0x46   : > { %299 = dma.hbm_to_vmem [thread:$0]  (!%p596_p11), %s594_s19, 128, %s600_s24, %s122_s27  }
  0x47   : > { %p707_p7 = scmp.ne.s32.totalorder %s698_s17, 0 }
  0x48   : > { %s630_s22 = sand.u32 (!%p707_p7), 1, %s461_s10   ;;  %p708_p3 = scmp.ne.s32.totalorder (!%p707_p7), %s696_s15, 0 }
  0x49   : > { %141 = sbr.rel (%p707_p7) target bundleno = 109 (0x6d), region = 28  ;;  %s277_s25 = sshll.u32 (!%p707_p7), %s630_s22, 3 }
  0x4a   : > { %s144_s23 = scalar_lea.sflag (!%p707_p7), [#allocation3], %s630_s22  ;;  %s147_s28 = scalar_lea.vmem (!%p707_p7), [#allocation2], %s277_s25 }
  0x50   : > { %444 = dma.done.wait (%p708_p3), %s144_s23, 128  }
  0x51   : > { %446 = vsyncadd (%p708_p3), %s144_s23, 4294967168  ;;  %p709_p4 = scmp.eq.s32.totalorder %s510_s13, 0 }
  0x53   : > { %448 = dma.done.wait (%p709_p4), [#allocation6], 128   ;;  %p710_p11 = pmov %p709_p4 }
  0x54   : > { %s171_s17 = scalar_lea.vmem [#allocation7], %s277_s25  ;;  %s281_s24 = sshll.u32 %s510_s13, 7  ;;  %v172_v0 = vld [vmem:[%s147_s28] sm:$0xff]  ;;  %v173_v1 = vld [vmem:[#allocation5] sm:$0xff] }
  0x55   : > { %450 = vsyncadd (%p710_p11), [#allocation6], 4294967168  ;;  %s190_s19 = sshll.u32 %s171_s17, 4  ;;  %v174_v2 = vadd.f32 %v173_v1, %v172_v0  ;;  %s648_s27 = scalar_lea.hbm %s692_s2, %s281_s24  ;;  %s643_s19 = int_to_ptr.vmem [resolvable:$true] %s190_s19 }
  0x56   : > { %s177_s29 = scalar_lea.sflag [#allocation4], %s630_s22  ;;  %s399_s30 = scalar_lea.vmem %s643_s19, 128 }
  0x57   : > { %175 = vst [vmem:[%s171_s17] sm:$0xff] %v174_v2  ;;  %p400_p6 = scmp.ne.s32.totalorder %s643_s19, %s399_s30  ;;  %s473_s13 = smov [#allocation7]  }
  0x58   : > { %s403_s3 = sshll.u32 %s473_s13, 4  ;;  %s404_s3 = int_to_ptr.vmem [resolvable:$false] %s403_s3 }
  0x59   : > { %p401_p9 = pnand %p400_p6, %p581_p8  ;;  %s405_s4 = scalar_lea.vmem %s404_s3, 256 }
  0x5a   : > { %p406_p13 = scmp.lt.s32.totalorder %s643_s19, %s404_s3  ;;  %p407_p0 = scmp.lt.s32.totalorder %s405_s4, %s399_s30 }
  0x5b   : > { %p402_p12 = pneg %p401_p9 }
  0x5c   : > { %p408_p5 = por %p407_p0, %p406_p13 }
  0x5e   : > { %p409_p10 = pnand %p408_p5, %p402_p12 }
  0x60   : > { %412 = shalt.err (!%p409_p10)
}
  0x61   : > { %s413_s5 = scalar_lea.hbm %s648_s27, 128  ;;  %s417_s18 = scalar_lea.hbm %s692_s2, 256 }
  0x62   : > { %p414_p1 = scmp.ne.s32.totalorder %s648_s27, %s413_s5  ;;  %p418_p3 = scmp.lt.u32.totalorder %s648_s27, %s692_s2 }
  0x63   : > { %p419_p4 = scmp.lt.u32.totalorder %s417_s18, %s413_s5  ;;  %p421_p6 = scmp.lt.u32.totalorder %s413_s5, %s648_s27 }
  0x64   : > { %p415_p2 = pnand %p414_p1, %p581_p8 }
  0x65   : > { %p420_p11 = por %p419_p4, %p418_p3 }
  0x66   : > { %p416_p7 = pneg %p415_p2 }
  0x67   : > { %p422_p9 = por %p421_p6, %p420_p11 }
  0x69   : > { %p423_p12 = pnand %p422_p9, %p416_p7 }
  0x6b   : > { %426 = shalt.err (!%p423_p12)
}
  0x6c   : > { %290 = dma.vmem_to_hbm [thread:$0]  (%p581_p8), %s643_s19, 128, %s648_s27, %s177_s29  }
  0x6d PF: > { %s202_s25 = sand.u32 1, %s457_s9   ;;  %p711_p13 = scmp.ne.s32.totalorder %s697_s16, 0 }
  0x6e   : > { %p712_p0 = scmp.ge.s32.totalorder %s469_s12, 2  ;;  %s203_s23 = scalar_lea.sflag [#allocation4], %s202_s25 }
  0x70   : > { %p301_p5 = pnand %p712_p0, %p711_p13 }
  0x72   : > { %452 = dma.done.wait (!%p301_p5), %s203_s23, 128  }
  0x73   : > { %454 = vsyncadd (!%p301_p5), %s203_s23, 4294967168  ;;  %p16_p10 = scmp.ge.s32.totalorder %s537_s20, 4   ;;  %s713_s9 = smov %s461_s10 }
  0x74   : > { %s714_s10 = smov %s465_s11  ;;  %s715_s11 = smov %s573_s7 }
  0x75   : > { %s716_s12 = smov %s537_s20  ;;  %18 = sbr.rel (!%p16_p10) target bundleno = 6 (0x6), region = 77 }
  0x7c   :  { %208 = vsyncpa [#allocation3], 1 }
  0x7d   :  { %210 = vsyncpa [#allocation3 + $0x1], 1 }
  0x7e   :  { %211 = vsyncpa [#allocation6], 1 }
  0x7f   :  { %212 = vsyncpa [#allocation4], 1 }
  0x80   :  { %214 = vsyncpa [#allocation4 + $0x1], 1 }

// kernel: a_call__.1
= control target key start
LH: loop header
LB: loop body
LE: loop exit
PB: predicated region body
PF: predicated region fallthrough
CT: control target
= control target key end

     0   :  { %11 = vsyncpa [#allocation3], 0  ;;  %s5903_s0 = inlined_call_operand.hbm [shape: f32[2,16,16,32], index: 0, kind: input, shape index: {}]   ;;  %s5904_s1 = inlined_call_operand.vmem [shape: f32[16,32], index: 1, kind: input, shape index: {}]   ;;  %s5905_s2 = inlined_call_operand.vmem [shape: bf16[32,64], index: 2, kind: input, shape index: {}]   ;;  %s5906_s3 = inlined_call_operand.vmem [shape: f32[1,64], index: 3, kind: input, shape index: {}]   ;;  %s5907_s4 = inlined_call_operand.vmem [shape: bf16[64,32], index: 4, kind: input, shape index: {}]   ;;  %s5908_s5 = inlined_call_operand.vmem [shape: f32[1,32], index: 5, kind: input, shape index: {}]   ;;  %s5909_s6 = inlined_call_operand.hbm [shape: f32[2,16,16,32], index: 6, kind: output, shape index: {}]  }
   0x1   :  { %13 = vsyncpa [#allocation3 + $0x1], 0 }
   0x2   :  { %14 = vsyncpa [#allocation4], 0 }
   0x3   :  { %16 = vsyncpa [#allocation4 + $0x1], 0  ;;  %s3860_s21 = smov 0   ;;  %s3862_s22 = smov 0  }
   0x4   :  { %s3864_s23 = smov 0   ;;  %s3866_s24 = smov 0  }
   0x5 LB: > { %s3881_s25 = sadd.s32 4294967295, %s3817_s24   ;;  %s3387_s26 = sadd.s32 4294967294, %s3817_s24   ;;  %s3817_s24 = sphi %s3866_s24, %s6034_s24   ;;  %s3813_s23 = sphi %s3864_s23, %s6033_s23   ;;  %s3809_s22 = sphi %s3862_s22, %s6032_s22   ;;  %s3805_s21 = sphi %s3860_s21, %s6031_s21  }
   0x6   : > { %s3885_s27 = sadd.s32 1, %s3817_s24   ;;  %s29_s28 = sadd.s32 1, %s3813_s23 }
   0x7   : > { %s26_s29 = ssub.s32 %s3817_s24, %s3885_s27  ;;  %p36_p0 = scmp.ne.s32.totalorder %s3813_s23, %s3809_s22 }
   0x8   : > { %p27_p1 = scmp.eq.s32.totalorder %s26_s29, 0  ;;  %p37_p2 = scmp.eq.s32.totalorder %s3817_s24, 0 }
   0x9   : > { %p42_p3 = scmp.ne.s32.totalorder %s3809_s22, %s3805_s21  ;;  %p43_p4 = scmp.eq.s32.totalorder %s3881_s25, 0 }
   0xa   : > { %s3897_s30 = scalar_select %p27_p1, %s3813_s23, %s29_s28  }
   0xb   : > { %p3899_p5 = por %p37_p2, %p36_p0  ;;  %p3903_p6 = por %p43_p4, %p42_p3 }
   0xc   : > { %p171_p7 = scmp.eq.s32.totalorder %s3881_s25, 1  ;;  %p177_p8 = scmp.eq.s32.totalorder %s3387_s26, 1 }
   0xd   : > { %p3569_p10 = scmp.lt.s32.totalorder %s3817_s24, 2  ;;  %s212_s11 = sand.u32 1, %s3813_s23  }
   0xe   : > { %p3910_p11 = por %p171_p7, %p36_p0  ;;  %p3914_p12 = por %p177_p8, %p42_p3 }
   0xf   : > { %s3441_s12 = sshll.u32 %s3817_s24, 12  ;;  %s3390_s13 = sshll.u32 %s212_s11, 8 }
  0x10   : > { %s5949_s9 = scalar_select %p3910_p11, 1, 0 }
  0x11   : > { %s5950_s10 = scalar_select %p3914_p12, 1, 0 }
  0x12   : > { %s3923_s16 = scalar_lea.hbm %s5903_s0, %s3441_s12  ;;  %s216_s17 = scalar_lea.vmem [#allocation2], %s3390_s13 }
  0x13   : > { %s223_s18 = sshll.u32 %s216_s17, 4  ;;  %p3927_p13 = pnand %p3569_p10, %p3899_p5  ;;  %s3931_s18 = int_to_ptr.vmem [resolvable:$true] %s223_s18 }
  0x14   : > { %s3933_s20 = scalar_lea.sflag [#allocation3], %s212_s11  ;;  %s3721_s26 = scalar_lea.hbm %s3923_s16, 4096 }
  0x15   : > { %p3722_p0 = scmp.ne.s32.totalorder %s3923_s16, %s3721_s26  ;;  %p3723_p1 = pneg %p3927_p13 }
  0x16   : > { %s3726_s7 = scalar_lea.hbm %s5903_s0, 8192  ;;  %p3727_p4 = scmp.lt.u32.totalorder %s3923_s16, %s5903_s0 }
  0x17   : > { %p3724_p2 = pnand %p3723_p1, %p3722_p0  ;;  %p3728_p5 = scmp.lt.u32.totalorder %s3726_s7, %s3721_s26 }
  0x18   : > { %p3730_p8 = scmp.lt.u32.totalorder %s3721_s26, %s3923_s16 }
  0x19   : > { %p3725_p3 = pneg %p3724_p2  ;;  %p3729_p7 = por %p3728_p5, %p3727_p4 }
  0x1b   : > { %p3731_p10 = por %p3730_p8, %p3729_p7 }
  0x1d   : > { %p3732_p9 = pnand %p3731_p10, %p3725_p3 }
  0x1f   : > { %3735 = shalt.err (!%p3732_p9)
}
  0x20   : > { %s3736_s11 = scalar_lea.vmem %s3931_s18, 4096  ;;  %s3819_s14 = smov [#allocation2]  }
  0x21   : > { %p3737_p0 = scmp.ne.s32.totalorder %s3931_s18, %s3736_s11  ;;  %s3741_s15 = sshll.u32 %s3819_s14, 4  ;;  %s3742_s15 = int_to_ptr.vmem [resolvable:$false] %s3741_s15 }
  0x22   : > { %s3743_s17 = scalar_lea.vmem %s3742_s15, 8192  ;;  %p3744_p11 = scmp.lt.s32.totalorder %s3931_s18, %s3742_s15 }
  0x23   : > { %p3739_p2 = pnand %p3737_p0, %p3723_p1  ;;  %p3745_p4 = scmp.lt.s32.totalorder %s3743_s17, %s3736_s11 }
  0x25   : > { %p3740_p12 = pneg %p3739_p2  ;;  %p3746_p5 = por %p3745_p4, %p3744_p11 }
  0x27   : > { %p3747_p7 = pnand %p3746_p5, %p3740_p12 }
  0x29   : > { %3750 = shalt.err (!%p3747_p7)
}
  0x2a   : > { %s3820_s26 = smov 128   ;;  %s3821_s28 = smov 8  }
  0x2b   : > { %3564 = dma.hbm_to_vmem [thread:$0]  (!%p3927_p13), %s3923_s16, 4096, %s3931_s18, %s3933_s20, %s3820_s26, %s3820_s26, %s3821_s28  }
  0x2c   : > { %p3393_p9 = scmp.ge.s32.totalorder %s3817_s24, 1  ;;  %p231_p1 = scmp.lt.s32.totalorder %s3817_s24, 3 }
  0x2e   : > { %p232_p3 = pnand %p3393_p9, %p231_p1 }
  0x30   : > { %235 = sbr.rel (%p232_p3) target bundleno = 949 (0x3b5), region = 44 }
  0x37   : > { %s3964_s29 = sand.u32 1, %s3809_s22  }
  0x38   : > { %s3394_s7 = sshll.u32 %s3964_s29, 8  ;;  %s238_s12 = scalar_lea.sflag [#allocation3], %s3964_s29 }
  0x39   : > { %s3970_s13 = scalar_lea.vmem [#allocation2], %s3394_s7 }
  0x3a   : > { %3796 = dma.done.wait (%p3903_p6), %s238_s12, 4096  }
  0x3b   : > { %3798 = vsyncadd (%p3903_p6), %s238_s12, 4294963200  ;;  %v450_v0 = vlaneseq  ;;  %v3607_v1 = vld [vmem:[%s5905_s2] sm:$0xff]   ;;  %v3608_v2 = vld [vmem:[%s5905_s2 + $0x8] sm:$0xff]   ;;  %vm369_vm0 = vcmask 1040384   ;;  %vm2473_vm1 = vcmask 261120   ;;  %vm3026_vm2 = vcmask 523264  }
  0x3c   : > { %3481 = vmatprep.subr.bf16.mxu0 %v3607_v1  ;;  %v3985_v4 = vld [vmem:[%s3970_s13] sm:$0xff]  ;;  %v3988_v5 = vld [vmem:[%s3970_s13 + $0x8] sm:$0xff]  ;;  %v3998_v15 = vld [vmem:[%s3970_s13 + $0xf0] sm:$0xff]  ;;  %s5728_s15 = scalar_lea.vmem [#allocation5], %s3394_s7  ;;  %s3442_s7 = sshll.u32 %s3881_s25, 12 }
  0x3d   : > { %v3982_v3 = vshrl.u32 %v450_v0, 7  ;;  %3482 = vmatpush3.bf16.msra.mxu0 %v3607_v1  ;;  %v321_v6 = vrot.slane %v3988_v5, 7  ;;  %v370_v7 = vrot.slane %v3985_v4, 7  ;;  %v4004_v19 = vld [vmem:[%s3970_s13 + $0xf8] sm:$0xff]  ;;  %v4009_v20 = vld [vmem:[%s5904_s1] sm:$0xff]  ;;  %v4014_v21 = vld [vmem:[%s5904_s1 + $0x8] sm:$0xff]  ;;  %s5850_s12 = scalar_lea.hbm %s5909_s6, %s3442_s7 }
  0x3e   : > { %3483 = vmatprep.subr.bf16.mxu0 %v3608_v2  ;;  %v4021_v26 = vld [vmem:[%s3970_s13 + $0xe0] sm:$0xff]  ;;  %v4024_v27 = vld [vmem:[%s3970_s13 + $0xe8] sm:$0xff]  ;;  %v4045_v36 = vld [vmem:[%s3970_s13 + $0xd0] sm:$0xff]  ;;  %s3314_s17 = sshll.u32 %s5728_s15, 4  ;;  %s3301_s25 = scalar_lea.sflag [#allocation4], %s3964_s29  ;;  %s5852_s17 = int_to_ptr.vmem [resolvable:$true] %s3314_s17 }
  0x3f   : > { %v371_v8 = vsel %vm369_vm0, %v370_v7, %v321_v6  ;;  %v434_v9 = vsel %vm369_vm0, %v321_v6, %v370_v7  ;;  %v452_v10 = vsub.s32 0, %v3982_v3  ;;  %v716_v11 = vsub.s32 1, %v3982_v3  ;;  %v4048_v37 = vld [vmem:[%s3970_s13 + $0xd8] sm:$0xff]  ;;  %v4073_v54 = vld [vmem:[%s3970_s13 + $0xc0] sm:$0xff]  ;;  %v4076_v55 = vld [vmem:[%s3970_s13 + $0xc8] sm:$0xff]  ;;  %s3751_s16 = scalar_lea.vmem %s5852_s17, 4096 }
  0x40   : > { %v586_v12 = vrot.slane %v371_v8, 7  ;;  %v634_v13 = vrot.slane %v434_v9, 7  ;;  %v980_v14 = vsub.s32 2, %v3982_v3  ;;  %v1244_v16 = vsub.s32 3, %v3982_v3  ;;  %v4091_v0 = vld [vmem:[%s3970_s13 + $0xb0] sm:$0xff]  ;;  %v4094_v1 = vld [vmem:[%s3970_s13 + $0xb8] sm:$0xff]  ;;  %p3752_p6 = scmp.ne.s32.totalorder %s5852_s17, %s3751_s16 }
  0x41   : > { %3484 = vmatpush3.bf16.msra.mxu0 %v3608_v2  ;;  %v1508_v17 = vsub.s32 4, %v3982_v3  ;;  %v1772_v18 = vsub.s32 5, %v3982_v3  ;;  %v2036_v24 = vsub.s32 6, %v3982_v3  ;;  %v2300_v25 = vsub.s32 7, %v3982_v3  ;;  %p6028_p11 = scmp.ne.s32.totalorder %s5949_s9, 0  ;;  %s3822_s18 = smov [#allocation5]  }
  0x42   : > { %v635_v22 = vsel %vm369_vm0, %v634_v13, %v586_v12  ;;  %v698_v23 = vsel %vm369_vm0, %v586_v12, %v634_v13  ;;  %v4027_v28 = vrot.slane %v4009_v20, %v452_v10  ;;  %v4030_v29 = vrot.slane %v4014_v21, %v452_v10  ;;  %s3755_s19 = sshll.u32 %s3822_s18, 4  ;;  %s3756_s19 = int_to_ptr.vmem [resolvable:$false] %s3755_s19 }
  0x43   : > { %v4033_v30 = vrot.slane %v4009_v20, %v716_v11  ;;  %v4036_v31 = vrot.slane %v4014_v21, %v716_v11  ;;  %v850_v32 = vrot.slane %v635_v22, 7  ;;  %v898_v33 = vrot.slane %v698_v23, 7  ;;  %p3753_p12 = pnand %p3752_p6, %p6028_p11  ;;  %s3757_s20 = scalar_lea.vmem %s3756_s19, 8192 }
  0x44   : > { %5952 = vst [vmem:[#allocation8_spill] sm:$0xff] %v4030_v29  ;;  %v4039_v34 = vrot.slane %v4009_v20, %v980_v14  ;;  %v4042_v35 = vrot.slane %v4014_v21, %v980_v14  ;;  %v454_v38 = vmul.f32 %v4027_v28, %v3998_v15  ;;  %v455_v39 = vmul.f32 %v4027_v28, %v4004_v19  ;;  %p3758_p8 = scmp.lt.s32.totalorder %s5852_s17, %s3756_s19  ;;  %p3759_p10 = scmp.lt.s32.totalorder %s3757_s20, %s3751_s16 }
  0x45   : > { %v522_v40 = vmul.f32 %v4030_v29, %v434_v9  ;;  %v523_v41 = vmul.f32 %v4030_v29, %v371_v8  ;;  %v718_v42 = vmul.f32 %v4033_v30, %v4021_v26  ;;  %v719_v43 = vmul.f32 %v4033_v30, %v4024_v27  ;;  %p3754_p13 = pneg %p3753_p12 }
  0x46   : > { %v786_v44 = vmul.f32 %v4036_v31, %v698_v23  ;;  %v787_v45 = vmul.f32 %v4036_v31, %v635_v22  ;;  %v486_v46 = vadd.f32 %v454_v38, %v3985_v4  ;;  %v487_v47 = vadd.f32 %v455_v39, %v3988_v5  ;;  %v4105_v22 = vld [vmem:[%s3970_s13 + $0xa0] sm:$0xff]  ;;  %v4108_v23 = vld [vmem:[%s3970_s13 + $0xa8] sm:$0xff]  ;;  %p3760_p0 = por %p3759_p10, %p3758_p8 }
  0x47   : > { %v899_v48 = vsel %vm369_vm0, %v898_v33, %v850_v32  ;;  %v962_v49 = vsel %vm369_vm0, %v850_v32, %v898_v33  ;;  %v982_v50 = vmul.f32 %v4039_v34, %v4045_v36  ;;  %v983_v51 = vmul.f32 %v4039_v34, %v4048_v37 }
  0x48   : > { %v1050_v52 = vmul.f32 %v4042_v35, %v962_v49  ;;  %v1051_v53 = vmul.f32 %v4042_v35, %v899_v48  ;;  %v554_v56 = vadd.f32 %v522_v40, %v486_v46  ;;  %v555_v57 = vadd.f32 %v523_v41, %v487_v47  ;;  %p3761_p2 = pnand %p3760_p0, %p3754_p13 }
  0x49   : > { %v1114_v58 = vrot.slane %v899_v48, 7  ;;  %v1162_v59 = vrot.slane %v962_v49, 7  ;;  %v4079_v60 = vrot.slane %v4009_v20, %v1244_v16  ;;  %v4082_v61 = vrot.slane %v4014_v21, %v1244_v16  ;;  %v4129_v48 = vld [vmem:[%s3970_s13 + $0x90] sm:$0xff]  ;;  %v4132_v49 = vld [vmem:[%s3970_s13 + $0x98] sm:$0xff] }
  0x4a   : > { %v4085_v62 = vrot.slane %v4009_v20, %v1508_v17  ;;  %v4088_v63 = vrot.slane %v4014_v21, %v1508_v17  ;;  %v750_v2 = vadd.f32 %v718_v42, %v554_v56  ;;  %v751_v6 = vadd.f32 %v719_v43, %v555_v57 }
  0x4b   : > { %v1163_v7 = vsel %vm369_vm0, %v1162_v59, %v1114_v58  ;;  %v1226_v8 = vsel %vm369_vm0, %v1114_v58, %v1162_v59  ;;  %v1246_v9 = vmul.f32 %v4079_v60, %v4073_v54  ;;  %v1247_v10 = vmul.f32 %v4079_v60, %v4076_v55 }
  0x4c   : > { %v1314_v11 = vmul.f32 %v4082_v61, %v1226_v8  ;;  %v1315_v12 = vmul.f32 %v4082_v61, %v1163_v7  ;;  %v818_v13 = vadd.f32 %v786_v44, %v750_v2  ;;  %v819_v14 = vadd.f32 %v787_v45, %v751_v6 }
  0x4d   : > { %v1378_v16 = vrot.slane %v1163_v7, 7  ;;  %v1426_v17 = vrot.slane %v1226_v8, 7  ;;  %v1510_v32 = vmul.f32 %v4085_v62, %v4091_v0  ;;  %v1511_v33 = vmul.f32 %v4085_v62, %v4094_v1  ;;  %v4153_v8 = vld [vmem:[%s3970_s13 + $0x10] sm:$0xff] }
  0x4e   : > { %v4117_v38 = vrot.slane %v4009_v20, %v1772_v18  ;;  %v4122_v39 = vrot.slane %v4014_v21, %v1772_v18  ;;  %v1014_v40 = vadd.f32 %v982_v50, %v818_v13  ;;  %v1015_v41 = vadd.f32 %v983_v51, %v819_v14  ;;  %v4156_v13 = vld [vmem:[%s3970_s13 + $0x18] sm:$0xff] }
  0x4f   : > { %v1427_v42 = vsel %vm369_vm0, %v1426_v17, %v1378_v16  ;;  %v1490_v43 = vsel %vm369_vm0, %v1378_v16, %v1426_v17  ;;  %v4143_v59 = vrot.slane %v4009_v20, %v2036_v24 }
  0x50   : > { %5953 = vst [vmem:[#allocation9_spill] sm:$0xff] %v4122_v39  ;;  %v1578_v44 = vmul.f32 %v4088_v63, %v1490_v43  ;;  %v1579_v45 = vmul.f32 %v4088_v63, %v1427_v42  ;;  %v1642_v46 = vrot.slane %v1427_v42, 7  ;;  %v1690_v47 = vrot.slane %v1490_v43, 7 }
  0x51   : > { %v1082_v18 = vadd.f32 %v1050_v52, %v1014_v40  ;;  %v1083_v56 = vadd.f32 %v1051_v53, %v1015_v41  ;;  %v1774_v50 = vmul.f32 %v4117_v38, %v4105_v22  ;;  %v1775_v51 = vmul.f32 %v4117_v38, %v4108_v23  ;;  %v288_v41 = vld [vmem:[%s3970_s13 + $0x88] sm:$0xff] }
  0x52   : > { %v1691_v57 = vsel %vm369_vm0, %v1690_v47, %v1642_v46  ;;  %v1754_v58 = vsel %vm369_vm0, %v1642_v46, %v1690_v47  ;;  %v4148_v52 = vrot.slane %v4014_v21, %v2036_v24  ;;  %v2038_v17 = vmul.f32 %v4143_v59, %v4129_v48  ;;  %v287_v24 = vld [vmem:[%s3970_s13 + $0x80] sm:$0xff] }
  0x53   : > { %v1278_v53 = vadd.f32 %v1246_v9, %v1082_v18  ;;  %v1279_v2 = vadd.f32 %v1247_v10, %v1083_v56  ;;  %v1842_v6 = vmul.f32 %v4122_v39, %v1754_v58  ;;  %v1843_v7 = vmul.f32 %v4122_v39, %v1691_v57 }
  0x54   : > { %5954 = vst [vmem:[#allocation10_spill] sm:$0xff] %v4148_v52  ;;  %v1906_v14 = vrot.slane %v1691_v57, 7  ;;  %v1954_v16 = vrot.slane %v1754_v58, 7  ;;  %v2039_v40 = vmul.f32 %v4143_v59, %v4132_v49  ;;  %v4167_v42 = vrot.slane %v4009_v20, %v2300_v25 }
  0x55   : > { %v1346_v9 = vadd.f32 %v1314_v11, %v1278_v53  ;;  %v1347_v10 = vadd.f32 %v1315_v12, %v1279_v2  ;;  %v4172_v43 = vrot.slane %v4014_v21, %v2300_v25  ;;  %v322_v18 = vrot.slane %v4156_v13, 7 }
  0x56   : > { %v1955_v46 = vsel %vm369_vm0, %v1954_v16, %v1906_v14  ;;  %v2018_v47 = vsel %vm369_vm0, %v1906_v14, %v1954_v16  ;;  %v372_v56 = vrot.slane %v4153_v8, 7  ;;  %v2302_v3 = vmul.f32 %v4167_v42, %v287_v24 }
  0x57   : > { %v1542_v11 = vadd.f32 %v1510_v32, %v1346_v9  ;;  %v1543_v12 = vadd.f32 %v1511_v33, %v1347_v10  ;;  %v2106_v57 = vmul.f32 %v4148_v52, %v2018_v47  ;;  %v2107_v20 = vmul.f32 %v4148_v52, %v1955_v46 }
  0x58   : > { %v2170_v58 = vrot.slane %v1955_v46, 7  ;;  %v2218_v53 = vrot.slane %v2018_v47, 7  ;;  %v2303_v21 = vmul.f32 %v4167_v42, %v288_v41  ;;  %v373_v14 = vsel %vm369_vm0, %v372_v56, %v322_v18 }
  0x59   : > { %v1610_v25 = vadd.f32 %v1578_v44, %v1542_v11  ;;  %v1611_v2 = vadd.f32 %v1579_v45, %v1543_v12  ;;  %v435_v16 = vsel %vm369_vm0, %v322_v18, %v372_v56  ;;  %v456_v33 = vmul.f32 %v4027_v28, %v3985_v4 }
  0x5a   : > { %v2219_v39 = vsel %vm369_vm0, %v2218_v53, %v2170_v58  ;;  %v2282_v32 = vsel %vm369_vm0, %v2170_v58, %v2218_v53  ;;  %v457_v9 = vmul.f32 %v4027_v28, %v3988_v5  ;;  %v524_v47 = vmul.f32 %v4030_v29, %v435_v16 }
  0x5b   : > { %v1806_v10 = vadd.f32 %v1774_v50, %v1610_v25  ;;  %v1807_v24 = vadd.f32 %v1775_v51, %v1611_v2  ;;  %v2370_v41 = vmul.f32 %v4172_v43, %v2282_v32  ;;  %v2371_v44 = vmul.f32 %v4172_v43, %v2219_v39 }
  0x5c   : > { %v488_v45 = vadd.f32 %v456_v33, %v4153_v8  ;;  %v489_v46 = vadd.f32 %v457_v9, %v4156_v13  ;;  %v525_v18 = vmul.f32 %v4030_v29, %v373_v14  ;;  %v587_v12 = vrot.slane %v373_v14, 7 }
  0x5d   : > { %v1874_v56 = vadd.f32 %v1842_v6, %v1806_v10  ;;  %v1875_v11 = vadd.f32 %v1843_v7, %v1807_v24  ;;  %v636_v58 = vrot.slane %v435_v16, 7  ;;  %v720_v51 = vmul.f32 %v4033_v30, %v3998_v15 }
  0x5e   : > { %v556_v53 = vadd.f32 %v524_v47, %v488_v45  ;;  %v557_v50 = vadd.f32 %v525_v18, %v489_v46  ;;  %v721_v39 = vmul.f32 %v4033_v30, %v4004_v19 }
  0x5f   : > { %v2070_v25 = vadd.f32 %v2038_v17, %v1874_v56  ;;  %v2071_v2 = vadd.f32 %v2039_v40, %v1875_v11  ;;  %v637_v32 = vsel %vm369_vm0, %v636_v58, %v587_v12  ;;  %v699_v33 = vsel %vm369_vm0, %v587_v12, %v636_v58 }
  0x60   : > { %v752_v9 = vadd.f32 %v720_v51, %v556_v53  ;;  %v753_v6 = vadd.f32 %v721_v39, %v557_v50  ;;  %v788_v7 = vmul.f32 %v4036_v31, %v699_v33  ;;  %v789_v14 = vmul.f32 %v4036_v31, %v637_v32 }
  0x61   : > { %v2138_v16 = vadd.f32 %v2106_v57, %v2070_v25  ;;  %v2139_v10 = vadd.f32 %v2107_v20, %v2071_v2  ;;  %v851_v24 = vrot.slane %v637_v32, 7  ;;  %v900_v45 = vrot.slane %v699_v33, 7 }
  0x62   : > { %v820_v46 = vadd.f32 %v788_v7, %v752_v9  ;;  %v821_v47 = vadd.f32 %v789_v14, %v753_v6  ;;  %v984_v17 = vmul.f32 %v4039_v34, %v4021_v26  ;;  %v985_v40 = vmul.f32 %v4039_v34, %v4024_v27 }
  0x63   : > { %v2334_v18 = vadd.f32 %v2302_v3, %v2138_v16  ;;  %v2335_v56 = vadd.f32 %v2303_v21, %v2139_v10  ;;  %v901_v11 = vsel %vm369_vm0, %v900_v45, %v851_v24  ;;  %v963_v12 = vsel %vm369_vm0, %v851_v24, %v900_v45 }
  0x64   : > { %v1016_v58 = vadd.f32 %v984_v17, %v820_v46  ;;  %v1017_v53 = vadd.f32 %v985_v40, %v821_v47  ;;  %v1052_v57 = vmul.f32 %v4042_v35, %v963_v12  ;;  %v1053_v20 = vmul.f32 %v4042_v35, %v901_v11 }
  0x65   : > { %v4212_v50 = vadd.f32 %v2370_v41, %v2334_v18  ;;  %v4214_v51 = vadd.f32 %v2371_v44, %v2335_v56  ;;  %v1115_v39 = vrot.slane %v901_v11, 7  ;;  %v1164_v25 = vrot.slane %v963_v12, 7  ;;  %v4238_v56 = vld [vmem:[%s3970_s13 + $0x28] sm:$0xff] }
  0x66   : > { %v1084_v2 = vadd.f32 %v1052_v57, %v1016_v58  ;;  %v1085_v32 = vadd.f32 %v1053_v20, %v1017_v53  ;;  %v1248_v3 = vmul.f32 %v4079_v60, %v4045_v36  ;;  %v1249_v21 = vmul.f32 %v4079_v60, %v4048_v37  ;;  %5957 = vst [vmem:[#allocation13_spill] sm:$0xff] %v4238_v56  ;;  %v4247_v57 = vld [vmem:[%s3970_s13 + $0x20] sm:$0xff] }
  0x67   : > { %5955 = vst [vmem:[#allocation11_spill] sm:$0xff] %v4212_v50  ;;  %5956 = vst [vmem:[#allocation12_spill] sm:$0xff] %v4214_v51  ;;  %v2434_v33 = vpack.c.bf16 %v4214_v51, %v4212_v50  ;;  %v1165_v9 = vsel %vm369_vm0, %v1164_v25, %v1115_v39  ;;  %v1227_v41 = vsel %vm369_vm0, %v1115_v39, %v1164_v25 }
  0x68   : > { %v1512_v44 = vmul.f32 %v4085_v62, %v4073_v54  ;;  %v1280_v6 = vadd.f32 %v1248_v3, %v1084_v2  ;;  %v1281_v7 = vadd.f32 %v1249_v21, %v1085_v32  ;;  %v1316_v14 = vmul.f32 %v4082_v61, %v1227_v41  ;;  %5958 = vst [vmem:[#allocation14_spill] sm:$0xff] %v4247_v57 }
  0x69   : > { %v1317_v16 = vmul.f32 %v4082_v61, %v1165_v9  ;;  %3485 = vmatprep.mubr.msk.bf16.mxu0 %vm2473_vm1, %v2434_v33  ;;  %v1379_v10 = vrot.slane %v1165_v9, 7  ;;  %v1428_v24 = vrot.slane %v1227_v41, 7  ;;  %v1513_v45 = vmul.f32 %v4085_v62, %v4076_v55 }
  0x6a   : > { %v1776_v46 = vmul.f32 %v4117_v38, %v4091_v0  ;;  %v1348_v47 = vadd.f32 %v1316_v14, %v1280_v6  ;;  %v1777_v40 = vmul.f32 %v4117_v38, %v4094_v1  ;;  %v2040_v18 = vmul.f32 %v4143_v59, %v4105_v22 }
  0x6b   : > { %v1349_v17 = vadd.f32 %v1317_v16, %v1281_v7  ;;  %v1429_v11 = vsel %vm369_vm0, %v1428_v24, %v1379_v10  ;;  %v1491_v12 = vsel %vm369_vm0, %v1379_v10, %v1428_v24  ;;  %v2041_v58 = vmul.f32 %v4143_v59, %v4108_v23  ;;  %v5959_v24 = vld [vmem:[#allocation9_spill] sm:$0xff] }
  0x6c   : > { %v2304_v53 = vmul.f32 %v4167_v42, %v4129_v48  ;;  %v1544_v20 = vadd.f32 %v1512_v44, %v1348_v47  ;;  %v1580_v25 = vmul.f32 %v4088_v63, %v1491_v12  ;;  %v1581_v2 = vmul.f32 %v4088_v63, %v1429_v11 }
  0x6d   : > { %v1545_v39 = vadd.f32 %v1513_v45, %v1349_v17  ;;  %v1643_v32 = vrot.slane %v1429_v11, 7  ;;  %v1692_v3 = vrot.slane %v1491_v12, 7  ;;  %v2305_v21 = vmul.f32 %v4167_v42, %v4132_v49 }
  0x6e   : > { %v323_v33 = vrot.slane %v4238_v56, 7  ;;  %v1612_v9 = vadd.f32 %v1580_v25, %v1544_v20  ;;  %v374_v6 = vrot.slane %v4247_v57, 7  ;;  %v458_v48 = vmul.f32 %v4027_v28, %v4153_v8 }
  0x6f   : > { %v1613_v41 = vadd.f32 %v1581_v2, %v1545_v39  ;;  %v1693_v44 = vsel %vm369_vm0, %v1692_v3, %v1643_v32  ;;  %v1755_v7 = vsel %vm369_vm0, %v1643_v32, %v1692_v3  ;;  %v459_v14 = vmul.f32 %v4027_v28, %v4156_v13 }
  0x70   : > { %v722_v16 = vmul.f32 %v4033_v30, %v3985_v4  ;;  %v1808_v49 = vadd.f32 %v1776_v46, %v1612_v9  ;;  %v1844_v45 = vmul.f32 %v5959_v24, %v1755_v7  ;;  %v1845_v47 = vmul.f32 %v5959_v24, %v1693_v44 }
  0x71   : > { %v1809_v10 = vadd.f32 %v1777_v40, %v1613_v41  ;;  %v1907_v17 = vrot.slane %v1693_v44, 7  ;;  %v1956_v11 = vrot.slane %v1755_v7, 7  ;;  %v375_v12 = vsel %vm369_vm0, %v374_v6, %v323_v33 }
  0x72   : > { %v436_v20 = vsel %vm369_vm0, %v323_v33, %v374_v6  ;;  %v1876_v39 = vadd.f32 %v1844_v45, %v1808_v49  ;;  %v490_v2 = vadd.f32 %v458_v48, %v4247_v57  ;;  %v491_v32 = vadd.f32 %v459_v14, %v4238_v56 }
  0x73   : > { %v1877_v25 = vadd.f32 %v1845_v47, %v1809_v10  ;;  %v1957_v3 = vsel %vm369_vm0, %v1956_v11, %v1907_v17  ;;  %v2019_v46 = vsel %vm369_vm0, %v1907_v17, %v1956_v11  ;;  %v526_v40 = vmul.f32 %v4030_v29, %v436_v20 }
  0x74   : > { %v527_v9 = vmul.f32 %v4030_v29, %v375_v12  ;;  %v2072_v41 = vadd.f32 %v2040_v18, %v1876_v39  ;;  %v2108_v7 = vmul.f32 %v4148_v52, %v2019_v46  ;;  %v2109_v33 = vmul.f32 %v4148_v52, %v1957_v3 }
  0x75   : > { %v2073_v44 = vadd.f32 %v2041_v58, %v1877_v25  ;;  %v2171_v6 = vrot.slane %v1957_v3, 7  ;;  %v2220_v49 = vrot.slane %v2019_v46, 7  ;;  %v558_v10 = vadd.f32 %v526_v40, %v490_v2 }
  0x76   : > { %v559_v48 = vadd.f32 %v527_v9, %v491_v32  ;;  %v2140_v45 = vadd.f32 %v2108_v7, %v2072_v41  ;;  %v588_v47 = vrot.slane %v375_v12, 7  ;;  %v638_v51 = vrot.slane %v436_v20, 7 }
  0x77   : > { %v2141_v14 = vadd.f32 %v2109_v33, %v2073_v44  ;;  %v2221_v17 = vsel %vm369_vm0, %v2220_v49, %v2171_v6  ;;  %v2283_v11 = vsel %vm369_vm0, %v2171_v6, %v2220_v49  ;;  %v723_v18 = vmul.f32 %v4033_v30, %v3988_v5 }
  0x78   : > { %v754_v58 = vadd.f32 %v722_v16, %v558_v10  ;;  %v2336_v39 = vadd.f32 %v2304_v53, %v2140_v45  ;;  %v2372_v50 = vmul.f32 %v4172_v43, %v2283_v11  ;;  %v2373_v3 = vmul.f32 %v4172_v43, %v2221_v17 }
  0x79   : > { %v2337_v25 = vadd.f32 %v2305_v21, %v2141_v14  ;;  %v639_v2 = vsel %vm369_vm0, %v638_v51, %v588_v47  ;;  %v700_v32 = vsel %vm369_vm0, %v588_v47, %v638_v51  ;;  %v755_v12 = vadd.f32 %v723_v18, %v559_v48 }
  0x7a   : > { %v986_v20 = vmul.f32 %v4039_v34, %v3998_v15  ;;  %v4285_v46 = vadd.f32 %v2372_v50, %v2336_v39  ;;  %v790_v16 = vmul.f32 %v4036_v31, %v700_v32  ;;  %v791_v53 = vmul.f32 %v4036_v31, %v639_v2 }
  0x7b   : > { %v4287_v40 = vadd.f32 %v2373_v3, %v2337_v25  ;;  %v852_v21 = vrot.slane %v639_v2, 7  ;;  %v902_v9 = vrot.slane %v700_v32, 7  ;;  %v987_v41 = vmul.f32 %v4039_v34, %v4004_v19 }
  0x7c   : > { %5960 = vst [vmem:[#allocation9_spill] sm:$0xff] %v4285_v46  ;;  %v1250_v51 = vmul.f32 %v4079_v60, %v4021_v26  ;;  %v822_v7 = vadd.f32 %v790_v16, %v754_v58  ;;  %v823_v50 = vadd.f32 %v791_v53, %v755_v12  ;;  %v1251_v33 = vmul.f32 %v4079_v60, %v4024_v27  ;;  %v4317_v12 = vld [vmem:[%s3970_s13 + $0x30] sm:$0xff] }
  0x7d   : > { %5961 = vst [vmem:[#allocation15_spill] sm:$0xff] %v4287_v40  ;;  %v2435_v44 = vpack.c.bf16 %v4287_v40, %v4285_v46  ;;  %v903_v6 = vsel %vm369_vm0, %v902_v9, %v852_v21  ;;  %v964_v49 = vsel %vm369_vm0, %v852_v21, %v902_v9  ;;  %v1514_v10 = vmul.f32 %v4085_v62, %v4045_v36 }
  0x7e   : > { %v1515_v48 = vmul.f32 %v4085_v62, %v4048_v37  ;;  %v1018_v45 = vadd.f32 %v986_v20, %v822_v7  ;;  %v1019_v14 = vadd.f32 %v987_v41, %v823_v50  ;;  %v1054_v47 = vmul.f32 %v4042_v35, %v964_v49  ;;  %v4320_v20 = vld [vmem:[%s3970_s13 + $0x38] sm:$0xff] }
  0x7f   : > { %3486 = vmatmul.mubr.msk.bf16.vlgmr.msra.gmra.mrb[0].mxu0 %vm2473_vm1, %v2435_v44  ;;  %v1055_v17 = vmul.f32 %v4042_v35, %v903_v6  ;;  %v1116_v11 = vrot.slane %v903_v6, 7  ;;  %v1166_v18 = vrot.slane %v964_v49, 7  ;;  %v1778_v58 = vmul.f32 %v4117_v38, %v4073_v54 }
  0x80   : > { %v1779_v39 = vmul.f32 %v4117_v38, %v4076_v55  ;;  %v1086_v25 = vadd.f32 %v1054_v47, %v1018_v45  ;;  %v2042_v2 = vmul.f32 %v4143_v59, %v4091_v0  ;;  %v2043_v32 = vmul.f32 %v4143_v59, %v4094_v1 }
  0x81   : > { %v1087_v3 = vadd.f32 %v1055_v17, %v1019_v14  ;;  %v1167_v16 = vsel %vm369_vm0, %v1166_v18, %v1116_v11  ;;  %v1228_v53 = vsel %vm369_vm0, %v1116_v11, %v1166_v18  ;;  %v4326_v21 = vmul.f32 %v4167_v42, %v4105_v22 }
  0x82   : > { %v4330_v9 = vmul.f32 %v4167_v42, %v4108_v23  ;;  %v1282_v41 = vadd.f32 %v1250_v51, %v1086_v25  ;;  %v1318_v7 = vmul.f32 %v4082_v61, %v1228_v53  ;;  %v1319_v50 = vmul.f32 %v4082_v61, %v1167_v16 }
  0x83   : > { %v1283_v44 = vadd.f32 %v1251_v33, %v1087_v3  ;;  %v1380_v6 = vrot.slane %v1167_v16, 7  ;;  %v1430_v49 = vrot.slane %v1228_v53, 7  ;;  %v324_v45 = vrot.slane %v4320_v20, 7 }
  0x84   : > { %v376_v14 = vrot.slane %v4317_v12, 7  ;;  %v1350_v47 = vadd.f32 %v1318_v7, %v1282_v41  ;;  %v460_v22 = vmul.f32 %v4027_v28, %v4247_v57  ;;  %v461_v23 = vmul.f32 %v4027_v28, %v4238_v56 }
  0x85   : > { %v1351_v17 = vadd.f32 %v1319_v50, %v1283_v44  ;;  %v1431_v51 = vsel %vm369_vm0, %v1430_v49, %v1380_v6  ;;  %v1492_v33 = vsel %vm369_vm0, %v1380_v6, %v1430_v49 }
  0x86   : > { %v377_v11 = vsel %vm369_vm0, %v376_v14, %v324_v45  ;;  %v437_v18 = vsel %vm369_vm0, %v324_v45, %v376_v14  ;;  %v1546_v25 = vadd.f32 %v1514_v10, %v1350_v47  ;;  %v1582_v16 = vmul.f32 %v4088_v63, %v1492_v33 }
  0x87   : > { %v1547_v3 = vadd.f32 %v1515_v48, %v1351_v17  ;;  %v1583_v53 = vmul.f32 %v4088_v63, %v1431_v51  ;;  %v1644_v41 = vrot.slane %v1431_v51, 7  ;;  %v1694_v44 = vrot.slane %v1492_v33, 7 }
  0x88   : > { %v492_v7 = vadd.f32 %v460_v22, %v4317_v12  ;;  %v493_v50 = vadd.f32 %v461_v23, %v4320_v20  ;;  %v1614_v40 = vadd.f32 %v1582_v16, %v1546_v25  ;;  %v528_v6 = vmul.f32 %v4030_v29, %v437_v18 }
  0x89   : > { %v1615_v46 = vadd.f32 %v1583_v53, %v1547_v3  ;;  %v529_v49 = vmul.f32 %v4030_v29, %v377_v11  ;;  %v1695_v45 = vsel %vm369_vm0, %v1694_v44, %v1644_v41  ;;  %v1756_v10 = vsel %vm369_vm0, %v1644_v41, %v1694_v44 }
  0x8a   : > { %v589_v48 = vrot.slane %v377_v11, 7  ;;  %v640_v14 = vrot.slane %v437_v18, 7  ;;  %v1810_v47 = vadd.f32 %v1778_v58, %v1614_v40  ;;  %v1846_v51 = vmul.f32 %v5959_v24, %v1756_v10 }
  0x8b   : > { %v1811_v17 = vadd.f32 %v1779_v39, %v1615_v46  ;;  %v1847_v22 = vmul.f32 %v5959_v24, %v1695_v45  ;;  %v1908_v33 = vrot.slane %v1695_v45, 7  ;;  %v1958_v23 = vrot.slane %v1756_v10, 7 }
  0x8c   : > { %v560_v25 = vadd.f32 %v528_v6, %v492_v7  ;;  %v561_v3 = vadd.f32 %v529_v49, %v493_v50  ;;  %v1878_v16 = vadd.f32 %v1846_v51, %v1810_v47  ;;  %v641_v56 = vsel %vm369_vm0, %v640_v14, %v589_v48 }
  0x8d   : > { %v1879_v53 = vadd.f32 %v1847_v22, %v1811_v17  ;;  %v701_v29 = vsel %vm369_vm0, %v589_v48, %v640_v14  ;;  %v1959_v41 = vsel %vm369_vm0, %v1958_v23, %v1908_v33  ;;  %v2020_v11 = vsel %vm369_vm0, %v1908_v33, %v1958_v23 }
  0x8e   : > { %v724_v46 = vmul.f32 %v4033_v30, %v4153_v8  ;;  %v725_v40 = vmul.f32 %v4033_v30, %v4156_v13  ;;  %v2074_v58 = vadd.f32 %v2042_v2, %v1878_v16  ;;  %v2110_v18 = vmul.f32 %v4148_v52, %v2020_v11 }
  0x8f   : > { %v2075_v39 = vadd.f32 %v2043_v32, %v1879_v53  ;;  %v2111_v44 = vmul.f32 %v4148_v52, %v1959_v41  ;;  %v2172_v7 = vrot.slane %v1959_v41, 7  ;;  %v2222_v50 = vrot.slane %v2020_v11, 7 }
  0x90   : > { %v756_v6 = vadd.f32 %v724_v46, %v560_v25  ;;  %v757_v49 = vadd.f32 %v725_v40, %v561_v3  ;;  %v2142_v45 = vadd.f32 %v2110_v18, %v2074_v58  ;;  %v792_v48 = vmul.f32 %v4036_v31, %v701_v29 }
  0x91   : > { %v2143_v10 = vadd.f32 %v2111_v44, %v2075_v39  ;;  %v793_v14 = vmul.f32 %v4036_v31, %v641_v56  ;;  %v2223_v47 = vsel %vm369_vm0, %v2222_v50, %v2172_v7  ;;  %v2284_v17 = vsel %vm369_vm0, %v2172_v7, %v2222_v50 }
  0x92   : > { %v853_v2 = vrot.slane %v641_v56, 7  ;;  %v904_v32 = vrot.slane %v701_v29, 7  ;;  %v2338_v51 = vadd.f32 %v4326_v21, %v2142_v45  ;;  %v2374_v33 = vmul.f32 %v4172_v43, %v2284_v17 }
  0x93   : > { %v2339_v22 = vadd.f32 %v4330_v9, %v2143_v10  ;;  %v2375_v23 = vmul.f32 %v4172_v43, %v2223_v47  ;;  %v824_v25 = vadd.f32 %v792_v48, %v756_v6  ;;  %v825_v3 = vadd.f32 %v793_v14, %v757_v49 }
  0x94   : > { %v905_v16 = vsel %vm369_vm0, %v904_v32, %v853_v2  ;;  %v965_v53 = vsel %vm369_vm0, %v853_v2, %v904_v32  ;;  %v4374_v41 = vadd.f32 %v2374_v33, %v2338_v51  ;;  %v988_v29 = vmul.f32 %v4039_v34, %v3985_v4 }
  0x95   : > { %v4376_v11 = vadd.f32 %v2375_v23, %v2339_v22  ;;  %v989_v56 = vmul.f32 %v4039_v34, %v3988_v5  ;;  %v1056_v21 = vmul.f32 %v4042_v35, %v965_v53  ;;  %v1057_v9 = vmul.f32 %v4042_v35, %v905_v16 }
  0x96   : > { %5962 = vst [vmem:[#allocation16_spill] sm:$0xff] %v4374_v41  ;;  %v1117_v46 = vrot.slane %v905_v16, 7  ;;  %v1168_v40 = vrot.slane %v965_v53, 7  ;;  %v1020_v39 = vadd.f32 %v988_v29, %v824_v25  ;;  %v1252_v44 = vmul.f32 %v4079_v60, %v3998_v15  ;;  %v4406_v25 = vld [vmem:[%s3970_s13 + $0x48] sm:$0xff] }
  0x97   : > { %5963 = vst [vmem:[#allocation17_spill] sm:$0xff] %v4376_v11  ;;  %v2436_v58 = vpack.c.bf16 %v4376_v11, %v4374_v41  ;;  %v1021_v18 = vadd.f32 %v989_v56, %v825_v3  ;;  %v1253_v6 = vmul.f32 %v4079_v60, %v4004_v19  ;;  %v1516_v49 = vmul.f32 %v4085_v62, %v4021_v26  ;;  %v4415_v56 = vld [vmem:[%s3970_s13 + $0x40] sm:$0xff] }
  0x98   : > { %v1169_v7 = vsel %vm369_vm0, %v1168_v40, %v1117_v46  ;;  %v1229_v50 = vsel %vm369_vm0, %v1117_v46, %v1168_v40  ;;  %v1088_v45 = vadd.f32 %v1056_v21, %v1020_v39  ;;  %v1517_v2 = vmul.f32 %v4085_v62, %v4024_v27 }
  0x99   : > { %3489 = vmatprep.mubr.msk.bf16.mxu0 %vm2473_vm1, %v2436_v58  ;;  %v1089_v10 = vadd.f32 %v1057_v9, %v1021_v18  ;;  %v1320_v48 = vmul.f32 %v4082_v61, %v1229_v50  ;;  %v1321_v14 = vmul.f32 %v4082_v61, %v1169_v7  ;;  %v1381_v47 = vrot.slane %v1169_v7, 7 }
  0x9a   : > { %v1432_v17 = vrot.slane %v1229_v50, 7  ;;  %v1780_v32 = vmul.f32 %v4117_v38, %v4045_v36  ;;  %v1284_v51 = vadd.f32 %v1252_v44, %v1088_v45  ;;  %v1781_v33 = vmul.f32 %v4117_v38, %v4048_v37 }
  0x9b   : > { %v1285_v22 = vadd.f32 %v1253_v6, %v1089_v10  ;;  %v2044_v23 = vmul.f32 %v4143_v59, %v4073_v54  ;;  %v2045_v53 = vmul.f32 %v4143_v59, %v4076_v55  ;;  %v2308_v29 = vmul.f32 %v4167_v42, %v4091_v0 }
  0x9c   : > { %v1433_v3 = vsel %vm369_vm0, %v1432_v17, %v1381_v47  ;;  %v1493_v16 = vsel %vm369_vm0, %v1381_v47, %v1432_v17  ;;  %v1352_v21 = vadd.f32 %v1320_v48, %v1284_v51  ;;  %v2309_v18 = vmul.f32 %v4167_v42, %v4094_v1 }
  0x9d   : > { %v1353_v9 = vadd.f32 %v1321_v14, %v1285_v22  ;;  %v1584_v46 = vmul.f32 %v4088_v63, %v1493_v16  ;;  %v1585_v40 = vmul.f32 %v4088_v63, %v1433_v3  ;;  %v1645_v58 = vrot.slane %v1433_v3, 7 }
  0x9e   : > { %v1696_v39 = vrot.slane %v1493_v16, 7  ;;  %v325_v44 = vrot.slane %v4406_v25, 7  ;;  %v1548_v7 = vadd.f32 %v1516_v49, %v1352_v21  ;;  %v378_v6 = vrot.slane %v4415_v56, 7 }
  0x9f   : > { %v1549_v50 = vadd.f32 %v1517_v2, %v1353_v9  ;;  %v462_v0 = vmul.f32 %v4027_v28, %v4317_v12  ;;  %v463_v48 = vmul.f32 %v4027_v28, %v4320_v20  ;;  %v726_v14 = vmul.f32 %v4033_v30, %v4247_v57  ;;  %v5965_v57 = vld [vmem:[#allocation13_spill] sm:$0xff] }
  0xa0   : > { %v1697_v45 = vsel %vm369_vm0, %v1696_v39, %v1645_v58  ;;  %v1757_v10 = vsel %vm369_vm0, %v1645_v58, %v1696_v39  ;;  %v1616_v1 = vadd.f32 %v1584_v46, %v1548_v7  ;;  %v379_v22 = vsel %vm369_vm0, %v378_v6, %v325_v44 }
  0xa1   : > { %v1617_v47 = vadd.f32 %v1585_v40, %v1549_v50  ;;  %v1848_v49 = vmul.f32 %v5959_v24, %v1757_v10  ;;  %v1849_v17 = vmul.f32 %v5959_v24, %v1697_v45  ;;  %v1909_v2 = vrot.slane %v1697_v45, 7  ;;  %v5964_v40 = vld [vmem:[#allocation8_spill] sm:$0xff] }
  0xa2   : > { %v1960_v51 = vrot.slane %v1757_v10, 7  ;;  %v438_v3 = vsel %vm369_vm0, %v325_v44, %v378_v6  ;;  %v1812_v16 = vadd.f32 %v1780_v32, %v1616_v1  ;;  %v494_v9 = vadd.f32 %v462_v0, %v4415_v56 }
  0xa3   : > { %v1813_v21 = vadd.f32 %v1781_v33, %v1617_v47  ;;  %v495_v58 = vadd.f32 %v463_v48, %v4406_v25  ;;  %v530_v7 = vmul.f32 %v5964_v40, %v438_v3  ;;  %v531_v50 = vmul.f32 %v5964_v40, %v379_v22 }
  0xa4   : > { %v1961_v39 = vsel %vm369_vm0, %v1960_v51, %v1909_v2  ;;  %v2021_v46 = vsel %vm369_vm0, %v1909_v2, %v1960_v51  ;;  %v1880_v45 = vadd.f32 %v1848_v49, %v1812_v16  ;;  %v590_v47 = vrot.slane %v379_v22, 7 }
  0xa5   : > { %v1881_v10 = vadd.f32 %v1849_v17, %v1813_v21  ;;  %v2112_v11 = vmul.f32 %v4148_v52, %v2021_v46  ;;  %v2113_v44 = vmul.f32 %v4148_v52, %v1961_v39  ;;  %v2173_v32 = vrot.slane %v1961_v39, 7 }
  0xa6   : > { %v2224_v33 = vrot.slane %v2021_v46, 7  ;;  %v562_v6 = vadd.f32 %v530_v7, %v494_v9  ;;  %v563_v0 = vadd.f32 %v531_v50, %v495_v58  ;;  %v2076_v1 = vadd.f32 %v2044_v23, %v1880_v45 }
  0xa7   : > { %v2077_v48 = vadd.f32 %v2045_v53, %v1881_v10  ;;  %v642_v41 = vrot.slane %v438_v3, 7  ;;  %v727_v49 = vmul.f32 %v4033_v30, %v5965_v57  ;;  %v990_v22 = vmul.f32 %v4039_v34, %v4153_v8 }
  0xa8   : > { %v2225_v2 = vsel %vm369_vm0, %v2224_v33, %v2173_v32  ;;  %v2285_v51 = vsel %vm369_vm0, %v2173_v32, %v2224_v33  ;;  %v758_v17 = vadd.f32 %v726_v14, %v562_v6  ;;  %v2144_v16 = vadd.f32 %v2112_v11, %v2076_v1 }
  0xa9   : > { %v2145_v21 = vadd.f32 %v2113_v44, %v2077_v48  ;;  %v2376_v52 = vmul.f32 %v4172_v43, %v2285_v51  ;;  %v2377_v39 = vmul.f32 %v4172_v43, %v2225_v2  ;;  %v643_v9 = vsel %vm369_vm0, %v642_v41, %v590_v47 }
  0xaa   : > { %v702_v23 = vsel %vm369_vm0, %v590_v47, %v642_v41  ;;  %v759_v53 = vadd.f32 %v727_v49, %v563_v0  ;;  %v2340_v3 = vadd.f32 %v2308_v29, %v2144_v16  ;;  %v795_v14 = vmul.f32 %v4036_v31, %v643_v9 }
  0xab   : > { %v2341_v58 = vadd.f32 %v2309_v18, %v2145_v21  ;;  %v794_v46 = vmul.f32 %v4036_v31, %v702_v23  ;;  %v854_v11 = vrot.slane %v643_v9, 7  ;;  %v906_v7 = vrot.slane %v702_v23, 7  ;;  %v4487_v9 = vld [vmem:[%s3970_s13 + $0x50] sm:$0xff]  ;;  %v4490_v23 = vld [vmem:[%s3970_s13 + $0x58] sm:$0xff] }
  0xac   : > { %v991_v50 = vmul.f32 %v4039_v34, %v4156_v13  ;;  %v1254_v45 = vmul.f32 %v4079_v60, %v3985_v4  ;;  %v4459_v10 = vadd.f32 %v2376_v52, %v2340_v3  ;;  %v827_v32 = vadd.f32 %v795_v14, %v759_v53 }
  0xad   : > { %v4461_v41 = vadd.f32 %v2377_v39, %v2341_v58  ;;  %v826_v44 = vadd.f32 %v794_v46, %v758_v17  ;;  %v907_v29 = vsel %vm369_vm0, %v906_v7, %v854_v11  ;;  %v966_v18 = vsel %vm369_vm0, %v854_v11, %v906_v7 }
  0xae   : > { %5966 = vst [vmem:[#allocation8_spill] sm:$0xff] %v4459_v10  ;;  %v1255_v33 = vmul.f32 %v4079_v60, %v3988_v5  ;;  %v1518_v6 = vmul.f32 %v4085_v62, %v3998_v15  ;;  %v1023_v52 = vadd.f32 %v991_v50, %v827_v32  ;;  %v1058_v1 = vmul.f32 %v4042_v35, %v966_v18 }
  0xaf   : > { %5967 = vst [vmem:[#allocation13_spill] sm:$0xff] %v4461_v41  ;;  %v2437_v0 = vpack.c.bf16 %v4461_v41, %v4459_v10  ;;  %v1022_v4 = vadd.f32 %v990_v22, %v826_v44  ;;  %v1059_v48 = vmul.f32 %v4042_v35, %v907_v29  ;;  %v1118_v47 = vrot.slane %v907_v29, 7 }
  0xb0   : > { %v1170_v2 = vrot.slane %v966_v18, 7  ;;  %v1519_v51 = vmul.f32 %v4085_v62, %v4004_v19  ;;  %v1782_v15 = vmul.f32 %v4117_v38, %v4021_v26  ;;  %v1783_v49 = vmul.f32 %v4117_v38, %v4024_v27 }
  0xb1   : > { %3490 = vmatmul.mubr.msk.bf16.gmra.mrb[4].mxu0 %vm2473_vm1, %v2437_v0  ;;  %v1090_v5 = vadd.f32 %v1058_v1, %v1022_v4  ;;  %v2046_v17 = vmul.f32 %v4143_v59, %v4045_v36  ;;  %v1091_v16 = vadd.f32 %v1059_v48, %v1023_v52  ;;  %v2047_v19 = vmul.f32 %v4143_v59, %v4048_v37 }
  0xb2   : > { %v1171_v21 = vsel %vm369_vm0, %v1170_v2, %v1118_v47  ;;  %v1230_v39 = vsel %vm369_vm0, %v1118_v47, %v1170_v2  ;;  %v2310_v58 = vmul.f32 %v4167_v42, %v4073_v54  ;;  %v2311_v46 = vmul.f32 %v4167_v42, %v4076_v55 }
  0xb3   : > { %v1286_v53 = vadd.f32 %v1254_v45, %v1090_v5  ;;  %v1322_v26 = vmul.f32 %v4082_v61, %v1230_v39  ;;  %v1323_v27 = vmul.f32 %v4082_v61, %v1171_v21  ;;  %v1382_v22 = vrot.slane %v1171_v21, 7 }
  0xb4   : > { %v1287_v3 = vadd.f32 %v1255_v33, %v1091_v16  ;;  %v1434_v36 = vrot.slane %v1230_v39, 7  ;;  %v326_v37 = vrot.slane %v4490_v23, 7  ;;  %v380_v11 = vrot.slane %v4487_v9, 7 }
  0xb5   : > { %v1354_v14 = vadd.f32 %v1322_v26, %v1286_v53  ;;  %v464_v7 = vmul.f32 %v4027_v28, %v4415_v56  ;;  %v465_v32 = vmul.f32 %v4027_v28, %v4406_v25 }
  0xb6   : > { %v1355_v50 = vadd.f32 %v1323_v27, %v1287_v3  ;;  %v1435_v45 = vsel %vm369_vm0, %v1434_v36, %v1382_v22  ;;  %v1494_v44 = vsel %vm369_vm0, %v1382_v22, %v1434_v36  ;;  %v381_v4 = vsel %vm369_vm0, %v380_v11, %v326_v37 }
  0xb7   : > { %v1550_v54 = vadd.f32 %v1518_v6, %v1354_v14  ;;  %v1586_v29 = vmul.f32 %v4088_v63, %v1494_v44  ;;  %v1587_v55 = vmul.f32 %v4088_v63, %v1435_v45  ;;  %v1646_v18 = vrot.slane %v1435_v45, 7 }
  0xb8   : > { %v1551_v33 = vadd.f32 %v1519_v51, %v1355_v50  ;;  %v1698_v0 = vrot.slane %v1494_v44, 7  ;;  %v439_v52 = vsel %vm369_vm0, %v326_v37, %v380_v11  ;;  %v496_v48 = vadd.f32 %v464_v7, %v4487_v9 }
  0xb9   : > { %v1618_v1 = vadd.f32 %v1586_v29, %v1550_v54  ;;  %v497_v47 = vadd.f32 %v465_v32, %v4490_v23  ;;  %v532_v2 = vmul.f32 %v5964_v40, %v439_v52  ;;  %v533_v21 = vmul.f32 %v5964_v40, %v381_v4  ;;  %v5968_v54 = vld [vmem:[#allocation10_spill] sm:$0xff] }
  0xba   : > { %v1619_v5 = vadd.f32 %v1587_v55, %v1551_v33  ;;  %v1699_v6 = vsel %vm369_vm0, %v1698_v0, %v1646_v18  ;;  %v1758_v16 = vsel %vm369_vm0, %v1646_v18, %v1698_v0  ;;  %v591_v37 = vrot.slane %v381_v4, 7 }
  0xbb   : > { %v1814_v51 = vadd.f32 %v1782_v15, %v1618_v1  ;;  %v1850_v39 = vmul.f32 %v5959_v24, %v1758_v16  ;;  %v1851_v53 = vmul.f32 %v5959_v24, %v1699_v6  ;;  %v1910_v26 = vrot.slane %v1699_v6, 7 }
  0xbc   : > { %v1815_v27 = vadd.f32 %v1783_v49, %v1619_v5  ;;  %v1962_v22 = vrot.slane %v1758_v16, 7  ;;  %v564_v3 = vadd.f32 %v532_v2, %v496_v48  ;;  %v565_v36 = vadd.f32 %v533_v21, %v497_v47 }
  0xbd   : > { %v1882_v14 = vadd.f32 %v1850_v39, %v1814_v51  ;;  %v644_v11 = vrot.slane %v439_v52, 7  ;;  %v728_v7 = vmul.f32 %v4033_v30, %v4317_v12  ;;  %v729_v44 = vmul.f32 %v4033_v30, %v4320_v20 }
  0xbe   : > { %v1883_v50 = vadd.f32 %v1851_v53, %v1815_v27  ;;  %v1963_v45 = vsel %vm369_vm0, %v1962_v22, %v1910_v26  ;;  %v2022_v15 = vsel %vm369_vm0, %v1910_v26, %v1962_v22 }
  0xbf   : > { %v2078_v32 = vadd.f32 %v2046_v17, %v1882_v14  ;;  %v2114_v49 = vmul.f32 %v5968_v54, %v2022_v15  ;;  %v2115_v29 = vmul.f32 %v5968_v54, %v1963_v45  ;;  %v2174_v55 = vrot.slane %v1963_v45, 7 }
  0xc0   : > { %v2079_v18 = vadd.f32 %v2047_v19, %v1883_v50  ;;  %v2226_v33 = vrot.slane %v2022_v15, 7  ;;  %v645_v0 = vsel %vm369_vm0, %v644_v11, %v591_v37  ;;  %v703_v4 = vsel %vm369_vm0, %v591_v37, %v644_v11 }
  0xc1   : > { %v2146_v52 = vadd.f32 %v2114_v49, %v2078_v32  ;;  %v760_v1 = vadd.f32 %v728_v7, %v564_v3  ;;  %v761_v48 = vadd.f32 %v729_v44, %v565_v36  ;;  %v796_v47 = vmul.f32 %v4036_v31, %v703_v4  ;;  %v5970_v3 = vld [vmem:[#allocation14_spill] sm:$0xff] }
  0xc2   : > { %v2147_v2 = vadd.f32 %v2115_v29, %v2079_v18  ;;  %v2227_v5 = vsel %vm369_vm0, %v2226_v33, %v2174_v55  ;;  %v2286_v17 = vsel %vm369_vm0, %v2174_v55, %v2226_v33  ;;  %v797_v6 = vmul.f32 %v4036_v31, %v645_v0  ;;  %v4553_v29 = vld [vmem:[%s3970_s13] sm:$0xff]  ;;  %v4558_v33 = vld [vmem:[%s3970_s13 + $0x8] sm:$0xff] }
  0xc3   : > { %v2342_v16 = vadd.f32 %v2310_v58, %v2146_v52  ;;  %v2378_v19 = vmul.f32 %v4172_v43, %v2286_v17  ;;  %v2379_v21 = vmul.f32 %v4172_v43, %v2227_v5  ;;  %v828_v51 = vadd.f32 %v796_v47, %v760_v1  ;;  %v4571_v47 = vld [vmem:[%s3970_s13 + $0xf8] sm:$0xff]  ;;  %v4576_v5 = vld [vmem:[%s3970_s13 + $0xe0] sm:$0xff] }
  0xc4   : > { %v2343_v39 = vadd.f32 %v2311_v46, %v2147_v2  ;;  %v829_v53 = vadd.f32 %v797_v6, %v761_v48  ;;  %v855_v26 = vrot.slane %v645_v0, 7  ;;  %v908_v27 = vrot.slane %v703_v4, 7  ;;  %v4563_v4 = vld [vmem:[%s3970_s13 + $0xf0] sm:$0xff]  ;;  %v4581_v6 = vld [vmem:[%s3970_s13 + $0x68] sm:$0xff] }
  0xc5   : > { %v4534_v22 = vadd.f32 %v2378_v19, %v2342_v16  ;;  %v992_v36 = vmul.f32 %v4039_v34, %v5970_v3  ;;  %v993_v14 = vmul.f32 %v4039_v34, %v5965_v57  ;;  %v1256_v58 = vmul.f32 %v4079_v60, %v4153_v8 }
  0xc6   : > { %v4542_v37 = vadd.f32 %v2379_v21, %v2343_v39  ;;  %v909_v46 = vsel %vm369_vm0, %v908_v27, %v855_v26  ;;  %v967_v11 = vsel %vm369_vm0, %v855_v26, %v908_v27  ;;  %v1257_v7 = vmul.f32 %v4079_v60, %v4156_v13  ;;  %v4586_v39 = vld [vmem:[%s3970_s13 + $0x60] sm:$0xff]  ;;  %v4589_v27 = vld [vmem:[%s3970_s13 + $0xe8] sm:$0xff] }
  0xc7   : > { %5969 = vst [vmem:[#allocation10_spill] sm:$0xff] %v4534_v22  ;;  %v1024_v50 = vadd.f32 %v992_v36, %v828_v51  ;;  %v1025_v45 = vadd.f32 %v993_v14, %v829_v53  ;;  %v1060_v15 = vmul.f32 %v4042_v35, %v967_v11  ;;  %v1061_v44 = vmul.f32 %v4042_v35, %v909_v46  ;;  %v3683_v14 = vld [vmem:[%s3970_s13 + $0xd0] sm:$0xff] }
  0xc8   : > { %5971 = vst [vmem:[#allocation14_spill] sm:$0xff] %v4542_v37  ;;  %v2438_v8 = vpack.c.bf16 %v4542_v37, %v4534_v22  ;;  %v1119_v32 = vrot.slane %v909_v46, 7  ;;  %v1172_v49 = vrot.slane %v967_v11, 7  ;;  %v1520_v55 = vmul.f32 %v4553_v29, %v4085_v62 }
  0xc9   : > { %v1092_v13 = vadd.f32 %v1060_v15, %v1024_v50  ;;  %v1093_v18 = vadd.f32 %v1061_v44, %v1025_v45  ;;  %v1521_v0 = vmul.f32 %v4558_v33, %v4085_v62  ;;  %v1784_v52 = vmul.f32 %v4563_v4, %v4117_v38 }
  0xca   : > { %3493 = vmatprep.mubr.msk.bf16.mxu0 %vm2473_vm1, %v2438_v8  ;;  %v1173_v1 = vsel %vm369_vm0, %v1172_v49, %v1119_v32  ;;  %v1231_v48 = vsel %vm369_vm0, %v1119_v32, %v1172_v49  ;;  %v1785_v2 = vmul.f32 %v4571_v47, %v4117_v38  ;;  %v2048_v17 = vmul.f32 %v4576_v5, %v4143_v59 }
  0xcb   : > { %v1288_v16 = vadd.f32 %v1256_v58, %v1092_v13  ;;  %v1289_v19 = vadd.f32 %v1257_v7, %v1093_v18  ;;  %v1324_v21 = vmul.f32 %v4082_v61, %v1231_v48  ;;  %v1325_v51 = vmul.f32 %v4082_v61, %v1173_v1  ;;  %v3684_v58 = vld [vmem:[%s3970_s13 + $0xd8] sm:$0xff] }
  0xcc   : > { %v1383_v53 = vrot.slane %v1173_v1, 7  ;;  %v1436_v26 = vrot.slane %v1231_v48, 7  ;;  %v2049_v36 = vmul.f32 %v4589_v27, %v4143_v59  ;;  %v2312_v46 = vmul.f32 %v3683_v14, %v4167_v42 }
  0xcd   : > { %v1356_v11 = vadd.f32 %v1324_v21, %v1288_v16  ;;  %v1357_v50 = vadd.f32 %v1325_v51, %v1289_v19  ;;  %v2313_v7 = vmul.f32 %v3684_v58, %v4167_v42  ;;  %v327_v45 = vrot.slane %v4581_v6, 7 }
  0xce   : > { %v1437_v15 = vsel %vm369_vm0, %v1436_v26, %v1383_v53  ;;  %v1495_v44 = vsel %vm369_vm0, %v1383_v53, %v1436_v26  ;;  %v382_v8 = vrot.slane %v4586_v39, 7  ;;  %v466_v32 = vmul.f32 %v4027_v28, %v4487_v9 }
  0xcf   : > { %v1552_v49 = vadd.f32 %v1520_v55, %v1356_v11  ;;  %v1553_v13 = vadd.f32 %v1521_v0, %v1357_v50  ;;  %v1588_v18 = vmul.f32 %v4088_v63, %v1495_v44  ;;  %v1589_v1 = vmul.f32 %v4088_v63, %v1437_v15 }
  0xd0   : > { %v1647_v48 = vrot.slane %v1437_v15, 7  ;;  %v1700_v16 = vrot.slane %v1495_v44, 7  ;;  %v383_v19 = vsel %vm369_vm0, %v382_v8, %v327_v45  ;;  %v440_v21 = vsel %vm369_vm0, %v327_v45, %v382_v8 }
  0xd1   : > { %v1620_v51 = vadd.f32 %v1588_v18, %v1552_v49  ;;  %v1621_v14 = vadd.f32 %v1589_v1, %v1553_v13  ;;  %v467_v53 = vmul.f32 %v4027_v28, %v4490_v23  ;;  %v498_v26 = vadd.f32 %v466_v32, %v4586_v39 }
  0xd2   : > { %v1701_v55 = vsel %vm369_vm0, %v1700_v16, %v1647_v48  ;;  %v1759_v0 = vsel %vm369_vm0, %v1647_v48, %v1700_v16  ;;  %v534_v11 = vmul.f32 %v5964_v40, %v440_v21  ;;  %v535_v50 = vmul.f32 %v5964_v40, %v383_v19 }
  0xd3   : > { %v1816_v58 = vadd.f32 %v1784_v52, %v1620_v51  ;;  %v1817_v15 = vadd.f32 %v1785_v2, %v1621_v14  ;;  %v1852_v44 = vmul.f32 %v5959_v24, %v1759_v0  ;;  %v1853_v45 = vmul.f32 %v5959_v24, %v1701_v55 }
  0xd4   : > { %v1911_v8 = vrot.slane %v1701_v55, 7  ;;  %v1964_v49 = vrot.slane %v1759_v0, 7  ;;  %v499_v13 = vadd.f32 %v467_v53, %v4581_v6  ;;  %v566_v18 = vadd.f32 %v534_v11, %v498_v26 }
  0xd5   : > { %v1884_v32 = vadd.f32 %v1852_v44, %v1816_v58  ;;  %v1885_v1 = vadd.f32 %v1853_v45, %v1817_v15  ;;  %v592_v37 = vrot.slane %v383_v19, 7  ;;  %v646_v22 = vrot.slane %v440_v21, 7 }
  0xd6   : > { %v1965_v48 = vsel %vm369_vm0, %v1964_v49, %v1911_v8  ;;  %v2023_v16 = vsel %vm369_vm0, %v1911_v8, %v1964_v49  ;;  %v567_v41 = vadd.f32 %v535_v50, %v499_v13  ;;  %v730_v52 = vmul.f32 %v4033_v30, %v4415_v56 }
  0xd7   : > { %v2080_v2 = vadd.f32 %v2048_v17, %v1884_v32  ;;  %v2081_v51 = vadd.f32 %v2049_v36, %v1885_v1  ;;  %v2116_v14 = vmul.f32 %v5968_v54, %v2023_v16  ;;  %v2117_v55 = vmul.f32 %v5968_v54, %v1965_v48 }
  0xd8   : > { %v2175_v53 = vrot.slane %v1965_v48, 7  ;;  %v2228_v26 = vrot.slane %v2023_v16, 7  ;;  %v647_v0 = vsel %vm369_vm0, %v646_v22, %v592_v37  ;;  %v704_v19 = vsel %vm369_vm0, %v592_v37, %v646_v22 }
  0xd9   : > { %v2148_v21 = vadd.f32 %v2116_v14, %v2080_v2  ;;  %v2149_v11 = vadd.f32 %v2117_v55, %v2081_v51  ;;  %v731_v50 = vmul.f32 %v4033_v30, %v4406_v25  ;;  %v762_v58 = vadd.f32 %v730_v52, %v566_v18 }
  0xda   : > { %v2229_v15 = vsel %vm369_vm0, %v2228_v26, %v2175_v53  ;;  %v2287_v17 = vsel %vm369_vm0, %v2175_v53, %v2228_v26  ;;  %v798_v36 = vmul.f32 %v4036_v31, %v704_v19  ;;  %v799_v44 = vmul.f32 %v4036_v31, %v647_v0 }
  0xdb   : > { %v2344_v45 = vadd.f32 %v2312_v46, %v2148_v21  ;;  %v2345_v8 = vadd.f32 %v2313_v7, %v2149_v11  ;;  %v2380_v49 = vmul.f32 %v4172_v43, %v2287_v17  ;;  %v2381_v22 = vmul.f32 %v4172_v43, %v2229_v15 }
  0xdc   : > { %v763_v37 = vadd.f32 %v731_v50, %v567_v41  ;;  %v830_v13 = vadd.f32 %v798_v36, %v762_v58  ;;  %v856_v32 = vrot.slane %v647_v0, 7  ;;  %v910_v1 = vrot.slane %v704_v19, 7  ;;  %v4658_v58 = vld [vmem:[%s3970_s13 + $0x18] sm:$0xff] }
  0xdd   : > { %v4633_v48 = vadd.f32 %v2380_v49, %v2344_v45  ;;  %v4635_v18 = vadd.f32 %v2381_v22, %v2345_v8  ;;  %v994_v16 = vmul.f32 %v4039_v34, %v4317_v12  ;;  %v995_v46 = vmul.f32 %v4039_v34, %v4320_v20  ;;  %v4669_v8 = vld [vmem:[%s3970_s13 + $0x78] sm:$0xff] }
  0xde   : > { %v831_v7 = vadd.f32 %v799_v44, %v763_v37  ;;  %v911_v52 = vsel %vm369_vm0, %v910_v1, %v856_v32  ;;  %v968_v41 = vsel %vm369_vm0, %v856_v32, %v910_v1  ;;  %v1258_v2 = vmul.f32 %v4079_v60, %v5970_v3  ;;  %v4653_v3 = vld [vmem:[%s3970_s13 + $0x10] sm:$0xff] }
  0xdf   : > { %5972 = vst [vmem:[#allocation18_spill] sm:$0xff] %v4633_v48  ;;  %5973 = vst [vmem:[#allocation19_spill] sm:$0xff] %v4635_v18  ;;  %v2439_v51 = vpack.c.bf16 %v4635_v18, %v4633_v48  ;;  %v1026_v14 = vadd.f32 %v994_v16, %v830_v13  ;;  %v1062_v55 = vmul.f32 %v4042_v35, %v968_v41  ;;  %v1120_v0 = vrot.slane %v911_v52, 7  ;;  %v4674_v32 = vld [vmem:[%s3970_s13 + $0x70] sm:$0xff] }
  0xe0   : > { %v1063_v53 = vmul.f32 %v4042_v35, %v911_v52  ;;  %v1027_v26 = vadd.f32 %v995_v46, %v831_v7  ;;  %v1174_v19 = vrot.slane %v968_v41, 7  ;;  %v1259_v21 = vmul.f32 %v4079_v60, %v5965_v57 }
  0xe1   : > { %3494 = vmatmul.mubr.msk.bf16.gmra.mrb[8].mxu0 %vm2473_vm1, %v2439_v51  ;;  %v1094_v11 = vadd.f32 %v1062_v55, %v1026_v14  ;;  %v1522_v50 = vmul.f32 %v4653_v3, %v4085_v62  ;;  %v1523_v15 = vmul.f32 %v4658_v58, %v4085_v62  ;;  %v1786_v17 = vmul.f32 %v4553_v29, %v4117_v38 }
  0xe2   : > { %v1095_v36 = vadd.f32 %v1063_v53, %v1027_v26  ;;  %v1175_v57 = vsel %vm369_vm0, %v1174_v19, %v1120_v0  ;;  %v1232_v44 = vsel %vm369_vm0, %v1120_v0, %v1174_v19  ;;  %v1787_v45 = vmul.f32 %v4558_v33, %v4117_v38 }
  0xe3   : > { %v1290_v49 = vadd.f32 %v1258_v2, %v1094_v11  ;;  %v1326_v22 = vmul.f32 %v4082_v61, %v1232_v44  ;;  %v1327_v37 = vmul.f32 %v4082_v61, %v1175_v57  ;;  %v1384_v13 = vrot.slane %v1175_v57, 7 }
  0xe4   : > { %v1291_v1 = vadd.f32 %v1259_v21, %v1095_v36  ;;  %v1438_v16 = vrot.slane %v1232_v44, 7  ;;  %v2050_v46 = vmul.f32 %v4563_v4, %v4143_v59  ;;  %v2051_v7 = vmul.f32 %v4571_v47, %v4143_v59 }
  0xe5   : > { %v1358_v52 = vadd.f32 %v1326_v22, %v1290_v49  ;;  %v2314_v41 = vmul.f32 %v4576_v5, %v4167_v42  ;;  %v2315_v2 = vmul.f32 %v4589_v27, %v4167_v42  ;;  %v328_v51 = vrot.slane %v4669_v8, 7 }
  0xe6   : > { %v1359_v14 = vadd.f32 %v1327_v37, %v1291_v1  ;;  %v1439_v55 = vsel %vm369_vm0, %v1438_v16, %v1384_v13  ;;  %v1496_v53 = vsel %vm369_vm0, %v1384_v13, %v1438_v16  ;;  %v384_v26 = vrot.slane %v4674_v32, 7 }
  0xe7   : > { %v1554_v0 = vadd.f32 %v1522_v50, %v1358_v52  ;;  %v1590_v19 = vmul.f32 %v4088_v63, %v1496_v53  ;;  %v1591_v21 = vmul.f32 %v4088_v63, %v1439_v55  ;;  %v1648_v11 = vrot.slane %v1439_v55, 7 }
  0xe8   : > { %v1555_v36 = vadd.f32 %v1523_v15, %v1359_v14  ;;  %v1702_v5 = vrot.slane %v1496_v53, 7  ;;  %v385_v57 = vsel %vm369_vm0, %v384_v26, %v328_v51  ;;  %v441_v27 = vsel %vm369_vm0, %v328_v51, %v384_v26 }
  0xe9   : > { %v1622_v44 = vadd.f32 %v1590_v19, %v1554_v0  ;;  %v468_v49 = vmul.f32 %v4027_v28, %v4586_v39  ;;  %v469_v22 = vmul.f32 %v4027_v28, %v4581_v6  ;;  %v536_v50 = vmul.f32 %v5964_v40, %v441_v27 }
  0xea   : > { %v1623_v37 = vadd.f32 %v1591_v21, %v1555_v36  ;;  %v1703_v13 = vsel %vm369_vm0, %v1702_v5, %v1648_v11  ;;  %v1760_v1 = vsel %vm369_vm0, %v1648_v11, %v1702_v5  ;;  %v537_v15 = vmul.f32 %v5964_v40, %v385_v57 }
  0xeb   : > { %v1818_v16 = vadd.f32 %v1786_v17, %v1622_v44  ;;  %v1854_v52 = vmul.f32 %v5959_v24, %v1760_v1  ;;  %v1855_v51 = vmul.f32 %v5959_v24, %v1703_v13  ;;  %v1912_v14 = vrot.slane %v1703_v13, 7 }
  0xec   : > { %v1819_v55 = vadd.f32 %v1787_v45, %v1623_v37  ;;  %v1966_v53 = vrot.slane %v1760_v1, 7  ;;  %v500_v26 = vadd.f32 %v468_v49, %v4674_v32  ;;  %v501_v0 = vadd.f32 %v469_v22, %v4669_v8 }
  0xed   : > { %v1886_v19 = vadd.f32 %v1854_v52, %v1818_v16  ;;  %v593_v21 = vrot.slane %v385_v57, 7  ;;  %v648_v36 = vrot.slane %v441_v27, 7  ;;  %v732_v11 = vmul.f32 %v4033_v30, %v4487_v9 }
  0xee   : > { %v1887_v5 = vadd.f32 %v1855_v51, %v1819_v55  ;;  %v1967_v17 = vsel %vm369_vm0, %v1966_v53, %v1912_v14  ;;  %v2024_v44 = vsel %vm369_vm0, %v1912_v14, %v1966_v53  ;;  %v568_v18 = vadd.f32 %v536_v50, %v500_v26 }
  0xef   : > { %v2082_v48 = vadd.f32 %v2050_v46, %v1886_v19  ;;  %v2118_v45 = vmul.f32 %v5968_v54, %v2024_v44  ;;  %v2119_v37 = vmul.f32 %v5968_v54, %v1967_v17  ;;  %v2176_v49 = vrot.slane %v1967_v17, 7 }
  0xf0   : > { %v2083_v13 = vadd.f32 %v2051_v7, %v1887_v5  ;;  %v2230_v22 = vrot.slane %v2024_v44, 7  ;;  %v569_v1 = vadd.f32 %v537_v15, %v501_v0  ;;  %v649_v57 = vsel %vm369_vm0, %v648_v36, %v593_v21 }
  0xf1   : > { %v2150_v27 = vadd.f32 %v2118_v45, %v2082_v48  ;;  %v705_v16 = vsel %vm369_vm0, %v593_v21, %v648_v36  ;;  %v733_v52 = vmul.f32 %v4033_v30, %v4490_v23  ;;  %v764_v51 = vadd.f32 %v732_v11, %v568_v18 }
  0xf2   : > { %v2151_v14 = vadd.f32 %v2119_v37, %v2083_v13  ;;  %v2231_v46 = vsel %vm369_vm0, %v2230_v22, %v2176_v49  ;;  %v2288_v50 = vsel %vm369_vm0, %v2176_v49, %v2230_v22  ;;  %v800_v55 = vmul.f32 %v4036_v31, %v705_v16  ;;  %v4735_v13 = vld [vmem:[%s3970_s13 + $0x20] sm:$0xff] }
  0xf3   : > { %v2346_v53 = vadd.f32 %v2314_v41, %v2150_v27  ;;  %v2382_v7 = vmul.f32 %v4172_v43, %v2288_v50  ;;  %v2383_v15 = vmul.f32 %v4172_v43, %v2231_v46  ;;  %v765_v26 = vadd.f32 %v733_v52, %v569_v1  ;;  %v4744_v52 = vld [vmem:[%s3970_s13 + $0x28] sm:$0xff] }
  0xf4   : > { %v2347_v48 = vadd.f32 %v2315_v2, %v2151_v14  ;;  %v801_v0 = vmul.f32 %v4036_v31, %v649_v57  ;;  %v832_v19 = vadd.f32 %v800_v55, %v764_v51  ;;  %v857_v21 = vrot.slane %v649_v57, 7 }
  0xf5   : > { %v4720_v18 = vadd.f32 %v2382_v7, %v2346_v53  ;;  %v912_v36 = vrot.slane %v705_v16, 7  ;;  %v996_v11 = vmul.f32 %v4039_v34, %v4415_v56  ;;  %v997_v41 = vmul.f32 %v4039_v34, %v4406_v25 }
  0xf6   : > { %v4726_v5 = vadd.f32 %v2383_v15, %v2347_v48  ;;  %v833_v17 = vadd.f32 %v801_v0, %v765_v26  ;;  %v1260_v2 = vmul.f32 %v4079_v60, %v4317_v12  ;;  %v1261_v44 = vmul.f32 %v4079_v60, %v4320_v20 }
  0xf7   : > { %5974 = vst [vmem:[#allocation20_spill] sm:$0xff] %v4720_v18  ;;  %v913_v45 = vsel %vm369_vm0, %v912_v36, %v857_v21  ;;  %v969_v37 = vsel %vm369_vm0, %v857_v21, %v912_v36  ;;  %v1028_v49 = vadd.f32 %v996_v11, %v832_v19  ;;  %v1524_v22 = vmul.f32 %v4735_v13, %v4085_v62 }
  0xf8   : > { %5975 = vst [vmem:[#allocation21_spill] sm:$0xff] %v4726_v5  ;;  %v2440_v1 = vpack.c.bf16 %v4726_v5, %v4720_v18  ;;  %v1029_v57 = vadd.f32 %v997_v41, %v833_v17  ;;  %v1064_v27 = vmul.f32 %v4042_v35, %v969_v37  ;;  %v1065_v12 = vmul.f32 %v4042_v35, %v913_v45 }
  0xf9   : > { %v1121_v16 = vrot.slane %v913_v45, 7  ;;  %v1176_v20 = vrot.slane %v969_v37, 7  ;;  %v1525_v51 = vmul.f32 %v4744_v52, %v4085_v62  ;;  %v1788_v14 = vmul.f32 %v4653_v3, %v4117_v38  ;;  %v4768_v45 = vld [vmem:[%s3970_s13 + $0x88] sm:$0xff] }
  0xfa   : > { %3497 = vmatprep.mubr.msk.bf16.mxu0 %vm2473_vm1, %v2440_v1  ;;  %v1096_v46 = vadd.f32 %v1064_v27, %v1028_v49  ;;  %v1097_v50 = vadd.f32 %v1065_v12, %v1029_v57  ;;  %v1789_v55 = vmul.f32 %v4658_v58, %v4117_v38  ;;  %v2052_v53 = vmul.f32 %v4553_v29, %v4143_v59  ;;  %v4772_v57 = vld [vmem:[%s3970_s13 + $0x80] sm:$0xff] }
  0xfb   : > { %v1177_v7 = vsel %vm369_vm0, %v1176_v20, %v1121_v16  ;;  %v1233_v15 = vsel %vm369_vm0, %v1121_v16, %v1176_v20  ;;  %v2053_v26 = vmul.f32 %v4558_v33, %v4143_v59  ;;  %v4761_v48 = vmul.f32 %v4563_v4, %v4167_v42 }
  0xfc   : > { %v1292_v0 = vadd.f32 %v1260_v2, %v1096_v46  ;;  %v1293_v19 = vadd.f32 %v1261_v44, %v1097_v50  ;;  %v1328_v21 = vmul.f32 %v4082_v61, %v1233_v15  ;;  %v1329_v36 = vmul.f32 %v4082_v61, %v1177_v7 }
  0xfd   : > { %v1385_v11 = vrot.slane %v1177_v7, 7  ;;  %v1440_v41 = vrot.slane %v1233_v15, 7  ;;  %v2317_v17 = vmul.f32 %v4571_v47, %v4167_v42  ;;  %v329_v37 = vrot.slane %v4768_v45, 7 }
  0xfe   : > { %v1360_v49 = vadd.f32 %v1328_v21, %v1292_v0  ;;  %v1361_v1 = vadd.f32 %v1329_v36, %v1293_v19  ;;  %v386_v4 = vrot.slane %v4772_v57, 7  ;;  %v470_v2 = vmul.f32 %v4027_v28, %v4674_v32 }
  0xff   : > { %v1441_v44 = vsel %vm369_vm0, %v1440_v41, %v1385_v11  ;;  %v1497_v27 = vsel %vm369_vm0, %v1385_v11, %v1440_v41  ;;  %v471_v47 = vmul.f32 %v4027_v28, %v4669_v8  ;;  %v734_v12 = vmul.f32 %v4033_v30, %v4586_v39 }
 0x100   : > { %v1556_v16 = vadd.f32 %v1524_v22, %v1360_v49  ;;  %v1557_v20 = vadd.f32 %v1525_v51, %v1361_v1  ;;  %v1592_v46 = vmul.f32 %v4088_v63, %v1497_v27  ;;  %v1593_v50 = vmul.f32 %v4088_v63, %v1441_v44 }
 0x101   : > { %v1649_v7 = vrot.slane %v1441_v44, 7  ;;  %v1704_v15 = vrot.slane %v1497_v27, 7  ;;  %v387_v0 = vsel %vm369_vm0, %v386_v4, %v329_v37  ;;  %v442_v19 = vsel %vm369_vm0, %v329_v37, %v386_v4 }
 0x102   : > { %v1624_v21 = vadd.f32 %v1592_v46, %v1556_v16  ;;  %v1625_v36 = vadd.f32 %v1593_v50, %v1557_v20  ;;  %v502_v11 = vadd.f32 %v4772_v57, %v470_v2  ;;  %v503_v41 = vadd.f32 %v4768_v45, %v471_v47 }
 0x103   : > { %v1705_v5 = vsel %vm369_vm0, %v1704_v15, %v1649_v7  ;;  %v1761_v22 = vsel %vm369_vm0, %v1649_v7, %v1704_v15  ;;  %v538_v51 = vmul.f32 %v5964_v40, %v442_v19  ;;  %v539_v49 = vmul.f32 %v5964_v40, %v387_v0 }
 0x104   : > { %v1820_v1 = vadd.f32 %v1788_v14, %v1624_v21  ;;  %v1821_v44 = vadd.f32 %v1789_v55, %v1625_v36  ;;  %v1856_v27 = vmul.f32 %v5959_v24, %v1761_v22  ;;  %v1857_v37 = vmul.f32 %v5959_v24, %v1705_v5 }
 0x105   : > { %v1913_v4 = vrot.slane %v1705_v5, 7  ;;  %v1968_v16 = vrot.slane %v1761_v22, 7  ;;  %v570_v20 = vadd.f32 %v538_v51, %v502_v11  ;;  %v571_v2 = vadd.f32 %v539_v49, %v503_v41 }
 0x106   : > { %v1888_v46 = vadd.f32 %v1856_v27, %v1820_v1  ;;  %v1889_v47 = vadd.f32 %v1857_v37, %v1821_v44  ;;  %v594_v50 = vrot.slane %v387_v0, 7  ;;  %v650_v18 = vrot.slane %v442_v19, 7 }
 0x107   : > { %v1969_v7 = vsel %vm369_vm0, %v1968_v16, %v1913_v4  ;;  %v2025_v15 = vsel %vm369_vm0, %v1913_v4, %v1968_v16  ;;  %v735_v14 = vmul.f32 %v4033_v30, %v4581_v6  ;;  %v766_v55 = vadd.f32 %v734_v12, %v570_v20 }
 0x108   : > { %v2084_v21 = vadd.f32 %v2052_v53, %v1888_v46  ;;  %v2085_v36 = vadd.f32 %v2053_v26, %v1889_v47  ;;  %v2120_v10 = vmul.f32 %v5968_v54, %v2025_v15  ;;  %v2121_v5 = vmul.f32 %v5968_v54, %v1969_v7 }
 0x109   : > { %v2177_v11 = vrot.slane %v1969_v7, 7  ;;  %v2232_v41 = vrot.slane %v2025_v15, 7  ;;  %v651_v22 = vsel %vm369_vm0, %v650_v18, %v594_v50  ;;  %v706_v0 = vsel %vm369_vm0, %v594_v50, %v650_v18 }
 0x10a   : > { %v2152_v19 = vadd.f32 %v2120_v10, %v2084_v21  ;;  %v2153_v51 = vadd.f32 %v2121_v5, %v2085_v36  ;;  %v767_v49 = vadd.f32 %v735_v14, %v571_v2  ;;  %v802_v1 = vmul.f32 %v4036_v31, %v706_v0 }
 0x10b   : > { %v2233_v44 = vsel %vm369_vm0, %v2232_v41, %v2177_v11  ;;  %v2289_v53 = vsel %vm369_vm0, %v2177_v11, %v2232_v41  ;;  %v803_v26 = vmul.f32 %v4036_v31, %v651_v22  ;;  %v858_v12 = vrot.slane %v651_v22, 7  ;;  %v4829_v22 = vld [vmem:[%s3970_s13 + $0x30] sm:$0xff] }
 0x10c   : > { %v2348_v27 = vadd.f32 %v4761_v48, %v2152_v19  ;;  %v2349_v37 = vadd.f32 %v2317_v17, %v2153_v51  ;;  %v2384_v4 = vmul.f32 %v4172_v43, %v2289_v53  ;;  %v2385_v16 = vmul.f32 %v4172_v43, %v2233_v44 }
 0x10d   : > { %v834_v18 = vadd.f32 %v802_v1, %v766_v55  ;;  %v835_v10 = vadd.f32 %v803_v26, %v767_v49  ;;  %v914_v20 = vrot.slane %v706_v0, 7  ;;  %v998_v2 = vmul.f32 %v4039_v34, %v4487_v9  ;;  %v4834_v0 = vld [vmem:[%s3970_s13 + $0x38] sm:$0xff] }
 0x10e   : > { %v4812_v46 = vadd.f32 %v2384_v4, %v2348_v27  ;;  %v4814_v47 = vadd.f32 %v2385_v16, %v2349_v37  ;;  %v999_v48 = vmul.f32 %v4039_v34, %v4490_v23  ;;  %v1262_v17 = vmul.f32 %v4079_v60, %v4415_v56 }
 0x10f   : > { %v915_v50 = vsel %vm369_vm0, %v914_v20, %v858_v12  ;;  %v970_v7 = vsel %vm369_vm0, %v858_v12, %v914_v20  ;;  %v1030_v15 = vadd.f32 %v998_v2, %v834_v18  ;;  %v1263_v14 = vmul.f32 %v4079_v60, %v4406_v25 }
 0x110   : > { %5976 = vst [vmem:[#allocation22_spill] sm:$0xff] %v4812_v46  ;;  %5977 = vst [vmem:[#allocation23_spill] sm:$0xff] %v4814_v47  ;;  %v2441_v55 = vpack.c.bf16 %v4814_v47, %v4812_v46  ;;  %v1031_v21 = vadd.f32 %v999_v48, %v835_v10  ;;  %v1066_v36 = vmul.f32 %v4042_v35, %v970_v7  ;;  %v1122_v11 = vrot.slane %v915_v50, 7 }
 0x111   : > { %v1067_v5 = vmul.f32 %v4042_v35, %v915_v50  ;;  %v1178_v41 = vrot.slane %v970_v7, 7  ;;  %v1526_v56 = vmul.f32 %v4829_v22, %v4085_v62  ;;  %v1527_v25 = vmul.f32 %v4834_v0, %v4085_v62  ;;  %v4856_v7 = vld [vmem:[%s3970_s13 + $0x98] sm:$0xff] }
 0x112   : > { %3498 = vmatmul.mubr.msk.bf16.gmra.mrb[12].mxu0 %vm2473_vm1, %v2441_v55  ;;  %v1098_v19 = vadd.f32 %v1066_v36, %v1030_v15  ;;  %v1790_v49 = vmul.f32 %v4735_v13, %v4117_v38  ;;  %v1791_v1 = vmul.f32 %v4744_v52, %v4117_v38  ;;  %v2054_v26 = vmul.f32 %v4653_v3, %v4143_v59 }
 0x113   : > { %v1099_v51 = vadd.f32 %v1067_v5, %v1031_v21  ;;  %v1179_v44 = vsel %vm369_vm0, %v1178_v41, %v1122_v11  ;;  %v1234_v53 = vsel %vm369_vm0, %v1122_v11, %v1178_v41  ;;  %v2055_v12 = vmul.f32 %v4658_v58, %v4143_v59 }
 0x114   : > { %v1294_v27 = vadd.f32 %v1262_v17, %v1098_v19  ;;  %v1330_v4 = vmul.f32 %v4082_v61, %v1234_v53  ;;  %v1331_v16 = vmul.f32 %v4082_v61, %v1179_v44  ;;  %v1386_v18 = vrot.slane %v1179_v44, 7  ;;  %v4860_v17 = vld [vmem:[%s3970_s13 + $0x90] sm:$0xff] }
 0x115   : > { %v1295_v37 = vadd.f32 %v1263_v14, %v1099_v51  ;;  %v1442_v10 = vrot.slane %v1234_v53, 7  ;;  %v2318_v20 = vmul.f32 %v4553_v29, %v4167_v42  ;;  %v2319_v2 = vmul.f32 %v4558_v33, %v4167_v42 }
 0x116   : > { %v1362_v48 = vadd.f32 %v1330_v4, %v1294_v27  ;;  %v330_v15 = vrot.slane %v4856_v7, 7  ;;  %v388_v14 = vrot.slane %v4860_v17, 7  ;;  %v472_v29 = vmul.f32 %v4772_v57, %v4027_v28 }
 0x117   : > { %v1363_v50 = vadd.f32 %v1331_v16, %v1295_v37  ;;  %v1443_v55 = vsel %vm369_vm0, %v1442_v10, %v1386_v18  ;;  %v1498_v21 = vsel %vm369_vm0, %v1386_v18, %v1442_v10  ;;  %v473_v33 = vmul.f32 %v4768_v45, %v4027_v28 }
 0x118   : > { %v1558_v36 = vadd.f32 %v1526_v56, %v1362_v48  ;;  %v1594_v11 = vmul.f32 %v4088_v63, %v1498_v21  ;;  %v1595_v41 = vmul.f32 %v4088_v63, %v1443_v55  ;;  %v1650_v19 = vrot.slane %v1443_v55, 7 }
 0x119   : > { %v1559_v5 = vadd.f32 %v1527_v25, %v1363_v50  ;;  %v1706_v51 = vrot.slane %v1498_v21, 7  ;;  %v389_v44 = vsel %vm369_vm0, %v388_v14, %v330_v15  ;;  %v443_v53 = vsel %vm369_vm0, %v330_v15, %v388_v14 }
 0x11a   : > { %v1626_v27 = vadd.f32 %v1594_v11, %v1558_v36  ;;  %v504_v4 = vadd.f32 %v4860_v17, %v472_v29  ;;  %v505_v16 = vadd.f32 %v4856_v7, %v473_v33  ;;  %v540_v25 = vmul.f32 %v5964_v40, %v443_v53 }
 0x11b   : > { %v1627_v37 = vadd.f32 %v1595_v41, %v1559_v5  ;;  %v1707_v18 = vsel %vm369_vm0, %v1706_v51, %v1650_v19  ;;  %v1762_v56 = vsel %vm369_vm0, %v1650_v19, %v1706_v51  ;;  %v541_v10 = vmul.f32 %v5964_v40, %v389_v44 }
 0x11c   : > { %v1822_v48 = vadd.f32 %v1790_v49, %v1626_v27  ;;  %v1858_v55 = vmul.f32 %v5959_v24, %v1762_v56  ;;  %v1859_v15 = vmul.f32 %v5959_v24, %v1707_v18  ;;  %v1914_v14 = vrot.slane %v1707_v18, 7 }
 0x11d   : > { %v1823_v50 = vadd.f32 %v1791_v1, %v1627_v37  ;;  %v1970_v21 = vrot.slane %v1762_v56, 7  ;;  %v572_v36 = vadd.f32 %v540_v25, %v504_v4  ;;  %v573_v29 = vadd.f32 %v541_v10, %v505_v16 }
 0x11e   : > { %v1890_v5 = vadd.f32 %v1858_v55, %v1822_v48  ;;  %v595_v11 = vrot.slane %v389_v44, 7  ;;  %v652_v41 = vrot.slane %v443_v53, 7  ;;  %v736_v49 = vmul.f32 %v4033_v30, %v4674_v32 }
 0x11f   : > { %v1891_v33 = vadd.f32 %v1859_v15, %v1823_v50  ;;  %v1971_v19 = vsel %vm369_vm0, %v1970_v21, %v1914_v14  ;;  %v2026_v51 = vsel %vm369_vm0, %v1914_v14, %v1970_v21  ;;  %v737_v1 = vmul.f32 %v4033_v30, %v4669_v8 }
 0x120   : > { %v2086_v27 = vadd.f32 %v2054_v26, %v1890_v5  ;;  %v2122_v18 = vmul.f32 %v5968_v54, %v2026_v51  ;;  %v2123_v4 = vmul.f32 %v5968_v54, %v1971_v19  ;;  %v2178_v16 = vrot.slane %v1971_v19, 7 }
 0x121   : > { %v2087_v37 = vadd.f32 %v2055_v12, %v1891_v33  ;;  %v2234_v56 = vrot.slane %v2026_v51, 7  ;;  %v653_v44 = vsel %vm369_vm0, %v652_v41, %v595_v11  ;;  %v707_v53 = vsel %vm369_vm0, %v595_v11, %v652_v41 }
 0x122   : > { %v2154_v25 = vadd.f32 %v2122_v18, %v2086_v27  ;;  %v768_v48 = vadd.f32 %v736_v49, %v572_v36  ;;  %v769_v50 = vadd.f32 %v737_v1, %v573_v29  ;;  %v804_v26 = vmul.f32 %v4036_v31, %v707_v53 }
 0x123   : > { %v2155_v10 = vadd.f32 %v2123_v4, %v2087_v37  ;;  %v2235_v55 = vsel %vm369_vm0, %v2234_v56, %v2178_v16  ;;  %v2290_v15 = vsel %vm369_vm0, %v2178_v16, %v2234_v56  ;;  %v805_v12 = vmul.f32 %v4036_v31, %v653_v44 }
 0x124   : > { %v2350_v14 = vadd.f32 %v2318_v20, %v2154_v25  ;;  %v2386_v5 = vmul.f32 %v4172_v43, %v2290_v15  ;;  %v2387_v33 = vmul.f32 %v4172_v43, %v2235_v55  ;;  %v836_v19 = vadd.f32 %v804_v26, %v768_v48 }
 0x125   : > { %v2351_v21 = vadd.f32 %v2319_v2, %v2155_v10  ;;  %v837_v11 = vadd.f32 %v805_v12, %v769_v50  ;;  %v859_v41 = vrot.slane %v653_v44, 7  ;;  %v916_v51 = vrot.slane %v707_v53, 7  ;;  %v4916_v10 = vld [vmem:[%s3970_s13 + $0x40] sm:$0xff] }
 0x126   : > { %v4897_v36 = vadd.f32 %v2386_v5, %v2350_v14  ;;  %v1000_v49 = vmul.f32 %v4039_v34, %v4586_v39  ;;  %v1001_v20 = vmul.f32 %v4039_v34, %v4581_v6  ;;  %v1264_v27 = vmul.f32 %v4079_v60, %v4487_v9 }
 0x127   : > { %v4899_v29 = vadd.f32 %v2387_v33, %v2351_v21  ;;  %v917_v2 = vsel %vm369_vm0, %v916_v51, %v859_v41  ;;  %v971_v1 = vsel %vm369_vm0, %v859_v41, %v916_v51  ;;  %v1265_v37 = vmul.f32 %v4079_v60, %v4490_v23  ;;  %v4922_v23 = vld [vmem:[%s3970_s13 + $0x48] sm:$0xff] }
 0x128   : > { %5978 = vst [vmem:[#allocation24_spill] sm:$0xff] %v4897_v36  ;;  %v1032_v4 = vadd.f32 %v1000_v49, %v836_v19  ;;  %v1033_v16 = vadd.f32 %v1001_v20, %v837_v11  ;;  %v1068_v56 = vmul.f32 %v4042_v35, %v971_v1  ;;  %v1069_v44 = vmul.f32 %v4042_v35, %v917_v2 }
 0x129   : > { %5979 = vst [vmem:[#allocation25_spill] sm:$0xff] %v4899_v29  ;;  %v2442_v18 = vpack.c.bf16 %v4899_v29, %v4897_v36  ;;  %v1123_v53 = vrot.slane %v917_v2, 7  ;;  %v1180_v25 = vrot.slane %v971_v1, 7  ;;  %v1528_v48 = vmul.f32 %v4916_v10, %v4085_v62 }
 0x12a   : > { %v1100_v9 = vadd.f32 %v1068_v56, %v1032_v4  ;;  %v1529_v50 = vmul.f32 %v4922_v23, %v4085_v62  ;;  %v1792_v55 = vmul.f32 %v4829_v22, %v4117_v38  ;;  %v1793_v15 = vmul.f32 %v4834_v0, %v4117_v38  ;;  %v4947_v4 = vld [vmem:[%s3970_s13 + $0xa0] sm:$0xff] }
 0x12b   : > { %3501 = vmatprep.mubr.msk.bf16.mxu0 %vm2473_vm1, %v2442_v18  ;;  %v1101_v26 = vadd.f32 %v1069_v44, %v1033_v16  ;;  %v1181_v12 = vsel %vm369_vm0, %v1180_v25, %v1123_v53  ;;  %v1235_v14 = vsel %vm369_vm0, %v1123_v53, %v1180_v25  ;;  %v2056_v21 = vmul.f32 %v4735_v13, %v4143_v59  ;;  %v4943_v18 = vld [vmem:[%s3970_s13 + $0xa8] sm:$0xff] }
 0x12c   : > { %v1296_v5 = vadd.f32 %v1264_v27, %v1100_v9  ;;  %v1332_v33 = vmul.f32 %v4082_v61, %v1235_v14  ;;  %v1333_v19 = vmul.f32 %v4082_v61, %v1181_v12  ;;  %v1387_v11 = vrot.slane %v1181_v12, 7 }
 0x12d   : > { %v1297_v41 = vadd.f32 %v1265_v37, %v1101_v26  ;;  %v1444_v51 = vrot.slane %v1235_v14, 7  ;;  %v2057_v49 = vmul.f32 %v4744_v52, %v4143_v59  ;;  %v2320_v20 = vmul.f32 %v4653_v3, %v4167_v42 }
 0x12e   : > { %v1364_v2 = vadd.f32 %v1332_v33, %v1296_v5  ;;  %v2321_v1 = vmul.f32 %v4658_v58, %v4167_v42  ;;  %v331_v27 = vrot.slane %v4943_v18, 7  ;;  %v390_v16 = vrot.slane %v4947_v4, 7 }
 0x12f   : > { %v1365_v37 = vadd.f32 %v1333_v19, %v1297_v41  ;;  %v1445_v56 = vsel %vm369_vm0, %v1444_v51, %v1387_v11  ;;  %v1499_v44 = vsel %vm369_vm0, %v1387_v11, %v1444_v51  ;;  %v474_v3 = vmul.f32 %v4860_v17, %v4027_v28 }
 0x130   : > { %v1560_v53 = vadd.f32 %v1528_v48, %v1364_v2  ;;  %v1596_v25 = vmul.f32 %v4088_v63, %v1499_v44  ;;  %v1597_v58 = vmul.f32 %v4088_v63, %v1445_v56  ;;  %v1651_v9 = vrot.slane %v1445_v56, 7 }
 0x131   : > { %v1561_v26 = vadd.f32 %v1529_v50, %v1365_v37  ;;  %v1708_v12 = vrot.slane %v1499_v44, 7  ;;  %v391_v14 = vsel %vm369_vm0, %v390_v16, %v331_v27  ;;  %v444_v5 = vsel %vm369_vm0, %v331_v27, %v390_v16 }
 0x132   : > { %v1628_v33 = vadd.f32 %v1596_v25, %v1560_v53  ;;  %v475_v19 = vmul.f32 %v4856_v7, %v4027_v28  ;;  %v506_v11 = vadd.f32 %v4947_v4, %v474_v3  ;;  %v542_v41 = vmul.f32 %v5964_v40, %v444_v5 }
 0x133   : > { %v1629_v48 = vadd.f32 %v1597_v58, %v1561_v26  ;;  %v1709_v51 = vsel %vm369_vm0, %v1708_v12, %v1651_v9  ;;  %v1763_v2 = vsel %vm369_vm0, %v1651_v9, %v1708_v12  ;;  %v543_v50 = vmul.f32 %v5964_v40, %v391_v14 }
 0x134   : > { %v1824_v37 = vadd.f32 %v1792_v55, %v1628_v33  ;;  %v1860_v56 = vmul.f32 %v5959_v24, %v1763_v2  ;;  %v1861_v27 = vmul.f32 %v5959_v24, %v1709_v51  ;;  %v1915_v16 = vrot.slane %v1709_v51, 7 }
 0x135   : > { %v1825_v44 = vadd.f32 %v1793_v15, %v1629_v48  ;;  %v1972_v53 = vrot.slane %v1763_v2, 7  ;;  %v507_v25 = vadd.f32 %v4943_v18, %v475_v19  ;;  %v574_v3 = vadd.f32 %v542_v41, %v506_v11 }
 0x136   : > { %v1892_v29 = vadd.f32 %v1860_v56, %v1824_v37  ;;  %v596_v36 = vrot.slane %v391_v14, 7  ;;  %v654_v58 = vrot.slane %v444_v5, 7  ;;  %v738_v26 = vmul.f32 %v4772_v57, %v4033_v30 }
 0x137   : > { %v1893_v9 = vadd.f32 %v1861_v27, %v1825_v44  ;;  %v1973_v12 = vsel %vm369_vm0, %v1972_v53, %v1915_v16  ;;  %v2027_v55 = vsel %vm369_vm0, %v1915_v16, %v1972_v53  ;;  %v575_v33 = vadd.f32 %v543_v50, %v507_v25 }
 0x138   : > { %v2088_v47 = vadd.f32 %v2056_v21, %v1892_v29  ;;  %v2124_v51 = vmul.f32 %v5968_v54, %v2027_v55  ;;  %v2125_v15 = vmul.f32 %v5968_v54, %v1973_v12  ;;  %v2179_v48 = vrot.slane %v1973_v12, 7 }
 0x139   : > { %v2089_v19 = vadd.f32 %v2057_v49, %v1893_v9  ;;  %v2236_v11 = vrot.slane %v2027_v55, 7  ;;  %v655_v14 = vsel %vm369_vm0, %v654_v58, %v596_v36  ;;  %v708_v5 = vsel %vm369_vm0, %v596_v36, %v654_v58 }
 0x13a   : > { %v2156_v41 = vadd.f32 %v2124_v51, %v2088_v47  ;;  %v739_v2 = vmul.f32 %v4768_v45, %v4033_v30  ;;  %v770_v37 = vadd.f32 %v738_v26, %v574_v3  ;;  %v806_v56 = vmul.f32 %v4036_v31, %v708_v5 }
 0x13b   : > { %v2157_v50 = vadd.f32 %v2125_v15, %v2089_v19  ;;  %v2237_v29 = vsel %vm369_vm0, %v2236_v11, %v2179_v48  ;;  %v2291_v21 = vsel %vm369_vm0, %v2179_v48, %v2236_v11  ;;  %v807_v27 = vmul.f32 %v4036_v31, %v655_v14 }
 0x13c   : > { %v2352_v49 = vadd.f32 %v2320_v20, %v2156_v41  ;;  %v2388_v16 = vmul.f32 %v4172_v43, %v2291_v21  ;;  %v2389_v44 = vmul.f32 %v4172_v43, %v2237_v29  ;;  %v771_v36 = vadd.f32 %v739_v2, %v575_v33 }
 0x13d   : > { %v2353_v47 = vadd.f32 %v2321_v1, %v2157_v50  ;;  %v838_v53 = vadd.f32 %v806_v56, %v770_v37  ;;  %v860_v25 = vrot.slane %v655_v14, 7  ;;  %v918_v58 = vrot.slane %v708_v5, 7  ;;  %v5003_v56 = vld [vmem:[%s3970_s13 + $0x50] sm:$0xff]  ;;  %v5008_v50 = vld [vmem:[%s3970_s13 + $0x58] sm:$0xff] }
 0x13e   : > { %v4984_v3 = vadd.f32 %v2388_v16, %v2352_v49  ;;  %v839_v26 = vadd.f32 %v807_v27, %v771_v36  ;;  %v1002_v9 = vmul.f32 %v4039_v34, %v4674_v32  ;;  %v1003_v12 = vmul.f32 %v4039_v34, %v4669_v8 }
 0x13f   : > { %v4990_v20 = vadd.f32 %v2389_v44, %v2353_v47  ;;  %v919_v55 = vsel %vm369_vm0, %v918_v58, %v860_v25  ;;  %v972_v1 = vsel %vm369_vm0, %v860_v25, %v918_v58  ;;  %v1266_v33 = vmul.f32 %v4079_v60, %v4586_v39 }
 0x140   : > { %5980 = vst [vmem:[#allocation26_spill] sm:$0xff] %v4984_v3  ;;  %v1034_v51 = vadd.f32 %v1002_v9, %v838_v53  ;;  %v1035_v15 = vadd.f32 %v1003_v12, %v839_v26  ;;  %v1070_v48 = vmul.f32 %v4042_v35, %v972_v1  ;;  %v1071_v19 = vmul.f32 %v4042_v35, %v919_v55 }
 0x141   : > { %5981 = vst [vmem:[#allocation27_spill] sm:$0xff] %v4990_v20  ;;  %v2443_v11 = vpack.c.bf16 %v4990_v20, %v4984_v3  ;;  %v1124_v14 = vrot.slane %v919_v55, 7  ;;  %v1182_v5 = vrot.slane %v972_v1, 7  ;;  %v1267_v41 = vmul.f32 %v4079_v60, %v4581_v6 }
 0x142   : > { %v1102_v2 = vadd.f32 %v1070_v48, %v1034_v51  ;;  %v1103_v37 = vadd.f32 %v1071_v19, %v1035_v15  ;;  %v1530_v39 = vmul.f32 %v5003_v56, %v4085_v62  ;;  %v1531_v29 = vmul.f32 %v5008_v50, %v4085_v62  ;;  %v5032_v15 = vld [vmem:[%s3970_s13 + $0xb8] sm:$0xff]  ;;  %v5036_v19 = vld [vmem:[%s3970_s13 + $0xb0] sm:$0xff] }
 0x143   : > { %3502 = vmatmul.mubr.msk.bf16.gmra.mrb[16].mxu0 %vm2473_vm1, %v2443_v11  ;;  %v1183_v21 = vsel %vm369_vm0, %v1182_v5, %v1124_v14  ;;  %v1236_v27 = vsel %vm369_vm0, %v1124_v14, %v1182_v5  ;;  %v1794_v6 = vmul.f32 %v4916_v10, %v4117_v38  ;;  %v1795_v49 = vmul.f32 %v4922_v23, %v4117_v38 }
 0x144   : > { %v1298_v16 = vadd.f32 %v1266_v33, %v1102_v2  ;;  %v1299_v44 = vadd.f32 %v1267_v41, %v1103_v37  ;;  %v1334_v36 = vmul.f32 %v4082_v61, %v1236_v27  ;;  %v1335_v47 = vmul.f32 %v4082_v61, %v1183_v21 }
 0x145   : > { %v1388_v53 = vrot.slane %v1183_v21, 7  ;;  %v1446_v25 = vrot.slane %v1236_v27, 7  ;;  %v2058_v58 = vmul.f32 %v4829_v22, %v4143_v59  ;;  %v2059_v26 = vmul.f32 %v4834_v0, %v4143_v59 }
 0x146   : > { %v1366_v9 = vadd.f32 %v1334_v36, %v1298_v16  ;;  %v1367_v12 = vadd.f32 %v1335_v47, %v1299_v44  ;;  %v2322_v55 = vmul.f32 %v4735_v13, %v4167_v42  ;;  %v2323_v1 = vmul.f32 %v4744_v52, %v4167_v42 }
 0x147   : > { %v1447_v33 = vsel %vm369_vm0, %v1446_v25, %v1388_v53  ;;  %v1500_v51 = vsel %vm369_vm0, %v1388_v53, %v1446_v25  ;;  %v332_v48 = vrot.slane %v5032_v15, 7  ;;  %v392_v11 = vrot.slane %v5036_v19, 7 }
 0x148   : > { %v1562_v14 = vadd.f32 %v1530_v39, %v1366_v9  ;;  %v1563_v5 = vadd.f32 %v1531_v29, %v1367_v12  ;;  %v1598_v41 = vmul.f32 %v4088_v63, %v1500_v51  ;;  %v1599_v13 = vmul.f32 %v4088_v63, %v1447_v33 }
 0x149   : > { %v1652_v2 = vrot.slane %v1447_v33, 7  ;;  %v1710_v52 = vrot.slane %v1500_v51, 7  ;;  %v393_v37 = vsel %vm369_vm0, %v392_v11, %v332_v48  ;;  %v445_v21 = vsel %vm369_vm0, %v332_v48, %v392_v11 }
 0x14a   : > { %v1630_v27 = vadd.f32 %v1598_v41, %v1562_v14  ;;  %v1631_v16 = vadd.f32 %v1599_v13, %v1563_v5  ;;  %v476_v44 = vmul.f32 %v4947_v4, %v4027_v28  ;;  %v477_v36 = vmul.f32 %v4943_v18, %v4027_v28 }
 0x14b   : > { %v1711_v39 = vsel %vm369_vm0, %v1710_v52, %v1652_v2  ;;  %v1764_v29 = vsel %vm369_vm0, %v1652_v2, %v1710_v52  ;;  %v544_v47 = vmul.f32 %v5964_v40, %v445_v21  ;;  %v545_v53 = vmul.f32 %v5964_v40, %v393_v37 }
 0x14c   : > { %v1826_v25 = vadd.f32 %v1794_v6, %v1630_v27  ;;  %v1827_v9 = vadd.f32 %v1795_v49, %v1631_v16  ;;  %v1862_v12 = vmul.f32 %v5959_v24, %v1764_v29  ;;  %v1863_v33 = vmul.f32 %v5959_v24, %v1711_v39 }
 0x14d   : > { %v1916_v51 = vrot.slane %v1711_v39, 7  ;;  %v1974_v48 = vrot.slane %v1764_v29, 7  ;;  %v508_v11 = vadd.f32 %v5036_v19, %v476_v44  ;;  %v509_v14 = vadd.f32 %v5032_v15, %v477_v36 }
 0x14e   : > { %v1894_v5 = vadd.f32 %v1862_v12, %v1826_v25  ;;  %v1895_v41 = vadd.f32 %v1863_v33, %v1827_v9  ;;  %v597_v13 = vrot.slane %v393_v37, 7  ;;  %v656_v2 = vrot.slane %v445_v21, 7 }
 0x14f   : > { %v1975_v52 = vsel %vm369_vm0, %v1974_v48, %v1916_v51  ;;  %v2028_v20 = vsel %vm369_vm0, %v1916_v51, %v1974_v48  ;;  %v576_v6 = vadd.f32 %v544_v47, %v508_v11  ;;  %v577_v49 = vadd.f32 %v545_v53, %v509_v14 }
 0x150   : > { %v2090_v27 = vadd.f32 %v2058_v58, %v1894_v5  ;;  %v2091_v16 = vadd.f32 %v2059_v26, %v1895_v41  ;;  %v2126_v3 = vmul.f32 %v5968_v54, %v2028_v20  ;;  %v2127_v39 = vmul.f32 %v5968_v54, %v1975_v52 }
 0x151   : > { %v2180_v29 = vrot.slane %v1975_v52, 7  ;;  %v2238_v44 = vrot.slane %v2028_v20, 7  ;;  %v657_v36 = vsel %vm369_vm0, %v656_v2, %v597_v13  ;;  %v709_v25 = vsel %vm369_vm0, %v597_v13, %v656_v2 }
 0x152   : > { %v2158_v37 = vadd.f32 %v2126_v3, %v2090_v27  ;;  %v2159_v21 = vadd.f32 %v2127_v39, %v2091_v16  ;;  %v740_v9 = vmul.f32 %v4860_v17, %v4033_v30  ;;  %v741_v47 = vmul.f32 %v4856_v7, %v4033_v30  ;;  %v5071_v48 = vpop.f32.mrb[0].mxu0 }
 0x153   : > { %v2239_v58 = vsel %vm369_vm0, %v2238_v44, %v2180_v29  ;;  %v2292_v26 = vsel %vm369_vm0, %v2180_v29, %v2238_v44  ;;  %v808_v53 = vmul.f32 %v4036_v31, %v709_v25  ;;  %v809_v20 = vmul.f32 %v4036_v31, %v657_v36  ;;  %5982 = vst [vmem:[#allocation28_spill] sm:$0xff] %v5071_v48 }
 0x154   : > { %v2354_v12 = vadd.f32 %v2322_v55, %v2158_v37  ;;  %v2355_v33 = vadd.f32 %v2323_v1, %v2159_v21  ;;  %v2390_v51 = vmul.f32 %v4172_v43, %v2292_v26  ;;  %v2391_v3 = vmul.f32 %v4172_v43, %v2239_v58  ;;  %v5098_v26 = vld [vmem:[%s3970_s13 + $0x68] sm:$0xff] }
 0x155   : > { %v772_v11 = vadd.f32 %v740_v9, %v576_v6  ;;  %v773_v14 = vadd.f32 %v741_v47, %v577_v49  ;;  %v861_v5 = vrot.slane %v657_v36, 7  ;;  %v920_v41 = vrot.slane %v709_v25, 7  ;;  %v5093_v47 = vld [vmem:[%s3970_s13 + $0x60] sm:$0xff] }
 0x156   : > { %v5073_v13 = vadd.f32 %v2390_v51, %v2354_v12  ;;  %v5075_v2 = vadd.f32 %v2391_v3, %v2355_v33  ;;  %v1004_v52 = vmul.f32 %v4772_v57, %v4039_v34  ;;  %v1005_v55 = vmul.f32 %v4768_v45, %v4039_v34  ;;  %v5104_v12 = vpop.f32.mrb[1].mxu0 }
 0x157   : > { %v840_v1 = vadd.f32 %v808_v53, %v772_v11  ;;  %v841_v27 = vadd.f32 %v809_v20, %v773_v14  ;;  %v921_v16 = vsel %vm369_vm0, %v920_v41, %v861_v5  ;;  %v973_v6 = vsel %vm369_vm0, %v861_v5, %v920_v41  ;;  %5985 = vst [vmem:[#allocation31_spill] sm:$0xff] %v5104_v12  ;;  %v5108_v3 = vpop.f32.mrb[2].mxu0 }
 0x158   : > { %5983 = vst [vmem:[#allocation29_spill] sm:$0xff] %v5073_v13  ;;  %5984 = vst [vmem:[#allocation30_spill] sm:$0xff] %v5075_v2  ;;  %v2444_v49 = vpack.c.bf16 %v5075_v2, %v5073_v13  ;;  %v1072_v39 = vmul.f32 %v4042_v35, %v973_v6  ;;  %v1073_v29 = vmul.f32 %v4042_v35, %v921_v16  ;;  %v1125_v44 = vrot.slane %v921_v16, 7 }
 0x159   : > { %v1036_v36 = vadd.f32 %v1004_v52, %v840_v1  ;;  %v1037_v25 = vadd.f32 %v1005_v55, %v841_v27  ;;  %v1184_v37 = vrot.slane %v973_v6, 7  ;;  %v1268_v21 = vmul.f32 %v4079_v60, %v4674_v32  ;;  %5986 = vst [vmem:[#allocation32_spill] sm:$0xff] %v5108_v3 }
 0x15a   : > { %3505 = vmatprep.mubr.msk.bf16.mxu0 %vm2473_vm1, %v2444_v49  ;;  %v1269_v9 = vmul.f32 %v4079_v60, %v4669_v8  ;;  %v1532_v58 = vmul.f32 %v5093_v47, %v4085_v62  ;;  %v1533_v53 = vmul.f32 %v5098_v26, %v4085_v62  ;;  %v1796_v20 = vmul.f32 %v5003_v56, %v4117_v38 }
 0x15b   : > { %v1104_v32 = vadd.f32 %v1072_v39, %v1036_v36  ;;  %v1105_v33 = vadd.f32 %v1073_v29, %v1037_v25  ;;  %v1185_v51 = vsel %vm369_vm0, %v1184_v37, %v1125_v44  ;;  %v1237_v8 = vsel %vm369_vm0, %v1125_v44, %v1184_v37 }
 0x15c   : > { %v1336_v11 = vmul.f32 %v4082_v61, %v1237_v8  ;;  %v1337_v14 = vmul.f32 %v4082_v61, %v1185_v51  ;;  %v1389_v5 = vrot.slane %v1185_v51, 7  ;;  %v1448_v41 = vrot.slane %v1237_v8, 7 }
 0x15d   : > { %v1300_v52 = vadd.f32 %v1268_v21, %v1104_v32  ;;  %v1301_v55 = vadd.f32 %v1269_v9, %v1105_v33  ;;  %v1797_v1 = vmul.f32 %v5008_v50, %v4117_v38  ;;  %v2060_v27 = vmul.f32 %v4916_v10, %v4143_v59  ;;  %v5127_v32 = vld [vmem:[%s3970_s13 + $0xc8] sm:$0xff] }
 0x15e   : > { %v1449_v16 = vsel %vm369_vm0, %v1448_v41, %v1389_v5  ;;  %v1501_v6 = vsel %vm369_vm0, %v1389_v5, %v1448_v41  ;;  %v2061_v49 = vmul.f32 %v4922_v23, %v4143_v59  ;;  %v2324_v39 = vmul.f32 %v4829_v22, %v4167_v42  ;;  %v5131_v5 = vld [vmem:[%s3970_s13 + $0xc0] sm:$0xff] }
 0x15f   : > { %v1368_v29 = vadd.f32 %v1336_v11, %v1300_v52  ;;  %v1369_v44 = vadd.f32 %v1337_v14, %v1301_v55  ;;  %v1600_v36 = vmul.f32 %v4088_v63, %v1501_v6  ;;  %v1601_v25 = vmul.f32 %v4088_v63, %v1449_v16  ;;  %v5142_v55 = vpop.f32.mrb[3].mxu0 }
 0x160   : > { %v1653_v37 = vrot.slane %v1449_v16, 7  ;;  %v1712_v21 = vrot.slane %v1501_v6, 7  ;;  %v2325_v9 = vmul.f32 %v4834_v0, %v4167_v42  ;;  %v333_v33 = vrot.slane %v5127_v32, 7  ;;  %5987 = vst [vmem:[#allocation33_spill] sm:$0xff] %v5142_v55 }
 0x161   : > { %v1564_v51 = vadd.f32 %v1532_v58, %v1368_v29  ;;  %v1565_v8 = vadd.f32 %v1533_v53, %v1369_v44  ;;  %v394_v22 = vrot.slane %v5131_v5, 7  ;;  %v478_v11 = vmul.f32 %v5036_v19, %v4027_v28 }
 0x162   : > { %v1713_v14 = vsel %vm369_vm0, %v1712_v21, %v1653_v37  ;;  %v1765_v41 = vsel %vm369_vm0, %v1653_v37, %v1712_v21  ;;  %v479_v0 = vmul.f32 %v5032_v15, %v4027_v28  ;;  %v742_v52 = vmul.f32 %v4947_v4, %v4033_v30 }
 0x163   : > { %v1632_v58 = vadd.f32 %v1600_v36, %v1564_v51  ;;  %v1633_v53 = vadd.f32 %v1601_v25, %v1565_v8  ;;  %v1864_v16 = vmul.f32 %v5959_v24, %v1765_v41  ;;  %v1865_v6 = vmul.f32 %v5959_v24, %v1713_v14 }
 0x164   : > { %v1917_v29 = vrot.slane %v1713_v14, 7  ;;  %v1976_v44 = vrot.slane %v1765_v41, 7  ;;  %v395_v2 = vsel %vm369_vm0, %v394_v22, %v333_v33  ;;  %v446_v37 = vsel %vm369_vm0, %v333_v33, %v394_v22 }
 0x165   : > { %v1828_v21 = vadd.f32 %v1796_v20, %v1632_v58  ;;  %v1829_v13 = vadd.f32 %v1797_v1, %v1633_v53  ;;  %v510_v46 = vadd.f32 %v5131_v5, %v478_v11  ;;  %v511_v12 = vadd.f32 %v5127_v32, %v479_v0 }
 0x166   : > { %v1977_v55 = vsel %vm369_vm0, %v1976_v44, %v1917_v29  ;;  %v2029_v36 = vsel %vm369_vm0, %v1917_v29, %v1976_v44  ;;  %v546_v25 = vmul.f32 %v5964_v40, %v446_v37  ;;  %v547_v51 = vmul.f32 %v5964_v40, %v395_v2 }
 0x167   : > { %v1896_v8 = vadd.f32 %v1864_v16, %v1828_v21  ;;  %v1897_v14 = vadd.f32 %v1865_v6, %v1829_v13  ;;  %v2128_v41 = vmul.f32 %v5968_v54, %v2029_v36  ;;  %v2129_v33 = vmul.f32 %v5968_v54, %v1977_v55 }
 0x168   : > { %v2181_v20 = vrot.slane %v1977_v55, 7  ;;  %v2240_v1 = vrot.slane %v2029_v36, 7  ;;  %v578_v22 = vadd.f32 %v546_v25, %v510_v46  ;;  %v579_v11 = vadd.f32 %v547_v51, %v511_v12 }
 0x169   : > { %v2092_v58 = vadd.f32 %v2060_v27, %v1896_v8  ;;  %v2093_v0 = vadd.f32 %v2061_v49, %v1897_v14  ;;  %v598_v53 = vrot.slane %v395_v2, 7  ;;  %v658_v3 = vrot.slane %v446_v37, 7 }
 0x16a   : > { %v2241_v29 = vsel %vm369_vm0, %v2240_v1, %v2181_v20  ;;  %v2293_v44 = vsel %vm369_vm0, %v2181_v20, %v2240_v1  ;;  %v743_v16 = vmul.f32 %v4943_v18, %v4033_v30  ;;  %v774_v13 = vadd.f32 %v742_v52, %v578_v22  ;;  %v5181_v22 = vld [vmem:[%s3970_s13 + $0x70] sm:$0xff] }
 0x16b   : > { %v2160_v6 = vadd.f32 %v2128_v41, %v2092_v58  ;;  %v2161_v21 = vadd.f32 %v2129_v33, %v2093_v0  ;;  %v2392_v48 = vmul.f32 %v4172_v43, %v2293_v44  ;;  %v2393_v55 = vmul.f32 %v4172_v43, %v2241_v29 }
 0x16c   : > { %v659_v46 = vsel %vm369_vm0, %v658_v3, %v598_v53  ;;  %v710_v12 = vsel %vm369_vm0, %v598_v53, %v658_v3  ;;  %v775_v2 = vadd.f32 %v743_v16, %v579_v11  ;;  %v1006_v27 = vmul.f32 %v4860_v17, %v4039_v34  ;;  %v5190_v16 = vld [vmem:[%s3970_s13 + $0x78] sm:$0xff] }
 0x16d   : > { %v2356_v49 = vadd.f32 %v2324_v39, %v2160_v6  ;;  %v2357_v37 = vadd.f32 %v2325_v9, %v2161_v21  ;;  %v810_v36 = vmul.f32 %v4036_v31, %v710_v12  ;;  %v811_v52 = vmul.f32 %v4036_v31, %v659_v46 }
 0x16e   : > { %v862_v25 = vrot.slane %v659_v46, 7  ;;  %v922_v51 = vrot.slane %v710_v12, 7  ;;  %v1007_v8 = vmul.f32 %v4856_v7, %v4039_v34  ;;  %v1270_v14 = vmul.f32 %v4772_v57, %v4079_v60  ;;  %v3609_v46 = vld [vmem:[%s5907_s4] sm:$0xff]  }
 0x16f   : > { %v5172_v3 = vadd.f32 %v2392_v48, %v2356_v49  ;;  %v5174_v41 = vadd.f32 %v2393_v55, %v2357_v37  ;;  %v842_v33 = vadd.f32 %v810_v36, %v774_v13  ;;  %v843_v39 = vadd.f32 %v811_v52, %v775_v2  ;;  %3517 = vmatprep.subr.bf16.mxu1 %v3609_v46 }
 0x170   : > { %v923_v9 = vsel %vm369_vm0, %v922_v51, %v862_v25  ;;  %v974_v20 = vsel %vm369_vm0, %v862_v25, %v922_v51  ;;  %v1271_v1 = vmul.f32 %v4768_v45, %v4079_v60  ;;  %v1534_v11 = vmul.f32 %v5181_v22, %v4085_v62  ;;  %3518 = vmatpush3.bf16.msra.mxu1 %v3609_v46 }
 0x171   : > { %5988 = vst [vmem:[#allocation34_spill] sm:$0xff] %v5172_v3  ;;  %5989 = vst [vmem:[#allocation35_spill] sm:$0xff] %v5174_v41  ;;  %v2445_v57 = vpack.c.bf16 %v5174_v41, %v5172_v3  ;;  %v1038_v48 = vadd.f32 %v1006_v27, %v842_v33  ;;  %v1039_v58 = vadd.f32 %v1007_v8, %v843_v39  ;;  %v1126_v29 = vrot.slane %v923_v9, 7 }
 0x172   : > { %v1074_v0 = vmul.f32 %v4042_v35, %v974_v20  ;;  %v1075_v53 = vmul.f32 %v4042_v35, %v923_v9  ;;  %v1186_v44 = vrot.slane %v974_v20, 7  ;;  %v1535_v45 = vmul.f32 %v5190_v16, %v4085_v62  ;;  %v5219_v20 = vld [vmem:[%s3970_s13 + $0xd8] sm:$0xff] }
 0x173   : > { %3506 = vmatmul.mubr.msk.bf16.gmra.mrb[20].mxu0 %vm2473_vm1, %v2445_v57  ;;  %v1798_v6 = vmul.f32 %v5093_v47, %v4117_v38  ;;  %v1799_v21 = vmul.f32 %v5098_v26, %v4117_v38  ;;  %v2062_v55 = vmul.f32 %v5003_v56, %v4143_v59  ;;  %v2063_v49 = vmul.f32 %v5008_v50, %v4143_v59  ;;  %v5223_v57 = vld [vmem:[%s3970_s13 + $0xd0] sm:$0xff] }
 0x174   : > { %v1106_v13 = vadd.f32 %v1074_v0, %v1038_v48  ;;  %v1107_v12 = vadd.f32 %v1075_v53, %v1039_v58  ;;  %v1187_v2 = vsel %vm369_vm0, %v1186_v44, %v1126_v29  ;;  %v1238_v27 = vsel %vm369_vm0, %v1126_v29, %v1186_v44 }
 0x175   : > { %v1338_v36 = vmul.f32 %v4082_v61, %v1238_v27  ;;  %v1339_v52 = vmul.f32 %v4082_v61, %v1187_v2  ;;  %v1390_v25 = vrot.slane %v1187_v2, 7  ;;  %v1450_v8 = vrot.slane %v1238_v27, 7 }
 0x176   : > { %v1302_v37 = vadd.f32 %v1270_v14, %v1106_v13  ;;  %v1303_v51 = vadd.f32 %v1271_v1, %v1107_v12  ;;  %v5212_v33 = vmul.f32 %v4916_v10, %v4167_v42  ;;  %v5216_v39 = vmul.f32 %v4922_v23, %v4167_v42 }
 0x177   : > { %v334_v14 = vrot.slane %v5219_v20, 7  ;;  %v396_v48 = vrot.slane %v5223_v57, 7  ;;  %v480_v1 = vmul.f32 %v5131_v5, %v4027_v28  ;;  %v1451_v10 = vsel %vm369_vm0, %v1450_v8, %v1390_v25 }
 0x178   : > { %v1370_v9 = vadd.f32 %v1338_v36, %v1302_v37  ;;  %v1371_v58 = vadd.f32 %v1339_v52, %v1303_v51  ;;  %v1502_v0 = vsel %vm369_vm0, %v1390_v25, %v1450_v8  ;;  %v481_v23 = vmul.f32 %v5127_v32, %v4027_v28 }
 0x179   : > { %v1602_v29 = vmul.f32 %v4088_v63, %v1502_v0  ;;  %v1603_v44 = vmul.f32 %v4088_v63, %v1451_v10  ;;  %v1654_v13 = vrot.slane %v1451_v10, 7  ;;  %v1714_v12 = vrot.slane %v1502_v0, 7 }
 0x17a   : > { %v1566_v53 = vadd.f32 %v1534_v11, %v1370_v9  ;;  %v1567_v46 = vadd.f32 %v1535_v45, %v1371_v58  ;;  %v397_v2 = vsel %vm369_vm0, %v396_v48, %v334_v14  ;;  %v447_v27 = vsel %vm369_vm0, %v334_v14, %v396_v48 }
 0x17b   : > { %v512_v36 = vadd.f32 %v5223_v57, %v480_v1  ;;  %v513_v52 = vadd.f32 %v5219_v20, %v481_v23  ;;  %v548_v25 = vmul.f32 %v5964_v40, %v447_v27  ;;  %v1715_v11 = vsel %vm369_vm0, %v1714_v12, %v1654_v13 }
 0x17c   : > { %v1634_v37 = vadd.f32 %v1602_v29, %v1566_v53  ;;  %v1635_v51 = vadd.f32 %v1603_v44, %v1567_v46  ;;  %v1766_v8 = vsel %vm369_vm0, %v1654_v13, %v1714_v12  ;;  %v549_v9 = vmul.f32 %v5964_v40, %v397_v2 }
 0x17d   : > { %v1866_v58 = vmul.f32 %v5959_v24, %v1766_v8  ;;  %v1867_v10 = vmul.f32 %v5959_v24, %v1715_v11  ;;  %v1918_v14 = vrot.slane %v1715_v11, 7  ;;  %v1978_v0 = vrot.slane %v1766_v8, 7 }
 0x17e   : > { %v1830_v45 = vadd.f32 %v1798_v6, %v1634_v37  ;;  %v1831_v48 = vadd.f32 %v1799_v21, %v1635_v51  ;;  %v580_v1 = vadd.f32 %v548_v25, %v512_v36  ;;  %v581_v53 = vadd.f32 %v549_v9, %v513_v52 }
 0x17f   : > { %v599_v29 = vrot.slane %v397_v2, 7  ;;  %v660_v41 = vrot.slane %v447_v27, 7  ;;  %v744_v44 = vmul.f32 %v5036_v19, %v4033_v30  ;;  %v1979_v13 = vsel %vm369_vm0, %v1978_v0, %v1918_v14  ;;  %v3610_v2 = vld [vmem:[%s5907_s4 + $0x8] sm:$0xff]  }
 0x180   : > { %v1898_v23 = vadd.f32 %v1866_v58, %v1830_v45  ;;  %v1899_v46 = vadd.f32 %v1867_v10, %v1831_v48  ;;  %v2030_v6 = vsel %vm369_vm0, %v1918_v14, %v1978_v0  ;;  %v745_v12 = vmul.f32 %v5032_v15, %v4033_v30  ;;  %3519 = vmatprep.subr.bf16.mxu1 %v3610_v2 }
 0x181   : > { %v2130_v21 = vmul.f32 %v5968_v54, %v2030_v6  ;;  %v2131_v36 = vmul.f32 %v5968_v54, %v1979_v13  ;;  %v2182_v52 = vrot.slane %v1979_v13, 7  ;;  %v2242_v25 = vrot.slane %v2030_v6, 7  ;;  %3520 = vmatpush3.bf16.msra.mxu1 %v3610_v2 }
 0x182   : > { %v2094_v37 = vadd.f32 %v2062_v55, %v1898_v23  ;;  %v2095_v27 = vadd.f32 %v2063_v49, %v1899_v46  ;;  %v661_v51 = vsel %vm369_vm0, %v660_v41, %v599_v29  ;;  %v711_v11 = vsel %vm369_vm0, %v599_v29, %v660_v41  ;;  %v3611_v29 = vld [vmem:[%s5907_s4 + $0x10] sm:$0xff]  }
 0x183   : > { %v776_v9 = vadd.f32 %v744_v44, %v580_v1  ;;  %v777_v45 = vadd.f32 %v745_v12, %v581_v53  ;;  %v812_v55 = vmul.f32 %v4036_v31, %v711_v11  ;;  %v2243_v10 = vsel %vm369_vm0, %v2242_v25, %v2182_v52  ;;  %3521 = vmatprep.subr.bf16.mxu1 %v3611_v29 }
 0x184   : > { %v2162_v8 = vadd.f32 %v2130_v21, %v2094_v37  ;;  %v2163_v58 = vadd.f32 %v2131_v36, %v2095_v27  ;;  %v2294_v14 = vsel %vm369_vm0, %v2182_v52, %v2242_v25  ;;  %v813_v48 = vmul.f32 %v4036_v31, %v661_v51  ;;  %v5261_v0 = vpop.f32.mrb[4].mxu0 }
 0x185   : > { %v2394_v41 = vmul.f32 %v4172_v43, %v2294_v14  ;;  %v2395_v1 = vmul.f32 %v4172_v43, %v2243_v10  ;;  %v844_v53 = vadd.f32 %v812_v55, %v776_v9  ;;  %v5266_v23 = vpop.f32.mrb[5].mxu0  ;;  %v863_v13 = vrot.slane %v661_v51, 7  ;;  %3522 = vmatpush3.bf16.msra.mxu1 %v3611_v29 }
 0x186   : > { %v2358_v49 = vadd.f32 %v5212_v33, %v2162_v8  ;;  %5990 = vst [vmem:[#allocation36_spill] sm:$0xff] %v5266_v23  ;;  %v2359_v44 = vadd.f32 %v5216_v39, %v2163_v58  ;;  %v845_v46 = vadd.f32 %v813_v48, %v777_v45  ;;  %v924_v6 = vrot.slane %v711_v11, 7  ;;  %v5272_v12 = vpop.f32.mrb[6].mxu0  ;;  %v5295_v58 = vld [vmem:[%s3970_s13 + $0x80] sm:$0xff] }
 0x187   : > { %5991 = vst [vmem:[#allocation37_spill] sm:$0xff] %v5272_v12  ;;  %v1008_v33 = vmul.f32 %v4947_v4, %v4039_v34  ;;  %v1009_v21 = vmul.f32 %v4943_v18, %v4039_v34  ;;  %v1272_v36 = vmul.f32 %v4860_v17, %v4079_v60  ;;  %v5282_v52 = vpop.f32.mrb[7].mxu0  ;;  %v1273_v25 = vmul.f32 %v4856_v7, %v4079_v60  ;;  %v5300_v7 = vld [vmem:[%s3970_s13 + $0x88] sm:$0xff] }
 0x188   : > { %v5274_v37 = vadd.f32 %v2394_v41, %v2358_v49  ;;  %5993 = vst [vmem:[#allocation39_spill] sm:$0xff] %v5282_v52  ;;  %v5284_v39 = vadd.f32 %v2395_v1, %v2359_v44  ;;  %v925_v2 = vsel %vm369_vm0, %v924_v6, %v863_v13  ;;  %v975_v27 = vsel %vm369_vm0, %v863_v13, %v924_v6 }
 0x189   : > { %v1040_v51 = vadd.f32 %v1008_v33, %v844_v53  ;;  %v1041_v11 = vadd.f32 %v1009_v21, %v845_v46  ;;  %v1076_v8 = vmul.f32 %v4042_v35, %v975_v27  ;;  %v1077_v17 = vmul.f32 %v4042_v35, %v925_v2 }
 0x18a   : > { %5992 = vst [vmem:[#allocation38_spill] sm:$0xff] %v5274_v37  ;;  %5994 = vst [vmem:[#allocation40_spill] sm:$0xff] %v5284_v39  ;;  %v2446_v9 = vpack.c.bf16 %v5284_v39, %v5274_v37  ;;  %v1127_v45 = vrot.slane %v925_v2, 7  ;;  %v1188_v55 = vrot.slane %v975_v27, 7  ;;  %v1536_v10 = vmul.f32 %v5295_v58, %v4085_v62 }
 0x18b   : > { %v1108_v14 = vadd.f32 %v1076_v8, %v1040_v51  ;;  %v1109_v48 = vadd.f32 %v1077_v17, %v1041_v11  ;;  %v1537_v49 = vmul.f32 %v5300_v7, %v4085_v62  ;;  %v1800_v41 = vmul.f32 %v5181_v22, %v4117_v38 }
 0x18c   : > { %3509 = vmatprep.mubr.msk.bf16.mxu0 %vm2473_vm1, %v2446_v9  ;;  %v1189_v1 = vsel %vm369_vm0, %v1188_v55, %v1127_v45  ;;  %v1239_v53 = vsel %vm369_vm0, %v1127_v45, %v1188_v55  ;;  %v1801_v29 = vmul.f32 %v5190_v16, %v4117_v38  ;;  %v2064_v44 = vmul.f32 %v5093_v47, %v4143_v59  ;;  %v5322_v9 = vld [vmem:[%s3970_s13 + $0xe8] sm:$0xff]  ;;  %v5328_v55 = vld [vmem:[%s3970_s13 + $0xe0] sm:$0xff] }
 0x18d   : > { %v1304_v46 = vadd.f32 %v1272_v36, %v1108_v14  ;;  %v1305_v13 = vadd.f32 %v1273_v25, %v1109_v48  ;;  %v1340_v6 = vmul.f32 %v4082_v61, %v1239_v53  ;;  %v1341_v33 = vmul.f32 %v4082_v61, %v1189_v1 }
 0x18e   : > { %v1391_v21 = vrot.slane %v1189_v1, 7  ;;  %v1452_v2 = vrot.slane %v1239_v53, 7  ;;  %v2065_v27 = vmul.f32 %v5098_v26, %v4143_v59  ;;  %v2328_v51 = vmul.f32 %v5003_v56, %v4167_v42 }
 0x18f   : > { %v1372_v11 = vadd.f32 %v1340_v6, %v1304_v46  ;;  %v1373_v8 = vadd.f32 %v1341_v33, %v1305_v13  ;;  %v2329_v17 = vmul.f32 %v5008_v50, %v4167_v42  ;;  %v335_v36 = vrot.slane %v5322_v9, 7 }
 0x190   : > { %v1453_v25 = vsel %vm369_vm0, %v1452_v2, %v1391_v21  ;;  %v1503_v45 = vsel %vm369_vm0, %v1391_v21, %v1452_v2  ;;  %v398_v14 = vrot.slane %v5328_v55, 7  ;;  %v482_v56 = vmul.f32 %v5223_v57, %v4027_v28 }
 0x191   : > { %v1568_v48 = vadd.f32 %v1536_v10, %v1372_v11  ;;  %v1569_v1 = vadd.f32 %v1537_v49, %v1373_v8  ;;  %v1604_v53 = vmul.f32 %v4088_v63, %v1503_v45  ;;  %v1605_v50 = vmul.f32 %v4088_v63, %v1453_v25 }
 0x192   : > { %v1655_v46 = vrot.slane %v1453_v25, 7  ;;  %v1716_v13 = vrot.slane %v1503_v45, 7  ;;  %v399_v6 = vsel %vm369_vm0, %v398_v14, %v335_v36  ;;  %v448_v33 = vsel %vm369_vm0, %v335_v36, %v398_v14 }
 0x193   : > { %v1636_v21 = vadd.f32 %v1604_v53, %v1568_v48  ;;  %v1637_v2 = vadd.f32 %v1605_v50, %v1569_v1  ;;  %v483_v39 = vmul.f32 %v5219_v20, %v4027_v28  ;;  %v514_v37 = vadd.f32 %v5328_v55, %v482_v56 }
 0x194   : > { %v1717_v10 = vsel %vm369_vm0, %v1716_v13, %v1655_v46  ;;  %v1767_v49 = vsel %vm369_vm0, %v1655_v46, %v1716_v13  ;;  %v550_v11 = vmul.f32 %v5964_v40, %v448_v33  ;;  %v551_v8 = vmul.f32 %v5964_v40, %v399_v6 }
 0x195   : > { %v1832_v25 = vadd.f32 %v1800_v41, %v1636_v21  ;;  %v1833_v45 = vadd.f32 %v1801_v29, %v1637_v2  ;;  %v1868_v3 = vmul.f32 %v5959_v24, %v1767_v49  ;;  %v1869_v36 = vmul.f32 %v5959_v24, %v1717_v10 }
 0x196   : > { %v1919_v14 = vrot.slane %v1717_v10, 7  ;;  %v1980_v48 = vrot.slane %v1767_v49, 7  ;;  %v515_v1 = vadd.f32 %v5322_v9, %v483_v39  ;;  %v582_v53 = vadd.f32 %v550_v11, %v514_v37 }
 0x197   : > { %v1900_v56 = vadd.f32 %v1868_v3, %v1832_v25  ;;  %v1901_v50 = vadd.f32 %v1869_v36, %v1833_v45  ;;  %v600_v52 = vrot.slane %v399_v6, 7  ;;  %v662_v12 = vrot.slane %v448_v33, 7 }
 0x198   : > { %v1981_v46 = vsel %vm369_vm0, %v1980_v48, %v1919_v14  ;;  %v2031_v13 = vsel %vm369_vm0, %v1919_v14, %v1980_v48  ;;  %v583_v23 = vadd.f32 %v551_v8, %v515_v1  ;;  %v746_v41 = vmul.f32 %v5131_v5, %v4033_v30 }
 0x199   : > { %v2096_v29 = vadd.f32 %v2064_v44, %v1900_v56  ;;  %v2097_v21 = vadd.f32 %v2065_v27, %v1901_v50  ;;  %v2132_v2 = vmul.f32 %v5968_v54, %v2031_v13  ;;  %v2133_v10 = vmul.f32 %v5968_v54, %v1981_v46 }
 0x19a   : > { %v2183_v39 = vrot.slane %v1981_v46, 7  ;;  %v2244_v37 = vrot.slane %v2031_v13, 7  ;;  %v663_v3 = vsel %vm369_vm0, %v662_v12, %v600_v52  ;;  %v712_v6 = vsel %vm369_vm0, %v600_v52, %v662_v12 }
 0x19b   : > { %v2164_v33 = vadd.f32 %v2132_v2, %v2096_v29  ;;  %v2165_v49 = vadd.f32 %v2133_v10, %v2097_v21  ;;  %v747_v11 = vmul.f32 %v5127_v32, %v4033_v30  ;;  %v778_v8 = vadd.f32 %v746_v41, %v582_v53 }
 0x19c   : > { %v2245_v25 = vsel %vm369_vm0, %v2244_v37, %v2183_v39  ;;  %v2295_v44 = vsel %vm369_vm0, %v2183_v39, %v2244_v37  ;;  %v814_v27 = vmul.f32 %v4036_v31, %v712_v6  ;;  %v815_v45 = vmul.f32 %v4036_v31, %v663_v3 }
 0x19d   : > { %v2360_v36 = vadd.f32 %v2328_v51, %v2164_v33  ;;  %v2361_v14 = vadd.f32 %v2329_v17, %v2165_v49  ;;  %v2396_v48 = vmul.f32 %v4172_v43, %v2295_v44  ;;  %v2397_v12 = vmul.f32 %v4172_v43, %v2245_v25 }
 0x19e   : > { %v779_v52 = vadd.f32 %v747_v11, %v583_v23  ;;  %v846_v1 = vadd.f32 %v814_v27, %v778_v8  ;;  %v864_v56 = vrot.slane %v663_v3, 7  ;;  %v926_v50 = vrot.slane %v712_v6, 7  ;;  %v5383_v11 = vld [vmem:[%s3970_s13 + $0x90] sm:$0xff]  ;;  %v5388_v8 = vld [vmem:[%s3970_s13 + $0x98] sm:$0xff] }
 0x19f   : > { %v5363_v46 = vadd.f32 %v2396_v48, %v2360_v36  ;;  %v5365_v53 = vadd.f32 %v2397_v12, %v2361_v14  ;;  %v1010_v13 = vmul.f32 %v5036_v19, %v4039_v34  ;;  %v1011_v51 = vmul.f32 %v5032_v15, %v4039_v34 }
 0x1a0   : > { %v847_v17 = vadd.f32 %v815_v45, %v779_v52  ;;  %v927_v41 = vsel %vm369_vm0, %v926_v50, %v864_v56  ;;  %v976_v23 = vsel %vm369_vm0, %v864_v56, %v926_v50  ;;  %v1274_v29 = vmul.f32 %v4947_v4, %v4079_v60 }
 0x1a1   : > { %v2447_v21 = vpack.c.bf16 %v5365_v53, %v5363_v46  ;;  %v1042_v2 = vadd.f32 %v1010_v13, %v846_v1  ;;  %v1078_v10 = vmul.f32 %v4042_v35, %v976_v23  ;;  %v1079_v39 = vmul.f32 %v4042_v35, %v927_v41 }
 0x1a2   : > { %v1043_v37 = vadd.f32 %v1011_v51, %v847_v17  ;;  %v1128_v3 = vrot.slane %v927_v41, 7  ;;  %v1190_v6 = vrot.slane %v976_v23, 7  ;;  %v1275_v33 = vmul.f32 %v4943_v18, %v4079_v60  ;;  %v3717_v23 = vld [vmem:[%s3970_s13 + $0xf8] sm:$0xff] }
 0x1a3   : > { %3510 = vmatmul.mubr.msk.bf16.gmra.mrb[24].mxu0 %vm2473_vm1, %v2447_v21  ;;  %v1110_v49 = vadd.f32 %v1078_v10, %v1042_v2  ;;  %v1538_v4 = vmul.f32 %v5383_v11, %v4085_v62  ;;  %v1539_v25 = vmul.f32 %v5388_v8, %v4085_v62  ;;  %v1802_v44 = vmul.f32 %v5295_v58, %v4117_v38 }
 0x1a4   : > { %v1111_v27 = vadd.f32 %v1079_v39, %v1043_v37  ;;  %v1191_v18 = vsel %vm369_vm0, %v1190_v6, %v1128_v3  ;;  %v1240_v45 = vsel %vm369_vm0, %v1128_v3, %v1190_v6  ;;  %v1803_v36 = vmul.f32 %v5300_v7, %v4117_v38  ;;  %v3718_v39 = vld [vmem:[%s3970_s13 + $0xf0] sm:$0xff] }
 0x1a5   : > { %v1306_v14 = vadd.f32 %v1274_v29, %v1110_v49  ;;  %v1342_v48 = vmul.f32 %v4082_v61, %v1240_v45  ;;  %v1343_v12 = vmul.f32 %v4082_v61, %v1191_v18  ;;  %v1392_v52 = vrot.slane %v1191_v18, 7 }
 0x1a6   : > { %v1307_v1 = vadd.f32 %v1275_v33, %v1111_v27  ;;  %v1454_v56 = vrot.slane %v1240_v45, 7  ;;  %v2066_v50 = vmul.f32 %v5181_v22, %v4143_v59  ;;  %v2067_v13 = vmul.f32 %v5190_v16, %v4143_v59 }
 0x1a7   : > { %v1374_v51 = vadd.f32 %v1342_v48, %v1306_v14  ;;  %v2330_v17 = vmul.f32 %v5093_v47, %v4167_v42  ;;  %v5408_v41 = vmul.f32 %v5098_v26, %v4167_v42  ;;  %v336_v29 = vrot.slane %v3717_v23, 7 }
 0x1a8   : > { %v1375_v21 = vadd.f32 %v1343_v12, %v1307_v1  ;;  %v1455_v2 = vsel %vm369_vm0, %v1454_v56, %v1392_v52  ;;  %v1504_v10 = vsel %vm369_vm0, %v1392_v52, %v1454_v56  ;;  %v400_v37 = vrot.slane %v3718_v39, 7 }
 0x1a9   : > { %v1570_v3 = vadd.f32 %v1538_v4, %v1374_v51  ;;  %v1606_v6 = vmul.f32 %v4088_v63, %v1504_v10  ;;  %v1607_v33 = vmul.f32 %v4088_v63, %v1455_v2  ;;  %v1656_v49 = vrot.slane %v1455_v2, 7 }
 0x1aa   : > { %v1571_v47 = vadd.f32 %v1539_v25, %v1375_v21  ;;  %v1718_v27 = vrot.slane %v1504_v10, 7  ;;  %v401_v26 = vsel %vm369_vm0, %v400_v37, %v336_v29  ;;  %v449_v18 = vsel %vm369_vm0, %v336_v29, %v400_v37 }
 0x1ab   : > { %v1638_v45 = vadd.f32 %v1606_v6, %v1570_v3  ;;  %v484_v14 = vmul.f32 %v5328_v55, %v4027_v28  ;;  %v485_v48 = vmul.f32 %v5322_v9, %v4027_v28  ;;  %v552_v4 = vmul.f32 %v5964_v40, %v449_v18 }
 0x1ac   : > { %v1639_v12 = vadd.f32 %v1607_v33, %v1571_v47  ;;  %v1719_v52 = vsel %vm369_vm0, %v1718_v27, %v1656_v49  ;;  %v1768_v1 = vsel %vm369_vm0, %v1656_v49, %v1718_v27  ;;  %v553_v25 = vmul.f32 %v5964_v40, %v401_v26 }
 0x1ad   : > { %v1834_v56 = vadd.f32 %v1802_v44, %v1638_v45  ;;  %v1870_v51 = vmul.f32 %v5959_v24, %v1768_v1  ;;  %v1871_v29 = vmul.f32 %v5959_v24, %v1719_v52  ;;  %v1920_v21 = vrot.slane %v1719_v52, 7 }
 0x1ae   : > { %v1835_v2 = vadd.f32 %v1803_v36, %v1639_v12  ;;  %v1982_v55 = vrot.slane %v1768_v1, 7  ;;  %v516_v10 = vadd.f32 %v3718_v39, %v484_v14  ;;  %v517_v37 = vadd.f32 %v3717_v23, %v485_v48 }
 0x1af   : > { %v1902_v28 = vadd.f32 %v1870_v51, %v1834_v56  ;;  %v601_v9 = vrot.slane %v401_v26, 7  ;;  %v664_v3 = vrot.slane %v449_v18, 7  ;;  %v748_v6 = vmul.f32 %v5223_v57, %v4033_v30  ;;  %v3612_v57 = vld [vmem:[%s5907_s4 + $0x18] sm:$0xff]  }
 0x1b0   : > { %v1903_v33 = vadd.f32 %v1871_v29, %v1835_v2  ;;  %v1983_v49 = vsel %vm369_vm0, %v1982_v55, %v1920_v21  ;;  %v2032_v40 = vsel %vm369_vm0, %v1920_v21, %v1982_v55  ;;  %v584_v44 = vadd.f32 %v552_v4, %v516_v10  ;;  %3523 = vmatprep.subr.bf16.mxu1 %v3612_v57 }
 0x1b1   : > { %v2098_v47 = vadd.f32 %v2066_v50, %v1902_v28  ;;  %v2134_v27 = vmul.f32 %v5968_v54, %v2032_v40  ;;  %v2135_v36 = vmul.f32 %v5968_v54, %v1983_v49  ;;  %v2184_v45 = vrot.slane %v1983_v49, 7  ;;  %3524 = vmatpush3.bf16.msra.mxu1 %v3612_v57  ;;  %v3720_v57 = vld [vmem:[%s3970_s13 + $0xa8] sm:$0xff] }
 0x1b2   : > { %v2099_v39 = vadd.f32 %v2067_v13, %v1903_v33  ;;  %v2246_v23 = vrot.slane %v2032_v40, 7  ;;  %v585_v14 = vadd.f32 %v553_v25, %v517_v37  ;;  %v665_v26 = vsel %vm369_vm0, %v664_v3, %v601_v9 }
 0x1b3   : > { %v2166_v18 = vadd.f32 %v2134_v27, %v2098_v47  ;;  %v713_v48 = vsel %vm369_vm0, %v601_v9, %v664_v3  ;;  %v749_v50 = vmul.f32 %v5219_v20, %v4033_v30  ;;  %v780_v4 = vadd.f32 %v748_v6, %v584_v44 }
 0x1b4   : > { %v2167_v12 = vadd.f32 %v2135_v36, %v2099_v39  ;;  %v2247_v52 = vsel %vm369_vm0, %v2246_v23, %v2184_v45  ;;  %v2296_v13 = vsel %vm369_vm0, %v2184_v45, %v2246_v23  ;;  %v816_v1 = vmul.f32 %v4036_v31, %v713_v48  ;;  %v5444_v25 = vpop.f32.mrb[8].mxu0  ;;  %v5478_v23 = vld [vmem:[%s5906_s3] ss:$0 sm:$0xff] }
 0x1b5   : > { %v2362_v56 = vadd.f32 %v2330_v17, %v2166_v18  ;;  %v2398_v51 = vmul.f32 %v4172_v43, %v2296_v13  ;;  %v2399_v29 = vmul.f32 %v4172_v43, %v2247_v52  ;;  %v781_v21 = vadd.f32 %v749_v50, %v585_v14  ;;  %v5448_v2 = vpop.f32.mrb[9].mxu0  ;;  %v3719_v14 = vld [vmem:[%s3970_s13 + $0xa0] sm:$0xff] }
 0x1b6   : > { %v2363_v30 = vadd.f32 %v5408_v41, %v2167_v12  ;;  %v817_v20 = vmul.f32 %v4036_v31, %v665_v26  ;;  %v848_v55 = vadd.f32 %v816_v1, %v780_v4  ;;  %v865_v10 = vrot.slane %v665_v26, 7  ;;  %v5452_v37 = vpop.f32.mrb[10].mxu0  ;;  %v5995_v13 = vld [vmem:[#allocation28_spill] sm:$0xff] }
 0x1b7   : > { %v5454_v28 = vadd.f32 %v2398_v51, %v2362_v56  ;;  %v928_v9 = vrot.slane %v713_v48, 7  ;;  %v1012_v17 = vmul.f32 %v5131_v5, %v4039_v34  ;;  %v1013_v3 = vmul.f32 %v5127_v32, %v4039_v34  ;;  %v5460_v6 = vpop.f32.mrb[11].mxu0 }
 0x1b8   : > { %v5462_v33 = vadd.f32 %v2399_v29, %v2363_v30  ;;  %v849_v41 = vadd.f32 %v817_v20, %v781_v21  ;;  %v1276_v31 = vmul.f32 %v5036_v19, %v4079_v60  ;;  %v1277_v5 = vmul.f32 %v5032_v15, %v4079_v60  ;;  %v5996_v21 = vld [vmem:[#allocation32_spill] sm:$0xff] }
 0x1b9   : > { %v929_v49 = vsel %vm369_vm0, %v928_v9, %v865_v10  ;;  %v977_v40 = vsel %vm369_vm0, %v865_v10, %v928_v9  ;;  %v1044_v44 = vadd.f32 %v1012_v17, %v848_v55  ;;  %v1540_v26 = vmul.f32 %v3719_v14, %v4085_v62 }
 0x1ba   : > { %v2448_v34 = vpack.c.bf16 %v5462_v33, %v5454_v28  ;;  %v1045_v32 = vadd.f32 %v1013_v3, %v849_v41  ;;  %v1080_v47 = vmul.f32 %v4042_v35, %v977_v40  ;;  %v1081_v27 = vmul.f32 %v4042_v35, %v929_v49 }
 0x1bb   : > { %v1129_v36 = vrot.slane %v929_v49, 7  ;;  %v1192_v19 = vrot.slane %v977_v40, 7  ;;  %v1541_v35 = vmul.f32 %v3720_v57, %v4085_v62  ;;  %v5490_v1 = vadd.f32 %v5995_v13, %v5478_v23  ;;  %v5998_v13 = vld [vmem:[#allocation33_spill] sm:$0xff] }
 0x1bc   : > { %3513 = vmatprep.mubr.msk.bf16.mxu0 %vm2473_vm1, %v2448_v34  ;;  %v1112_v45 = vadd.f32 %v1080_v47, %v1044_v44  ;;  %v1113_v39 = vadd.f32 %v1081_v27, %v1045_v32  ;;  %v1804_v29 = vmul.f32 %v5383_v11, %v4117_v38  ;;  %v5496_v62 = vadd.f32 %v5996_v21, %v5478_v23 }
 0x1bd   : > { %v1193_v60 = vsel %vm369_vm0, %v1192_v19, %v1129_v36  ;;  %v1241_v15 = vsel %vm369_vm0, %v1129_v36, %v1192_v19  ;;  %v2685_v55 = vmul.f32 %v5490_v1, %v5490_v1  ;;  %v2068_v44 = vmul.f32 %v5295_v58, %v4143_v59 }
 0x1be   : > { %v1308_v18 = vadd.f32 %v1276_v31, %v1112_v45  ;;  %v1309_v48 = vadd.f32 %v1277_v5, %v1113_v39  ;;  %v1344_v50 = vmul.f32 %v4082_v61, %v1241_v15  ;;  %v1345_v4 = vmul.f32 %v4082_v61, %v1193_v60  ;;  %v5997_v39 = vld [vmem:[#allocation31_spill] sm:$0xff] }
 0x1bf   : > { %v1393_v12 = vrot.slane %v1193_v60, 7  ;;  %v1456_v52 = vrot.slane %v1241_v15, 7  ;;  %v1805_v61 = vmul.f32 %v5388_v8, %v4117_v38  ;;  %v2717_v31 = vmul.f32 %v2685_v55, %v5490_v1 }
 0x1c0   : > { %v1376_v56 = vadd.f32 %v1344_v50, %v1308_v18  ;;  %v1377_v51 = vadd.f32 %v1345_v4, %v1309_v48  ;;  %v2686_v38 = vmul.f32 %v5496_v62, %v5496_v62  ;;  %v2069_v34 = vmul.f32 %v5300_v7, %v4143_v59 }
 0x1c1   : > { %v1457_v30 = vsel %vm369_vm0, %v1456_v52, %v1393_v12  ;;  %v1505_v20 = vsel %vm369_vm0, %v1393_v12, %v1456_v52  ;;  %v5520_v60 = vadd.f32 %v5478_v23, %v5997_v39  ;;  %v2332_v59 = vmul.f32 %v5181_v22, %v4167_v42 }
 0x1c2   : > { %v1572_v10 = vadd.f32 %v1540_v26, %v1376_v56  ;;  %v1573_v9 = vadd.f32 %v1541_v35, %v1377_v51  ;;  %v1608_v17 = vmul.f32 %v4088_v63, %v1505_v20  ;;  %v1609_v11 = vmul.f32 %v4088_v63, %v1457_v30 }
 0x1c3   : > { %v1657_v3 = vrot.slane %v1457_v30, 7  ;;  %v1720_v41 = vrot.slane %v1505_v20, 7  ;;  %v2749_v63 = vmul.f32 0.044715, %v2717_v31  ;;  %v2718_v7 = vmul.f32 %v2686_v38, %v5496_v62  ;;  %v5999_v30 = vld [vmem:[#allocation36_spill] sm:$0xff] }
 0x1c4   : > { %v1640_v49 = vadd.f32 %v1608_v17, %v1572_v10  ;;  %v1641_v40 = vadd.f32 %v1609_v11, %v1573_v9  ;;  %v2683_v22 = vmul.f32 %v5520_v60, %v5520_v60  ;;  %v5535_v56 = vadd.f32 %v5478_v23, %v5998_v13 }
 0x1c5   : > { %v1721_v8 = vsel %vm369_vm0, %v1720_v41, %v1657_v3  ;;  %v1769_v5 = vsel %vm369_vm0, %v1657_v3, %v1720_v41  ;;  %v2781_v58 = vadd.f32 %v2749_v63, %v5490_v1  ;;  %v5545_v20 = vadd.f32 %v5478_v23, %v5999_v30 }
 0x1c6   : > { %v1836_v32 = vadd.f32 %v1804_v29, %v1640_v49  ;;  %v1837_v47 = vadd.f32 %v1805_v61, %v1641_v40  ;;  %v1872_v27 = vmul.f32 %v5959_v24, %v1769_v5  ;;  %v1873_v36 = vmul.f32 %v5959_v24, %v1721_v8  ;;  %v6000_v49 = vld [vmem:[#allocation37_spill] sm:$0xff] }
 0x1c7   : > { %v1921_v19 = vrot.slane %v1721_v8, 7  ;;  %v1984_v45 = vrot.slane %v1769_v5, 7  ;;  %v2333_v24 = vmul.f32 %v5190_v16, %v4167_v42  ;;  %v2813_v35 = vmul.f32 0.7978846, %v2781_v58 }
 0x1c8   : > { %v1904_v15 = vadd.f32 %v1872_v27, %v1836_v32  ;;  %v1905_v14 = vadd.f32 %v1873_v36, %v1837_v47  ;;  %v2750_v42 = vmul.f32 0.044715, %v2718_v7  ;;  %v2684_v11 = vmul.f32 %v5535_v56, %v5535_v56 }
 0x1c9   : > { %v1985_v26 = vsel %vm369_vm0, %v1984_v45, %v1921_v19  ;;  %v2033_v57 = vsel %vm369_vm0, %v1921_v19, %v1984_v45  ;;  %3613 = vtanh.f32 %v2813_v35  ;;  %v5562_v40 = vadd.f32 %v6000_v49, %v5478_v23 }
 0x1ca   : > { %v2100_v18 = vadd.f32 %v2068_v44, %v1904_v15  ;;  %v2101_v48 = vadd.f32 %v2069_v34, %v1905_v14  ;;  %v2136_v50 = vmul.f32 %v5968_v54, %v2033_v57  ;;  %v2137_v4 = vmul.f32 %v5968_v54, %v1985_v26 }
 0x1cb   : > { %v2185_v12 = vrot.slane %v1985_v26, 7  ;;  %v2248_v52 = vrot.slane %v2033_v57, 7  ;;  %v5541_v54 = vadd.f32 %v5261_v0, %v5478_v23  ;;  %v2782_v17 = vadd.f32 %v2750_v42, %v5496_v62 }
 0x1cc   : > { %v2168_v51 = vadd.f32 %v2136_v50, %v2100_v18  ;;  %v2169_v29 = vadd.f32 %v2137_v4, %v2101_v48  ;;  %v2687_v0 = vmul.f32 %v5545_v20, %v5545_v20  ;;  %v2715_v38 = vmul.f32 %v2683_v22, %v5520_v60 }
 0x1cd   : > { %v2249_v16 = vsel %vm369_vm0, %v2248_v52, %v2185_v12  ;;  %v2297_v21 = vsel %vm369_vm0, %v2185_v12, %v2248_v52  ;;  %v2689_v3 = vmul.f32 %v5541_v54, %v5541_v54  ;;  %v2814_v8 = vmul.f32 0.7978846, %v2782_v17 }
 0x1ce   : > { %v2364_v61 = vadd.f32 %v2332_v59, %v2168_v51  ;;  %v2365_v55 = vadd.f32 %v2333_v24, %v2169_v29  ;;  %v2400_v10 = vmul.f32 %v4172_v43, %v2297_v21  ;;  %v2401_v9 = vmul.f32 %v4172_v43, %v2249_v16  ;;  %v6001_v43 = vld [vmem:[#allocation39_spill] sm:$0xff] }
 0x1cf   : > { %v5566_v44 = vadd.f32 %v5478_v23, %v6001_v43  ;;  %v2721_v5 = vmul.f32 %v2689_v3, %v5541_v54  ;;  %v2719_v34 = vmul.f32 %v2687_v0, %v5545_v20  ;;  %v2690_v32 = vmul.f32 %v5562_v40, %v5562_v40 }
 0x1d0   : > { %v5556_v41 = vadd.f32 %v2400_v10, %v2364_v61  ;;  %v5558_v31 = vadd.f32 %v2401_v9, %v2365_v55  ;;  %3615 = vtanh.f32 %v2814_v8  ;;  %v2716_v27 = vmul.f32 %v2684_v11, %v5535_v56 }
 0x1d1   : > { %v2688_v47 = vmul.f32 %v5566_v44, %v5566_v44  ;;  %v2753_v36 = vmul.f32 0.044715, %v2721_v5  ;;  %v2751_v19 = vmul.f32 0.044715, %v2719_v34  ;;  %v2722_v45 = vmul.f32 %v2690_v32, %v5562_v40 }
 0x1d2   : > { %v2449_v63 = vpack.c.bf16 %v5558_v31, %v5556_v41  ;;  %v2747_v39 = vmul.f32 0.044715, %v2715_v38  ;;  %v2748_v57 = vmul.f32 0.044715, %v2716_v27  ;;  %v5595_v55 = vadd.f32 %v5452_v37, %v5478_v23 }
 0x1d3   : > { %v2720_v58 = vmul.f32 %v2688_v47, %v5566_v44  ;;  %v2785_v15 = vadd.f32 %v2753_v36, %v5541_v54  ;;  %v2783_v14 = vadd.f32 %v2751_v19, %v5545_v20  ;;  %v3614_v59 = vpop.eup %3613  ;;  %v2754_v7 = vmul.f32 0.044715, %v2722_v45 }
 0x1d4   : > { %3514 = vmatmul.mubr.msk.bf16.gmra.mrb[28].mxu0 %vm2473_vm1, %v2449_v63  ;;  %v2779_v50 = vadd.f32 %v2747_v39, %v5520_v60  ;;  %v2877_v4 = vadd.f32 1.0, %v3614_v59  ;;  %v2780_v22 = vadd.f32 %v2748_v57, %v5535_v56  ;;  %v5599_v9 = vadd.f32 %v5478_v23, %v5460_v6 }
 0x1d5   : > { %v2752_v26 = vmul.f32 0.044715, %v2720_v58  ;;  %v2817_v24 = vmul.f32 0.7978846, %v2785_v15  ;;  %v2815_v35 = vmul.f32 0.7978846, %v2783_v14  ;;  %v2786_v18 = vadd.f32 %v2754_v7, %v5562_v40 }
 0x1d6   : > { %v2811_v51 = vmul.f32 0.7978846, %v2779_v50  ;;  %v2909_v29 = vmul.f32 0.5, %v2877_v4  ;;  %v2812_v16 = vmul.f32 0.7978846, %v2780_v22  ;;  %v5609_v37 = vadd.f32 %v5478_v23, %v5448_v2 }
 0x1d7   : > { %v2784_v48 = vadd.f32 %v2752_v26, %v5566_v44  ;;  %3617 = vtanh.f32 %v2817_v24  ;;  %v2818_v12 = vmul.f32 0.7978846, %v2786_v18  ;;  %v2694_v6 = vmul.f32 %v5595_v55, %v5595_v55 }
 0x1d8   : > { %3619 = vtanh.f32 %v2815_v35  ;;  %v5588_v30 = vmul.f32 %v2909_v29, %v5490_v1  ;;  %v5605_v1 = vadd.f32 %v5444_v25, %v5478_v23  ;;  %v2692_v34 = vmul.f32 %v5599_v9, %v5599_v9 }
 0x1d9   : > { %v2816_v52 = vmul.f32 0.7978846, %v2784_v48  ;;  %3621 = vtanh.f32 %v2818_v12  ;;  %v2691_v2 = vmul.f32 %v5609_v37, %v5609_v37  ;;  %v2726_v36 = vmul.f32 %v2694_v6, %v5595_v55 }
 0x1da   : > { %v3616_v13 = vpop.eup %3615  ;;  %v2693_v63 = vmul.f32 %v5605_v1, %v5605_v1  ;;  %v2724_v58 = vmul.f32 %v2692_v34, %v5599_v9 }
 0x1db   : > { %3623 = vtanh.f32 %v2816_v52  ;;  %v2878_v42 = vadd.f32 1.0, %v3616_v13  ;;  %v2723_v7 = vmul.f32 %v2691_v2, %v5609_v37  ;;  %v2758_v57 = vmul.f32 0.044715, %v2726_v36 }
 0x1dc   : > { %3625 = vtanh.f32 %v2811_v51  ;;  %v2725_v15 = vmul.f32 %v2693_v63, %v5605_v1  ;;  %v2756_v18 = vmul.f32 0.044715, %v2724_v58 }
 0x1dd   : > { %v2910_v21 = vmul.f32 0.5, %v2878_v42  ;;  %3627 = vtanh.f32 %v2812_v16  ;;  %v2755_v52 = vmul.f32 0.044715, %v2723_v7  ;;  %v2790_v51 = vadd.f32 %v2758_v57, %v5595_v55 }
 0x1de   : > { %v2757_v50 = vmul.f32 0.044715, %v2725_v15 }
 0x1df   : > { %v5591_v61 = vmul.f32 %v2910_v21, %v5496_v62  ;;  %v2787_v16 = vadd.f32 %v2755_v52, %v5609_v37 }
 0x1e1   : > { %v3618_v10 = vpop.eup %3617  ;;  %v2972_v17 = vpack.c.bf16 %v5591_v61, %v5588_v30  ;;  %v2822_v30 = vmul.f32 0.7978846, %v2790_v51 }
 0x1e2   : > { %v3620_v11 = vpop.eup %3619  ;;  %v2881_v32 = vadd.f32 1.0, %v3618_v10 }
 0x1e3   : > { %v3622_v3 = vpop.eup %3621  ;;  %v2879_v38 = vadd.f32 1.0, %v3620_v11  ;;  %3629 = vtanh.f32 %v2822_v30 }
 0x1e4   : > { %v2882_v8 = vadd.f32 1.0, %v3622_v3  ;;  %v2913_v14 = vmul.f32 0.5, %v2881_v32  ;;  %v2819_v3 = vmul.f32 0.7978846, %v2787_v16 }
 0x1e5   : > { %v3499_v62 = vpop.f32.mrb[12].mxu0  ;;  %v3624_v49 = vpop.eup %3623  ;;  %v2911_v19 = vmul.f32 0.5, %v2879_v38 }
 0x1e6   : > { %v2604_v0 = vpop.f32.mrb[13].mxu0  ;;  %v2880_v5 = vadd.f32 1.0, %v3624_v49  ;;  %v3626_v27 = vpop.eup %3625  ;;  %v2914_v45 = vmul.f32 0.5, %v2882_v8  ;;  %v2945_v12 = vmul.f32 %v2913_v14, %v5541_v54  ;;  %v5640_v11 = vadd.f32 %v3499_v62, %v5478_v23 }
 0x1e7   : > { %v3500_v43 = vpop.f32.mrb[14].mxu0  ;;  %v3628_v39 = vpop.eup %3627  ;;  %v2875_v26 = vadd.f32 1.0, %v3626_v27  ;;  %v2943_v24 = vmul.f32 %v2911_v19, %v5545_v20 }
 0x1e8   : > { %v2607_v25 = vpop.f32.mrb[15].mxu0  ;;  %v2912_v47 = vmul.f32 0.5, %v2880_v5  ;;  %v2946_v35 = vmul.f32 %v2914_v45, %v5562_v40  ;;  %v2876_v48 = vadd.f32 1.0, %v3628_v39  ;;  %v2789_v40 = vadd.f32 %v2757_v50, %v5605_v1 }
 0x1e9   : > { %v2907_v4 = vmul.f32 0.5, %v2875_v26  ;;  %v5634_v21 = vadd.f32 %v3500_v43, %v5478_v23  ;;  %v5637_v61 = vadd.f32 %v5478_v23, %v2607_v25  ;;  %v2697_v62 = vmul.f32 %v5640_v11, %v5640_v11 }
 0x1ea   : > { %v2944_v59 = vmul.f32 %v2912_v47, %v5566_v44  ;;  %v2908_v22 = vmul.f32 0.5, %v2876_v48  ;;  %v2788_v44 = vadd.f32 %v2756_v18, %v5599_v9  ;;  %v2974_v20 = vpack.c.bf16 %v2946_v35, %v2945_v12 }
 0x1eb   : > { %v2939_v29 = vmul.f32 %v2907_v4, %v5520_v60  ;;  %v2821_v60 = vmul.f32 0.7978846, %v2789_v40  ;;  %v2698_v49 = vmul.f32 %v5634_v21, %v5634_v21  ;;  %v2696_v6 = vmul.f32 %v5637_v61, %v5637_v61 }
 0x1ec   : > { %v2973_v13 = vpack.c.bf16 %v2944_v59, %v2943_v24  ;;  %v2940_v42 = vmul.f32 %v2908_v22, %v5535_v56  ;;  %v2820_v10 = vmul.f32 0.7978846, %v2788_v44  ;;  %v5644_v56 = vadd.f32 %v5478_v23, %v2604_v0 }
 0x1ed   : > { %v2728_v43 = vmul.f32 %v2696_v6, %v5637_v61  ;;  %v2729_v38 = vmul.f32 %v2697_v62, %v5640_v11  ;;  %v3630_v63 = vpop.eup %3629 }
 0x1ee   : > { %v2971_v54 = vpack.c.bf16 %v2940_v42, %v2939_v29  ;;  %3631 = vtanh.f32 %v2820_v10  ;;  %v2695_v0 = vmul.f32 %v5644_v56, %v5644_v56  ;;  %v2886_v58 = vadd.f32 1.0, %v3630_v63 }
 0x1ef   : > { %3633 = vtanh.f32 %v2821_v60  ;;  %v2760_v34 = vmul.f32 0.044715, %v2728_v43  ;;  %v2761_v25 = vmul.f32 0.044715, %v2729_v38 }
 0x1f0   : > { %3525 = vmatprep.mubr.msk.bf16.mxu1 %vm3026_vm2, %v2971_v54  ;;  %3635 = vtanh.f32 %v2819_v3  ;;  %v2727_v8 = vmul.f32 %v2695_v0, %v5644_v56  ;;  %v2918_v24 = vmul.f32 0.5, %v2886_v58 }
 0x1f1   : > { %3526 = vmatmul.mubr.msk.bf16.vlgmr.msra.gmra.mrb[0].mxu1 %vm3026_vm2, %v2972_v17  ;;  %v2730_v17 = vmul.f32 %v2698_v49, %v5634_v21  ;;  %v2792_v36 = vadd.f32 %v2760_v34, %v5637_v61  ;;  %v2793_v45 = vadd.f32 %v2761_v25, %v5640_v11 }
 0x1f2   : > { %3529 = vmatprep.mubr.msk.bf16.mxu1 %vm3026_vm2, %v2973_v13  ;;  %v2759_v32 = vmul.f32 0.044715, %v2727_v8  ;;  %v2950_v4 = vmul.f32 %v2918_v24, %v5595_v55 }
 0x1f3   : > { %v2762_v5 = vmul.f32 0.044715, %v2730_v17  ;;  %v2824_v26 = vmul.f32 0.7978846, %v2792_v36  ;;  %v2825_v57 = vmul.f32 0.7978846, %v2793_v45 }
 0x1f4   : > { %v2791_v15 = vadd.f32 %v2759_v32, %v5644_v56 }
 0x1f5   : > { %v2794_v2 = vadd.f32 %v2762_v5, %v5634_v21 }
 0x1f6   : > { %v2823_v18 = vmul.f32 0.7978846, %v2791_v15 }
 0x1f7   : > { %v2826_v14 = vmul.f32 0.7978846, %v2794_v2 }
 0x1f8   : > { %v3632_v47 = vpop.eup %3631 }
 0x1f9   : > { %3530 = vmatmul.mubr.msk.bf16.gmra.mrb[4].mxu1 %vm3026_vm2, %v2974_v20  ;;  %v3634_v27 = vpop.eup %3633  ;;  %v2884_v39 = vadd.f32 1.0, %v3632_v47  ;;  %3637 = vtanh.f32 %v2826_v14 }
 0x1fa   : > { %v3636_v19 = vpop.eup %3635  ;;  %v2885_v59 = vadd.f32 1.0, %v3634_v27  ;;  %3639 = vtanh.f32 %v2824_v26 }
 0x1fb   : > { %v2883_v7 = vadd.f32 1.0, %v3636_v19  ;;  %v2916_v35 = vmul.f32 0.5, %v2884_v39  ;;  %3641 = vtanh.f32 %v2825_v57 }
 0x1fc   : > { %v2917_v48 = vmul.f32 0.5, %v2885_v59  ;;  %3643 = vtanh.f32 %v2823_v18 }
 0x1fd   : > { %v2915_v50 = vmul.f32 0.5, %v2883_v7  ;;  %v2948_v12 = vmul.f32 %v2916_v35, %v5599_v9 }
 0x1fe   : > { %v2949_v52 = vmul.f32 %v2917_v48, %v5605_v1 }
 0x1ff   : > { %v2947_v22 = vmul.f32 %v2915_v50, %v5609_v37 }
 0x200   : > { %v2976_v51 = vpack.c.bf16 %v2950_v4, %v2949_v52 }
 0x201   : > { %v2975_v13 = vpack.c.bf16 %v2948_v12, %v2947_v22 }
 0x203   : > { %3533 = vmatprep.mubr.msk.bf16.mxu1 %vm3026_vm2, %v2975_v13  ;;  %v3638_v20 = vpop.eup %3637 }
 0x204   : > { %3534 = vmatmul.mubr.msk.bf16.gmra.mrb[8].mxu1 %vm3026_vm2, %v2976_v51  ;;  %v3640_v9 = vpop.eup %3639  ;;  %v2890_v3 = vadd.f32 1.0, %v3638_v20 }
 0x205   : > { %v3642_v54 = vpop.eup %3641  ;;  %v2888_v62 = vadd.f32 1.0, %v3640_v9 }
 0x206   : > { %v3644_v60 = vpop.eup %3643  ;;  %v2889_v43 = vadd.f32 1.0, %v3642_v54  ;;  %v2922_v63 = vmul.f32 0.5, %v2890_v3 }
 0x207   : > { %v2887_v5 = vadd.f32 1.0, %v3644_v60  ;;  %v2920_v2 = vmul.f32 0.5, %v2888_v62 }
 0x208   : > { %v2921_v19 = vmul.f32 0.5, %v2889_v43  ;;  %v2954_v59 = vmul.f32 %v2922_v63, %v5634_v21 }
 0x209   : > { %v2919_v39 = vmul.f32 0.5, %v2887_v5  ;;  %v2952_v26 = vmul.f32 %v2920_v2, %v5637_v61 }
 0x20a   : > { %v2953_v24 = vmul.f32 %v2921_v19, %v5640_v11 }
 0x20b   : > { %v2951_v35 = vmul.f32 %v2919_v39, %v5644_v56 }
 0x20c   : > { %v2978_v18 = vpack.c.bf16 %v2954_v59, %v2953_v24 }
 0x20d   : > { %v2977_v48 = vpack.c.bf16 %v2952_v26, %v2951_v35 }
 0x20f   : > { %3537 = vmatprep.mubr.msk.bf16.mxu1 %vm3026_vm2, %v2977_v48 }
 0x210   : > { %3538 = vmatmul.mubr.msk.bf16.gmra.mrb[12].mxu1 %vm3026_vm2, %v2978_v18 }
 0x216   : > { %v3503_v44 = vpop.f32.mrb[16].mxu0 }
 0x217   : > { %v5670_v29 = vadd.f32 %v3503_v44, %v5478_v23  ;;  %v2620_v42 = vpop.f32.mrb[17].mxu0 }
 0x218   : > { %v5674_v40 = vadd.f32 %v5478_v23, %v2620_v42  ;;  %v3504_v55 = vpop.f32.mrb[18].mxu0 }
 0x219   : > { %v2701_v1 = vmul.f32 %v5670_v29, %v5670_v29  ;;  %v2632_v37 = vadd.f32 %v3504_v55, %v5478_v23  ;;  %v2623_v16 = vpop.f32.mrb[19].mxu0 }
 0x21a   : > { %v2699_v30 = vmul.f32 %v5674_v40, %v5674_v40  ;;  %v2624_v10 = vadd.f32 %v5478_v23, %v2623_v16 }
 0x21b   : > { %v2733_v49 = vmul.f32 %v2701_v1, %v5670_v29  ;;  %v2702_v6 = vmul.f32 %v2632_v37, %v2632_v37 }
 0x21c   : > { %v2731_v0 = vmul.f32 %v2699_v30, %v5674_v40  ;;  %v2700_v17 = vmul.f32 %v2624_v10, %v2624_v10 }
 0x21d   : > { %v2765_v38 = vmul.f32 0.044715, %v2733_v49  ;;  %v2734_v8 = vmul.f32 %v2702_v6, %v2632_v37 }
 0x21e   : > { %v2763_v34 = vmul.f32 0.044715, %v2731_v0  ;;  %v2732_v25 = vmul.f32 %v2700_v17, %v2624_v10 }
 0x21f   : > { %v2797_v32 = vadd.f32 %v2765_v38, %v5670_v29  ;;  %v2766_v47 = vmul.f32 0.044715, %v2734_v8 }
 0x220   : > { %v2795_v27 = vadd.f32 %v2763_v34, %v5674_v40  ;;  %v2764_v36 = vmul.f32 0.044715, %v2732_v25 }
 0x221   : > { %v2829_v45 = vmul.f32 0.7978846, %v2797_v32  ;;  %v2798_v58 = vadd.f32 %v2766_v47, %v2632_v37 }
 0x222   : > { %v2827_v15 = vmul.f32 0.7978846, %v2795_v27  ;;  %v2796_v14 = vadd.f32 %v2764_v36, %v2624_v10 }
 0x223   : > { %3645 = vtanh.f32 %v2829_v45  ;;  %v2830_v7 = vmul.f32 0.7978846, %v2798_v58 }
 0x224   : > { %3647 = vtanh.f32 %v2827_v15  ;;  %v2828_v57 = vmul.f32 0.7978846, %v2796_v14 }
 0x225   : > { %3649 = vtanh.f32 %v2830_v7 }
 0x226   : > { %3651 = vtanh.f32 %v2828_v57 }
 0x22d   : > { %v3646_v50 = vpop.eup %3645 }
 0x22e   : > { %v3648_v21 = vpop.eup %3647  ;;  %v2893_v4 = vadd.f32 1.0, %v3646_v50 }
 0x22f   : > { %v3650_v12 = vpop.eup %3649  ;;  %v2891_v52 = vadd.f32 1.0, %v3648_v21 }
 0x230   : > { %v3652_v61 = vpop.eup %3651  ;;  %v2925_v22 = vmul.f32 0.5, %v2893_v4  ;;  %v2894_v13 = vadd.f32 1.0, %v3650_v12 }
 0x231   : > { %v2923_v51 = vmul.f32 0.5, %v2891_v52  ;;  %v2892_v11 = vadd.f32 1.0, %v3652_v61 }
 0x232   : > { %v2926_v44 = vmul.f32 0.5, %v2894_v13  ;;  %v2957_v56 = vmul.f32 %v2925_v22, %v5670_v29 }
 0x233   : > { %v2924_v42 = vmul.f32 0.5, %v2892_v11  ;;  %v2955_v55 = vmul.f32 %v2923_v51, %v5674_v40 }
 0x234   : > { %v2958_v20 = vmul.f32 %v2926_v44, %v2632_v37 }
 0x235   : > { %v2956_v9 = vmul.f32 %v2924_v42, %v2624_v10 }
 0x236   : > { %v2980_v1 = vpack.c.bf16 %v2958_v20, %v2957_v56 }
 0x237   : > { %v2979_v16 = vpack.c.bf16 %v2956_v9, %v2955_v55 }
 0x239   : > { %3541 = vmatprep.mubr.msk.bf16.mxu1 %vm3026_vm2, %v2979_v16 }
 0x23a   : > { %3542 = vmatmul.mubr.msk.bf16.gmra.mrb[16].mxu1 %vm3026_vm2, %v2980_v1 }
 0x246   : > { %v3507_v54 = vpop.f32.mrb[20].mxu0 }
 0x247   : > { %v2645_v30 = vadd.f32 %v3507_v54, %v5478_v23  ;;  %v2636_v60 = vpop.f32.mrb[21].mxu0 }
 0x248   : > { %v2637_v3 = vadd.f32 %v5478_v23, %v2636_v60  ;;  %v3508_v49 = vpop.f32.mrb[22].mxu0 }
 0x249   : > { %v2705_v6 = vmul.f32 %v2645_v30, %v2645_v30  ;;  %v2648_v29 = vadd.f32 %v3508_v49, %v5478_v23  ;;  %v2639_v37 = vpop.f32.mrb[23].mxu0 }
 0x24a   : > { %v2703_v62 = vmul.f32 %v2637_v3, %v2637_v3  ;;  %v2640_v40 = vadd.f32 %v5478_v23, %v2639_v37 }
 0x24b   : > { %v2737_v10 = vmul.f32 %v2705_v6, %v2645_v30  ;;  %v2706_v0 = vmul.f32 %v2648_v29, %v2648_v29 }
 0x24c   : > { %v2735_v17 = vmul.f32 %v2703_v62, %v2637_v3  ;;  %v2704_v43 = vmul.f32 %v2640_v40, %v2640_v40 }
 0x24d   : > { %v2769_v38 = vmul.f32 0.044715, %v2737_v10  ;;  %v2738_v8 = vmul.f32 %v2706_v0, %v2648_v29 }
 0x24e   : > { %v2767_v5 = vmul.f32 0.044715, %v2735_v17  ;;  %v2736_v34 = vmul.f32 %v2704_v43, %v2640_v40 }
 0x24f   : > { %v2801_v25 = vadd.f32 %v2769_v38, %v2645_v30  ;;  %v2770_v63 = vmul.f32 0.044715, %v2738_v8 }
 0x250   : > { %v2799_v32 = vadd.f32 %v2767_v5, %v2637_v3  ;;  %v2768_v47 = vmul.f32 0.044715, %v2736_v34 }
 0x251   : > { %v2833_v2 = vmul.f32 0.7978846, %v2801_v25  ;;  %v2802_v27 = vadd.f32 %v2770_v63, %v2648_v29 }
 0x252   : > { %v2831_v36 = vmul.f32 0.7978846, %v2799_v32  ;;  %v2800_v19 = vadd.f32 %v2768_v47, %v2640_v40 }
 0x253   : > { %3653 = vtanh.f32 %v2833_v2  ;;  %v2834_v45 = vmul.f32 0.7978846, %v2802_v27 }
 0x254   : > { %3655 = vtanh.f32 %v2831_v36  ;;  %v2832_v58 = vmul.f32 0.7978846, %v2800_v19 }
 0x255   : > { %3657 = vtanh.f32 %v2834_v45 }
 0x256   : > { %3659 = vtanh.f32 %v2832_v58 }
 0x25d   : > { %v3654_v39 = vpop.eup %3653 }
 0x25e   : > { %v3656_v15 = vpop.eup %3655  ;;  %v2897_v14 = vadd.f32 1.0, %v3654_v39 }
 0x25f   : > { %v3658_v59 = vpop.eup %3657  ;;  %v2895_v7 = vadd.f32 1.0, %v3656_v15 }
 0x260   : > { %v3660_v26 = vpop.eup %3659  ;;  %v2929_v57 = vmul.f32 0.5, %v2897_v14  ;;  %v2898_v24 = vadd.f32 1.0, %v3658_v59 }
 0x261   : > { %v2927_v35 = vmul.f32 0.5, %v2895_v7  ;;  %v2896_v18 = vadd.f32 1.0, %v3660_v26 }
 0x262   : > { %v2930_v48 = vmul.f32 0.5, %v2898_v24  ;;  %v2961_v21 = vmul.f32 %v2929_v57, %v2645_v30 }
 0x263   : > { %v2928_v50 = vmul.f32 0.5, %v2896_v18  ;;  %v2959_v12 = vmul.f32 %v2927_v35, %v2637_v3 }
 0x264   : > { %v2962_v4 = vmul.f32 %v2930_v48, %v2648_v29 }
 0x265   : > { %v2960_v52 = vmul.f32 %v2928_v50, %v2640_v40 }
 0x266   : > { %v2982_v61 = vpack.c.bf16 %v2962_v4, %v2961_v21 }
 0x267   : > { %v2981_v22 = vpack.c.bf16 %v2960_v52, %v2959_v12 }
 0x269   : > { %3545 = vmatprep.mubr.msk.bf16.mxu1 %vm3026_vm2, %v2981_v22 }
 0x26a   : > { %3546 = vmatmul.mubr.msk.bf16.gmra.mrb[20].mxu1 %vm3026_vm2, %v2982_v61 }
 0x276   : > { %v3511_v13 = vpop.f32.mrb[24].mxu0 }
 0x277   : > { %v2661_v51 = vadd.f32 %v3511_v13, %v5478_v23  ;;  %v2652_v11 = vpop.f32.mrb[25].mxu0 }
 0x278   : > { %v2653_v44 = vadd.f32 %v5478_v23, %v2652_v11  ;;  %v3512_v42 = vpop.f32.mrb[26].mxu0 }
 0x279   : > { %v2709_v56 = vmul.f32 %v2661_v51, %v2661_v51  ;;  %v2664_v20 = vadd.f32 %v3512_v42, %v5478_v23  ;;  %v2655_v55 = vpop.f32.mrb[27].mxu0 }
 0x27a   : > { %v2707_v9 = vmul.f32 %v2653_v44, %v2653_v44  ;;  %v2656_v1 = vadd.f32 %v5478_v23, %v2655_v55 }
 0x27b   : > { %v2741_v16 = vmul.f32 %v2709_v56, %v2661_v51  ;;  %v2710_v54 = vmul.f32 %v2664_v20, %v2664_v20 }
 0x27c   : > { %v2739_v30 = vmul.f32 %v2707_v9, %v2653_v44  ;;  %v2708_v60 = vmul.f32 %v2656_v1, %v2656_v1 }
 0x27d   : > { %v2773_v3 = vmul.f32 0.044715, %v2741_v16  ;;  %v2742_v49 = vmul.f32 %v2710_v54, %v2664_v20 }
 0x27e   : > { %v2771_v6 = vmul.f32 0.044715, %v2739_v30  ;;  %v2740_v29 = vmul.f32 %v2708_v60, %v2656_v1 }
 0x27f   : > { %v2805_v37 = vadd.f32 %v2773_v3, %v2661_v51  ;;  %v2774_v62 = vmul.f32 0.044715, %v2742_v49 }
 0x280   : > { %v2803_v40 = vadd.f32 %v2771_v6, %v2653_v44  ;;  %v2772_v10 = vmul.f32 0.044715, %v2740_v29 }
 0x281   : > { %v2837_v0 = vmul.f32 0.7978846, %v2805_v37  ;;  %v2806_v17 = vadd.f32 %v2774_v62, %v2664_v20 }
 0x282   : > { %v2835_v43 = vmul.f32 0.7978846, %v2803_v40  ;;  %v2804_v38 = vadd.f32 %v2772_v10, %v2656_v1 }
 0x283   : > { %3661 = vtanh.f32 %v2837_v0  ;;  %v2838_v8 = vmul.f32 0.7978846, %v2806_v17 }
 0x284   : > { %3663 = vtanh.f32 %v2835_v43  ;;  %v2836_v5 = vmul.f32 0.7978846, %v2804_v38 }
 0x285   : > { %3665 = vtanh.f32 %v2838_v8 }
 0x286   : > { %3667 = vtanh.f32 %v2836_v5 }
 0x28d   : > { %v3662_v34 = vpop.eup %3661 }
 0x28e   : > { %v3664_v25 = vpop.eup %3663  ;;  %v2901_v63 = vadd.f32 1.0, %v3662_v34 }
 0x28f   : > { %v3666_v32 = vpop.eup %3665  ;;  %v2899_v47 = vadd.f32 1.0, %v3664_v25 }
 0x290   : > { %v3668_v2 = vpop.eup %3667  ;;  %v2933_v27 = vmul.f32 0.5, %v2901_v63  ;;  %v2902_v36 = vadd.f32 1.0, %v3666_v32 }
 0x291   : > { %v2931_v19 = vmul.f32 0.5, %v2899_v47  ;;  %v2900_v45 = vadd.f32 1.0, %v3668_v2 }
 0x292   : > { %v2934_v58 = vmul.f32 0.5, %v2902_v36  ;;  %v2965_v15 = vmul.f32 %v2933_v27, %v2661_v51  ;;  %v5717_v27 = vld [vmem:[%s5908_s5] ss:$0 sm:$0xff] }
 0x293   : > { %v2932_v39 = vmul.f32 0.5, %v2900_v45  ;;  %v2963_v59 = vmul.f32 %v2931_v19, %v2653_v44 }
 0x294   : > { %v2966_v14 = vmul.f32 %v2934_v58, %v2664_v20 }
 0x295   : > { %v2964_v7 = vmul.f32 %v2932_v39, %v2656_v1 }
 0x296   : > { %v2984_v26 = vpack.c.bf16 %v2966_v14, %v2965_v15  ;;  %v6002_v15 = vld [vmem:[#allocation9_spill] sm:$0xff] }
 0x297   : > { %v2983_v57 = vpack.c.bf16 %v2964_v7, %v2963_v59 }
 0x299   : > { %3549 = vmatprep.mubr.msk.bf16.mxu1 %vm3026_vm2, %v2983_v57 }
 0x29a   : > { %3550 = vmatmul.mubr.msk.bf16.gmra.mrb[24].mxu1 %vm3026_vm2, %v2984_v26  ;;  %v6003_v26 = vld [vmem:[#allocation11_spill] sm:$0xff] }
 0x2a7   : > { %v3515_v24 = vpop.f32.mrb[28].mxu0 }
 0x2a8   : > { %v2677_v35 = vadd.f32 %v3515_v24, %v5478_v23  ;;  %v2668_v18 = vpop.f32.mrb[29].mxu0 }
 0x2a9   : > { %v2669_v48 = vadd.f32 %v5478_v23, %v2668_v18  ;;  %v3516_v50 = vpop.f32.mrb[30].mxu0 }
 0x2aa   : > { %v2713_v21 = vmul.f32 %v2677_v35, %v2677_v35  ;;  %v2680_v4 = vadd.f32 %v3516_v50, %v5478_v23  ;;  %v2671_v12 = vpop.f32.mrb[31].mxu0 }
 0x2ab   : > { %v2711_v52 = vmul.f32 %v2669_v48, %v2669_v48  ;;  %v2672_v61 = vadd.f32 %v5478_v23, %v2671_v12 }
 0x2ac   : > { %v2745_v22 = vmul.f32 %v2713_v21, %v2677_v35  ;;  %v2714_v13 = vmul.f32 %v2680_v4, %v2680_v4 }
 0x2ad   : > { %v2743_v51 = vmul.f32 %v2711_v52, %v2669_v48  ;;  %v2712_v11 = vmul.f32 %v2672_v61, %v2672_v61 }
 0x2ae   : > { %v2777_v44 = vmul.f32 0.044715, %v2745_v22  ;;  %v2746_v42 = vmul.f32 %v2714_v13, %v2680_v4  ;;  %v6006_v22 = vld [vmem:[#allocation8_spill] sm:$0xff] }
 0x2af   : > { %v2775_v56 = vmul.f32 0.044715, %v2743_v51  ;;  %v2744_v20 = vmul.f32 %v2712_v11, %v2672_v61 }
 0x2b0   : > { %v2809_v55 = vadd.f32 %v2777_v44, %v2677_v35  ;;  %v2778_v9 = vmul.f32 0.044715, %v2746_v42  ;;  %v6007_v44 = vld [vmem:[#allocation16_spill] sm:$0xff] }
 0x2b1   : > { %v2807_v1 = vadd.f32 %v2775_v56, %v2669_v48  ;;  %v2776_v16 = vmul.f32 0.044715, %v2744_v20  ;;  %v6008_v20 = vld [vmem:[#allocation13_spill] sm:$0xff] }
 0x2b2   : > { %v2841_v54 = vmul.f32 0.7978846, %v2809_v55  ;;  %v2810_v30 = vadd.f32 %v2778_v9, %v2680_v4  ;;  %v6009_v9 = vld [vmem:[#allocation17_spill] sm:$0xff] }
 0x2b3   : > { %v2839_v60 = vmul.f32 0.7978846, %v2807_v1  ;;  %v2808_v3 = vadd.f32 %v2776_v16, %v2672_v61 }
 0x2b4   : > { %3669 = vtanh.f32 %v2841_v54  ;;  %v2842_v49 = vmul.f32 0.7978846, %v2810_v30 }
 0x2b5   : > { %3671 = vtanh.f32 %v2839_v60  ;;  %v2840_v23 = vmul.f32 0.7978846, %v2808_v3 }
 0x2b6   : > { %3673 = vtanh.f32 %v2842_v49  ;;  %v6010_v49 = vld [vmem:[#allocation18_spill] sm:$0xff] }
 0x2b7   : > { %3675 = vtanh.f32 %v2840_v23 }
 0x2be   : > { %v3670_v6 = vpop.eup %3669 }
 0x2bf   : > { %v3672_v29 = vpop.eup %3671  ;;  %v2905_v37 = vadd.f32 1.0, %v3670_v6 }
 0x2c0   : > { %v3674_v62 = vpop.eup %3673  ;;  %v2903_v40 = vadd.f32 1.0, %v3672_v29 }
 0x2c1   : > { %v3676_v10 = vpop.eup %3675  ;;  %v2937_v0 = vmul.f32 0.5, %v2905_v37  ;;  %v2906_v17 = vadd.f32 1.0, %v3674_v62  ;;  %v6011_v37 = vld [vmem:[#allocation10_spill] sm:$0xff] }
 0x2c2   : > { %v2935_v43 = vmul.f32 0.5, %v2903_v40  ;;  %v2904_v38 = vadd.f32 1.0, %v3676_v10  ;;  %v6012_v10 = vld [vmem:[#allocation19_spill] sm:$0xff] }
 0x2c3   : > { %v2938_v8 = vmul.f32 0.5, %v2906_v17  ;;  %v2969_v34 = vmul.f32 %v2937_v0, %v2677_v35  ;;  %v6004_v35 = vld [vmem:[#allocation15_spill] sm:$0xff]  ;;  %v6013_v17 = vld [vmem:[#allocation14_spill] sm:$0xff] }
 0x2c4   : > { %v2936_v5 = vmul.f32 0.5, %v2904_v38  ;;  %v2967_v63 = vmul.f32 %v2935_v43, %v2669_v48  ;;  %v3527_v36 = vpop.f32.mrb[0].mxu1  ;;  %v6005_v48 = vld [vmem:[#allocation12_spill] sm:$0xff] }
 0x2c5   : > { %v2970_v25 = vmul.f32 %v2938_v8, %v2680_v4  ;;  %v3118_v19 = vadd.f32 %v3527_v36, %v5717_v27  ;;  %v3109_v45 = vpop.f32.mrb[1].mxu1  ;;  %v6015_v36 = vld [vmem:[#allocation20_spill] sm:$0xff] }
 0x2c6   : > { %v2968_v32 = vmul.f32 %v2936_v5, %v2672_v61  ;;  %v3110_v58 = vadd.f32 %v5717_v27, %v3109_v45  ;;  %v3528_v39 = vpop.f32.mrb[2].mxu1 }
 0x2c7   : > { %v2986_v47 = vpack.c.bf16 %v2970_v25, %v2969_v34  ;;  %v3238_v14 = vadd.f32 %v3118_v19, %v6002_v15  ;;  %v3121_v59 = vadd.f32 %v3528_v39, %v5717_v27  ;;  %v3112_v7 = vpop.f32.mrb[3].mxu1  ;;  %v6017_v15 = vld [vmem:[#allocation21_spill] sm:$0xff] }
 0x2c8   : > { %v2985_v2 = vpack.c.bf16 %v2968_v32, %v2967_v63  ;;  %v3236_v57 = vadd.f32 %v3110_v58, %v6003_v26  ;;  %v3113_v24 = vadd.f32 %v5717_v27, %v3112_v7  ;;  %v6014_v63 = vld [vmem:[#allocation22_spill] sm:$0xff]  ;;  %v6016_v58 = vld [vmem:[#allocation23_spill] sm:$0xff] }
 0x2c9   : > { %3270 = vst.msk [vmem:[%s5728_s15 + $0x10] sm:$0xff] %vm2473_vm1, %v3238_v14  ;;  %v3239_v18 = vadd.f32 %v3121_v59, %v6004_v35  ;;  %v6018_v35 = vld [vmem:[#allocation26_spill] sm:$0xff] }
 0x2ca   : > { %3553 = vmatprep.mubr.msk.bf16.mxu1 %vm3026_vm2, %v2985_v2  ;;  %3268 = vst.msk [vmem:[%s5728_s15] sm:$0xff] %vm2473_vm1, %v3236_v57  ;;  %v3237_v50 = vadd.f32 %v3113_v24, %v6005_v48 }
 0x2cb   : > { %3554 = vmatmul.mubr.msk.bf16.gmra.mrb[28].mxu1 %vm3026_vm2, %v2986_v47  ;;  %3271 = vst.msk [vmem:[%s5728_s15 + $0x18] sm:$0xff] %vm2473_vm1, %v3239_v18 }
 0x2cc   : > { %3269 = vst.msk [vmem:[%s5728_s15 + $0x8] sm:$0xff] %vm2473_vm1, %v3237_v50  ;;  %v3531_v21 = vpop.f32.mrb[4].mxu1 }
 0x2cd   : > { %v3134_v4 = vadd.f32 %v3531_v21, %v5717_v27  ;;  %v3125_v12 = vpop.f32.mrb[5].mxu1  ;;  %v6019_v21 = vld [vmem:[#allocation24_spill] sm:$0xff] }
 0x2ce   : > { %v3126_v52 = vadd.f32 %v5717_v27, %v3125_v12  ;;  %v3532_v61 = vpop.f32.mrb[6].mxu1 }
 0x2cf   : > { %v3242_v13 = vadd.f32 %v3134_v4, %v6006_v22  ;;  %v3137_v51 = vadd.f32 %v3532_v61, %v5717_v27  ;;  %v3128_v11 = vpop.f32.mrb[7].mxu1  ;;  %v6021_v22 = vld [vmem:[#allocation25_spill] sm:$0xff] }
 0x2d0   : > { %v3240_v42 = vadd.f32 %v3126_v52, %v6007_v44  ;;  %v3129_v56 = vadd.f32 %v5717_v27, %v3128_v11  ;;  %v6020_v52 = vld [vmem:[#allocation27_spill] sm:$0xff] }
 0x2d1   : > { %3274 = vst.msk [vmem:[%s5728_s15 + $0x30] sm:$0xff] %vm2473_vm1, %v3242_v13  ;;  %v3243_v55 = vadd.f32 %v3137_v51, %v6008_v20  ;;  %v6022_v20 = vld [vmem:[#allocation34_spill] sm:$0xff] }
 0x2d2   : > { %3272 = vst.msk [vmem:[%s5728_s15 + $0x20] sm:$0xff] %vm2473_vm1, %v3240_v42  ;;  %v3241_v1 = vadd.f32 %v3129_v56, %v6009_v9 }
 0x2d3   : > { %3275 = vst.msk [vmem:[%s5728_s15 + $0x38] sm:$0xff] %vm2473_vm1, %v3243_v55 }
 0x2d4   : > { %3273 = vst.msk [vmem:[%s5728_s15 + $0x28] sm:$0xff] %vm2473_vm1, %v3241_v1 }
 0x2d7   : > { %v3535_v16 = vpop.f32.mrb[8].mxu1 }
 0x2d8   : > { %v3150_v54 = vadd.f32 %v3535_v16, %v5717_v27  ;;  %v3141_v30 = vpop.f32.mrb[9].mxu1  ;;  %v6023_v16 = vld [vmem:[#allocation29_spill] sm:$0xff] }
 0x2d9   : > { %v3142_v60 = vadd.f32 %v5717_v27, %v3141_v30  ;;  %v3536_v3 = vpop.f32.mrb[10].mxu1 }
 0x2da   : > { %v3246_v23 = vadd.f32 %v3150_v54, %v6010_v49  ;;  %v3153_v6 = vadd.f32 %v3536_v3, %v5717_v27  ;;  %v3144_v29 = vpop.f32.mrb[11].mxu1  ;;  %v6025_v49 = vld [vmem:[#allocation30_spill] sm:$0xff] }
 0x2db   : > { %v3244_v62 = vadd.f32 %v3142_v60, %v6011_v37  ;;  %v3145_v40 = vadd.f32 %v5717_v27, %v3144_v29  ;;  %v6024_v60 = vld [vmem:[#allocation35_spill] sm:$0xff] }
 0x2dc   : > { %3278 = vst.msk [vmem:[%s5728_s15 + $0x50] sm:$0xff] %vm2473_vm1, %v3246_v23  ;;  %v3247_v0 = vadd.f32 %v3153_v6, %v6012_v10 }
 0x2dd   : > { %3276 = vst.msk [vmem:[%s5728_s15 + $0x40] sm:$0xff] %vm2473_vm1, %v3244_v62  ;;  %v3245_v43 = vadd.f32 %v3145_v40, %v6013_v17 }
 0x2de   : > { %3279 = vst.msk [vmem:[%s5728_s15 + $0x58] sm:$0xff] %vm2473_vm1, %v3247_v0 }
 0x2df   : > { %3277 = vst.msk [vmem:[%s5728_s15 + $0x48] sm:$0xff] %vm2473_vm1, %v3245_v43  ;;  %v6026_v43 = vld [vmem:[#allocation38_spill] sm:$0xff] }
 0x2e3   : > { %v3539_v38 = vpop.f32.mrb[12].mxu1 }
 0x2e4   : > { %v3166_v8 = vadd.f32 %v3539_v38, %v5717_v27  ;;  %v3157_v5 = vpop.f32.mrb[13].mxu1 }
 0x2e5   : > { %v3158_v34 = vadd.f32 %v5717_v27, %v3157_v5  ;;  %v3540_v25 = vpop.f32.mrb[14].mxu1 }
 0x2e6   : > { %v3250_v32 = vadd.f32 %v3166_v8, %v6014_v63  ;;  %v3169_v47 = vadd.f32 %v3540_v25, %v5717_v27  ;;  %v3160_v2 = vpop.f32.mrb[15].mxu1 }
 0x2e7   : > { %v3248_v19 = vadd.f32 %v3158_v34, %v6015_v36  ;;  %v3161_v45 = vadd.f32 %v5717_v27, %v3160_v2  ;;  %v6027_v34 = vld [vmem:[#allocation40_spill] sm:$0xff] }
 0x2e8   : > { %3282 = vst.msk [vmem:[%s5728_s15 + $0x70] sm:$0xff] %vm2473_vm1, %v3250_v32  ;;  %v3251_v39 = vadd.f32 %v3169_v47, %v6016_v58 }
 0x2e9   : > { %3280 = vst.msk [vmem:[%s5728_s15 + $0x60] sm:$0xff] %vm2473_vm1, %v3248_v19  ;;  %v3249_v14 = vadd.f32 %v3161_v45, %v6017_v15 }
 0x2ea   : > { %3283 = vst.msk [vmem:[%s5728_s15 + $0x78] sm:$0xff] %vm2473_vm1, %v3251_v39 }
 0x2eb   : > { %3281 = vst.msk [vmem:[%s5728_s15 + $0x68] sm:$0xff] %vm2473_vm1, %v3249_v14 }
 0x30d   : > { %v3543_v59 = vpop.f32.mrb[16].mxu1 }
 0x30e   : > { %v3182_v7 = vadd.f32 %v3543_v59, %v5717_v27  ;;  %v3173_v26 = vpop.f32.mrb[17].mxu1 }
 0x30f   : > { %v3174_v57 = vadd.f32 %v5717_v27, %v3173_v26  ;;  %v3544_v24 = vpop.f32.mrb[18].mxu1 }
 0x310   : > { %v3254_v18 = vadd.f32 %v3182_v7, %v6018_v35  ;;  %v3185_v48 = vadd.f32 %v3544_v24, %v5717_v27  ;;  %v3176_v50 = vpop.f32.mrb[19].mxu1 }
 0x311   : > { %v3252_v4 = vadd.f32 %v3174_v57, %v6019_v21  ;;  %v3177_v12 = vadd.f32 %v5717_v27, %v3176_v50 }
 0x312   : > { %3286 = vst.msk [vmem:[%s5728_s15 + $0x90] sm:$0xff] %vm2473_vm1, %v3254_v18  ;;  %v3255_v61 = vadd.f32 %v3185_v48, %v6020_v52 }
 0x313   : > { %3284 = vst.msk [vmem:[%s5728_s15 + $0x80] sm:$0xff] %vm2473_vm1, %v3252_v4  ;;  %v3253_v13 = vadd.f32 %v3177_v12, %v6021_v22 }
 0x314   : > { %3287 = vst.msk [vmem:[%s5728_s15 + $0x98] sm:$0xff] %vm2473_vm1, %v3255_v61 }
 0x315   : > { %3285 = vst.msk [vmem:[%s5728_s15 + $0x88] sm:$0xff] %vm2473_vm1, %v3253_v13 }
 0x33d   : > { %v3547_v51 = vpop.f32.mrb[20].mxu1 }
 0x33e   : > { %v3198_v11 = vadd.f32 %v3547_v51, %v5717_v27  ;;  %v3189_v44 = vpop.f32.mrb[21].mxu1 }
 0x33f   : > { %v3190_v42 = vadd.f32 %v5717_v27, %v3189_v44  ;;  %v3548_v56 = vpop.f32.mrb[22].mxu1 }
 0x340   : > { %v3258_v55 = vadd.f32 %v3198_v11, %v6022_v20  ;;  %v3201_v9 = vadd.f32 %v3548_v56, %v5717_v27  ;;  %v3192_v1 = vpop.f32.mrb[23].mxu1 }
 0x341   : > { %v3256_v54 = vadd.f32 %v3190_v42, %v6023_v16  ;;  %v3193_v30 = vadd.f32 %v5717_v27, %v3192_v1 }
 0x342   : > { %3290 = vst.msk [vmem:[%s5728_s15 + $0xb0] sm:$0xff] %vm2473_vm1, %v3258_v55  ;;  %v3259_v3 = vadd.f32 %v3201_v9, %v6024_v60 }
 0x343   : > { %3288 = vst.msk [vmem:[%s5728_s15 + $0xa0] sm:$0xff] %vm2473_vm1, %v3256_v54  ;;  %v3257_v23 = vadd.f32 %v3193_v30, %v6025_v49 }
 0x344   : > { %3291 = vst.msk [vmem:[%s5728_s15 + $0xb8] sm:$0xff] %vm2473_vm1, %v3259_v3 }
 0x345   : > { %3289 = vst.msk [vmem:[%s5728_s15 + $0xa8] sm:$0xff] %vm2473_vm1, %v3257_v23 }
 0x36d   : > { %v3551_v6 = vpop.f32.mrb[24].mxu1 }
 0x36e   : > { %v3214_v29 = vadd.f32 %v3551_v6, %v5717_v27  ;;  %v3205_v37 = vpop.f32.mrb[25].mxu1 }
 0x36f   : > { %v3206_v62 = vadd.f32 %v5717_v27, %v3205_v37  ;;  %v3552_v40 = vpop.f32.mrb[26].mxu1 }
 0x370   : > { %v3262_v10 = vadd.f32 %v3214_v29, %v5363_v46  ;;  %v3217_v0 = vadd.f32 %v3552_v40, %v5717_v27  ;;  %v3208_v17 = vpop.f32.mrb[27].mxu1 }
 0x371   : > { %v3260_v38 = vadd.f32 %v3206_v62, %v6026_v43  ;;  %v3209_v8 = vadd.f32 %v5717_v27, %v3208_v17 }
 0x372   : > { %3294 = vst.msk [vmem:[%s5728_s15 + $0xd0] sm:$0xff] %vm2473_vm1, %v3262_v10  ;;  %v3263_v5 = vadd.f32 %v3217_v0, %v5365_v53 }
 0x373   : > { %3292 = vst.msk [vmem:[%s5728_s15 + $0xc0] sm:$0xff] %vm2473_vm1, %v3260_v38  ;;  %v3261_v25 = vadd.f32 %v3209_v8, %v6027_v34 }
 0x374   : > { %3295 = vst.msk [vmem:[%s5728_s15 + $0xd8] sm:$0xff] %vm2473_vm1, %v3263_v5 }
 0x375   : > { %3293 = vst.msk [vmem:[%s5728_s15 + $0xc8] sm:$0xff] %vm2473_vm1, %v3261_v25 }
 0x39e   : > { %v3555_v46 = vpop.f32.mrb[28].mxu1 }
 0x39f   : > { %v3230_v63 = vadd.f32 %v3555_v46, %v5717_v27  ;;  %v3221_v32 = vpop.f32.mrb[29].mxu1 }
 0x3a0   : > { %v3222_v47 = vadd.f32 %v5717_v27, %v3221_v32  ;;  %v3556_v2 = vpop.f32.mrb[30].mxu1 }
 0x3a1   : > { %v3266_v53 = vadd.f32 %v3230_v63, %v5556_v41  ;;  %v3233_v36 = vadd.f32 %v3556_v2, %v5717_v27  ;;  %v3224_v19 = vpop.f32.mrb[31].mxu1 }
 0x3a2   : > { %v3264_v45 = vadd.f32 %v3222_v47, %v5454_v28  ;;  %v3225_v58 = vadd.f32 %v5717_v27, %v3224_v19 }
 0x3a3   : > { %3298 = vst.msk [vmem:[%s5728_s15 + $0xf0] sm:$0xff] %vm2473_vm1, %v3266_v53  ;;  %v3267_v39 = vadd.f32 %v3233_v36, %v5558_v31 }
 0x3a4   : > { %3296 = vst.msk [vmem:[%s5728_s15 + $0xe0] sm:$0xff] %vm2473_vm1, %v3264_v45  ;;  %v3265_v28 = vadd.f32 %v3225_v58, %v5462_v33 }
 0x3a5   : > { %3299 = vst.msk [vmem:[%s5728_s15 + $0xf8] sm:$0xff] %vm2473_vm1, %v3267_v39 }
 0x3a6   : > { %3297 = vst.msk [vmem:[%s5728_s15 + $0xe8] sm:$0xff] %vm2473_vm1, %v3265_v28 }
 0x3a7   : > { %3764 = shalt.err (!%p3761_p2)
}
 0x3a8   : > { %s3765_s8 = scalar_lea.hbm %s5850_s12, 4096  ;;  %s3769_s14 = scalar_lea.hbm %s5909_s6, 8192 }
 0x3a9   : > { %p3766_p4 = scmp.ne.s32.totalorder %s5850_s12, %s3765_s8  ;;  %p3770_p9 = scmp.lt.u32.totalorder %s5850_s12, %s5909_s6 }
 0x3aa   : > { %p3771_p1 = scmp.lt.u32.totalorder %s3769_s14, %s3765_s8  ;;  %p3773_p6 = scmp.lt.u32.totalorder %s3765_s8, %s5850_s12 }
 0x3ab   : > { %p3767_p5 = pnand %p3766_p4, %p6028_p11 }
 0x3ac   : > { %p3772_p3 = por %p3771_p1, %p3770_p9 }
 0x3ad   : > { %p3768_p7 = pneg %p3767_p5 }
 0x3ae   : > { %p3774_p12 = por %p3773_p6, %p3772_p3 }
 0x3b0   : > { %p3775_p13 = pnand %p3774_p12, %p3768_p7 }
 0x3b2   : > { %3778 = shalt.err (!%p3775_p13)
}
 0x3b3   : > { %s3823_s26 = smov 128   ;;  %s3824_s28 = smov 8  }
 0x3b4   : > { %3559 = dma.vmem_to_hbm [thread:$0]  (%p6028_p11), %s5852_s17, 4096, %s5850_s12, %s3301_s25, %s3823_s26, %s3823_s26, %s3824_s28  }
 0x3b5 PF: > { %s3329_s16 = sand.u32 1, %s3805_s21   ;;  %p6029_p8 = scmp.ne.s32.totalorder %s5950_s10, 0 }
 0x3b6   : > { %p6030_p10 = scmp.ge.s32.totalorder %s3817_s24, 2  ;;  %s3330_s18 = scalar_lea.sflag [#allocation4], %s3329_s16 }
 0x3b8   : > { %p3566_p0 = pnand %p6030_p10, %p6029_p8 }
 0x3ba   : > { %3800 = dma.done.wait (!%p3566_p0), %s3330_s18, 4096  }
 0x3bb   : > { %3802 = vsyncadd (!%p3566_p0), %s3330_s18, 4294963200  ;;  %p19_p2 = scmp.ge.s32.totalorder %s3885_s27, 4   ;;  %s6031_s21 = smov %s3809_s22 }
 0x3bc   : > { %s6032_s22 = smov %s3813_s23  ;;  %s6033_s23 = smov %s3897_s30 }
 0x3bd   : > { %s6034_s24 = smov %s3885_s27  ;;  %21 = sbr.rel (!%p19_p2) target bundleno = 5 (0x5), region = 89 }
 0x3c4   :  { %3335 = vsyncpa [#allocation3], 1 }
 0x3c5   :  { %3337 = vsyncpa [#allocation3 + $0x1], 1 }
 0x3c6   :  { %3338 = vsyncpa [#allocation4], 1 }
 0x3c7   :  { %3340 = vsyncpa [#allocation4 + $0x1], 1 }

</bundles_post_ra>
